<compile_context>
chip_gen: v6e
topology: v6e:2x2x1
jax: 0.10.0
libtpu: 0.0.40
codegen_flags: <defaults>
</compile_context>

<pallas_src>
import functools

import jax
import jax.numpy as jnp
from jax import lax
from jax.experimental import pallas as pl
from jax.experimental.pallas import tpu as pltpu

EPS = 1e-5          # nn.BatchNorm2d default eps
NEG_SLOPE = 0.01    # nn.LeakyReLU default negative_slope
LANES = 128


def net_kernel(x_ref, slab_ref, w1m_ref, w2m_ref, wfc1_ref, out_ref,
               *, cin, w_img, mxu_dtype):
    x = x_ref[...]                          # (H, N, 128) f32, lanes = (w, c), zero-padded
    H, N, WCp = x.shape
    KH = w1m_ref.shape[0]                   # 5
    F1 = wfc1_ref.shape[-1]                 # 120

    # ---- unpack the small-parameter slab (one DMA) -----------------------------
    slab = slab_ref[...]                    # (R, 128) f32
    cmask = slab[0:cin, :]                  # (Cin, 128) one-hot channel mask
    gamma = slab[cin:2 * cin, 0:1]          # (Cin, 1)
    beta = slab[2 * cin:3 * cin, 0:1]       # (Cin, 1)
    r0 = 3 * cin
    b1t = slab[r0:r0 + 1, :]                # (1, 128) conv1 bias tiled over out columns
    b2t = slab[r0 + 1:r0 + 2, :]            # (1, 128) conv2 bias (both parity halves)
    bfc1 = slab[r0 + 2:r0 + 3, 0:F1]        # (1, F1)
    wfc3r = slab[r0 + 3:r0 + 4, 0:F1]       # (1, F1) fc3 weight as a row
    bfc3 = slab[r0 + 4:r0 + 5, 0:1]         # (1, 1)

    # ---- BatchNorm2d (train mode, batch statistics), two-pass centered variance -
    inv_cnt = 1.0 / float(H * N * w_img)
    s_wc = jnp.sum(x, axis=(0, 1), keepdims=True)[0]               # (1, 128)
    sum_c = jnp.sum(s_wc * cmask, axis=1, keepdims=True)           # (Cin, 1)
    mean_c = sum_c * inv_cnt
    mean_wc = jnp.sum(mean_c * cmask, axis=0, keepdims=True)       # (1, 128)
    xc = x - mean_wc                                               # padded lanes stay 0
    ssq_wc = jnp.sum(xc * xc, axis=(0, 1), keepdims=True)[0]       # (1, 128)
    var_c = jnp.sum(ssq_wc * cmask, axis=1, keepdims=True) * inv_cnt
    scale_c = gamma * lax.rsqrt(var_c + EPS)                       # (Cin, 1)
    scale_wc = jnp.sum(scale_c * cmask, axis=0, keepdims=True)     # (1, 128)
    beta_wc = jnp.sum(beta * cmask, axis=0, keepdims=True)         # (1, 128)
    xbn = (xc * scale_wc + beta_wc).astype(mxu_dtype)              # cast hoisted: once

    # ---- layer1: Conv(Cin->C1,5x5,VALID) + bias + LeakyReLU + MaxPool 2x2 -------
    # 5 banded dots with the even/odd parity RHS merged (output lanes 0:128 / 128:256).
    OH1 = H - (KH - 1)                                             # 24
    PH1 = OH1 // 2                                                 # 12
    acc1 = None
    for dy in range(KH):
        lhs = xbn[dy:dy + OH1].reshape(OH1 * N, WCp)               # (192, 128) bf16
        d = jnp.dot(lhs, w1m_ref[dy], preferred_element_type=jnp.float32)
        acc1 = d if acc1 is None else acc1 + d                     # (192, 256)
    m1 = jnp.maximum(acc1[:, :LANES], acc1[:, LANES:])             # W-pool (aligned split)
    m1 = m1.reshape(PH1, 2, N, LANES).max(axis=1)                  # H-pool (12, 8, 128)
    p1 = m1 + b1t
    p1 = jnp.maximum(p1, NEG_SLOPE * p1).astype(mxu_dtype)         # LeakyReLU + single cast

    # ---- layer2: Conv(C1->C2,5x5,VALID) + bias + ReLU + MaxPool 2x2 -------------
    OH2 = PH1 - (KH - 1)                                           # 8
    PH2 = OH2 // 2                                                 # 4
    acc2 = None
    for dy in range(KH):
        lhs = p1[dy:dy + OH2].reshape(OH2 * N, LANES)              # (64, 128) bf16
        d = jnp.dot(lhs, w2m_ref[dy], preferred_element_type=jnp.float32)
        acc2 = d if acc2 is None else acc2 + d                     # (64, 128)
    # W-pool: even block at lanes 0:64, odd at 64:128 -> roll-by-64 max puts the
    # pooled value in BOTH halves (no unaligned lane slice needed).
    m2 = jnp.maximum(acc2, pltpu.roll(acc2, 64, 1))
    m2 = m2.reshape(PH2, 2, N, LANES).max(axis=1)                  # H-pool (4, 8, 128)
    p2 = jnp.maximum(m2 + b2t, 0.0)                                # ReLU

    # ---- fc1 (+ extrarelu): single dot, tile-aligned lane concat (K = PH2*128) --
    lhs_fc = jnp.concatenate([p2[hh] for hh in range(PH2)],
                             axis=-1).astype(mxu_dtype)            # (N, 512)
    h = jnp.dot(lhs_fc, wfc1_ref[...], preferred_element_type=jnp.float32)  # (N, 120)
    h = jnp.maximum(h + bfc1, 0.0)

    # ---- fc3: Linear(120 -> 1) as multiply + lane reduction ---------------------
    out_ref[...] = jnp.sum(h * wfc3r, axis=-1, keepdims=True) + bfc3


def _banded_parity_weight(w, w_in, parity):
    """Banded matmul operand for one output-column parity (wrapper-side).

    w: (KH, KW, Cg, Cout) HWIO conv weight.  Input activation rows are (w, c)-folded
    lanes of width w_in*Cg.  Returns (KH, w_in*Cg, ncols*Cout) with
      out[dy, wi*Cg + c, j*Cout + o] = w[dy, wi - ow_j, c, o]   (0 outside support),
    ow_j = 2*j + parity.
    """
    KH, KW, Cg, Cout = w.shape
    ow = jnp.arange(parity, w_in - (KW - 1), 2)                 # this parity's out cols
    wi = jnp.arange(w_in)
    dxx = wi[:, None] - ow[None, :]                             # (w_in, ncols)
    valid = (dxx >= 0) & (dxx < KW)
    dxx = jnp.clip(dxx, 0, KW - 1)
    b = w[:, dxx]                                               # (KH, w_in, ncols, Cg, Cout)
    b = b * valid[None, :, :, None, None].astype(w.dtype)
    b = jnp.transpose(b, (0, 1, 3, 2, 4))                       # (KH, w_in, Cg, ncols, Cout)
    return b.reshape(KH, w_in * Cg, ow.shape[0] * Cout)


def net_forward(x_nchw, params, mxu_dtype=jnp.bfloat16):
    """Pallas forward.  All banding / padding / bias tiling / packing is wrapper-side."""
    gamma, beta, w1, b1, w2, b2, wfc1, bfc1, wfc3, bfc3 = params
    N, Cin, H, W = x_nchw.shape
    KH, KW, _, C1 = w1.shape
    C2 = w2.shape[-1]
    PW1 = (W - (KW - 1)) // 2
    PW2 = (PW1 - (KW - 1)) // 2
    PH2, F1 = wfc1.shape[0], wfc1.shape[-1]
    n_out = wfc3.shape[-1]
    WC = W * Cin
    L1 = PW1 * C1
    L2 = PW2 * C2
    assert WC <= LANES and L1 <= LANES and L2 <= LANES // 2 and F1 <= LANES
    assert n_out == 1  # BCE=True head.  TODO(synk): BCE=False (2 logits) needs wfc3 unpacked.

    # activations: (H, N, W*Cin) lane-dense, zero-padded to 128 lanes
    x_f = jnp.transpose(x_nchw, (2, 0, 3, 1)).reshape(H, N, WC)
    x_f = jnp.pad(x_f, ((0, 0), (0, 0), (0, LANES - WC)))

    # merged even/odd parity banded conv weights
    w1e = _banded_parity_weight(w1, W, 0)                     # (KH, WC, L1)
    w1o = _banded_parity_weight(w1, W, 1)
    w1m = jnp.zeros((KH, LANES, 2 * LANES), jnp.float32)
    w1m = w1m.at[:, :WC, :L1].set(w1e).at[:, :WC, LANES:LANES + L1].set(w1o)
    w2e = _banded_parity_weight(w2, PW1, 0)                   # (KH, L1, L2)
    w2o = _banded_parity_weight(w2, PW1, 1)
    w2m = jnp.zeros((KH, LANES, LANES), jnp.float32)
    w2m = w2m.at[:, :L1, :L2].set(w2e).at[:, :L1, 64:64 + L2].set(w2o)

    # fc1 weight: (PH2, PW2*C2, F1), each h-block padded to K=128, flattened
    wfc1_p = jnp.zeros((PH2, LANES, F1), jnp.float32).at[:, :L2, :].set(
        wfc1.reshape(PH2, L2, F1))
    wfc1_m = wfc1_p.reshape(PH2 * LANES, F1)

    # small-parameter slab (single DMA): cmask | gamma | beta | b1t | b2t | bfc1 | wfc3 | bfc3
    cmask = jnp.tile(jnp.eye(Cin, dtype=jnp.float32), (1, W))          # (Cin, WC)
    nrows = 3 * Cin + 5
    R = ((nrows + 7) // 8) * 8
    slab = jnp.zeros((R, LANES), jnp.float32)
    slab = slab.at[0:Cin, :WC].set(cmask)
    slab = slab.at[Cin:2 * Cin, 0].set(gamma.reshape(Cin))
    slab = slab.at[2 * Cin:3 * Cin, 0].set(beta.reshape(Cin))
    r0 = 3 * Cin
    slab = slab.at[r0, :L1].set(jnp.tile(b1.reshape(-1), PW1))
    b2row = jnp.tile(b2.reshape(-1), PW2)
    slab = slab.at[r0 + 1, :L2].set(b2row).at[r0 + 1, 64:64 + L2].set(b2row)
    slab = slab.at[r0 + 2, :F1].set(bfc1.reshape(F1))
    slab = slab.at[r0 + 3, :F1].set(wfc3.reshape(F1))
    slab = slab.at[r0 + 4, 0].set(bfc3.reshape(()))

    vmem = pl.BlockSpec(memory_space=pltpu.MemorySpace.VMEM)
    kernel = functools.partial(net_kernel, cin=Cin, w_img=W, mxu_dtype=mxu_dtype)
    return pl.pallas_call(
        kernel,
        out_shape=jax.ShapeDtypeStruct((N, n_out), jnp.float32),
        in_specs=[vmem] * 5,
        out_specs=vmem,
    )(x_f, slab,
      w1m.astype(mxu_dtype), w2m.astype(mxu_dtype), wfc1_m.astype(mxu_dtype))


def init_params(key, Cin=3, C1=6, C2=16, F1=120, PH2=4, PW2=4, n_out=1):
    ks = jax.random.split(key, 8)

    def u(k, shape, limit):
        return jax.random.uniform(k, shape, jnp.float32, -limit, limit)

    gamma = jnp.ones((1, Cin), jnp.float32)             # BN affine defaults
    beta = jnp.zeros((1, Cin), jnp.float32)
    lim1 = (1.0 / (Cin * 25)) ** 0.5                    # conv default-ish init
    w1 = u(ks[0], (5, 5, Cin, C1), lim1)
    b1 = u(ks[1], (1, C1), lim1)
    lim2 = (1.0 / (C1 * 25)) ** 0.5
    w2 = u(ks[2], (5, 5, C1, C2), lim2)
    b2 = u(ks[3], (1, C2), lim2)
    nfeat = PH2 * PW2 * C2
    limf1 = (6.0 / (nfeat + F1)) ** 0.5                 # xavier_uniform (fc1)
    wfc1 = u(ks[4], (PH2, PW2, C2, F1), limf1)
    bfc1 = u(ks[5], (1, F1), (1.0 / nfeat) ** 0.5)
    limf3 = (6.0 / (F1 + n_out)) ** 0.5                 # xavier_uniform (fc3)
    wfc3 = u(ks[6], (F1, n_out), limf3)
    bfc3 = u(ks[7], (1, n_out), (1.0 / F1) ** 0.5)
    return (gamma, beta, w1, b1, w2, b2, wfc1, bfc1, wfc3, bfc3)


def net_reference(x, params):
    """Pure-JAX (NCHW) reference mirroring the PyTorch forward."""
    gamma, beta, w1, b1, w2, b2, wfc1, bfc1, wfc3, bfc3 = params
    mean = x.mean(axis=(0, 2, 3), keepdims=True)
    var = ((x - mean) ** 2).mean(axis=(0, 2, 3), keepdims=True)
    y = (x - mean) / jnp.sqrt(var + EPS)
    y = y * gamma.reshape(1, -1, 1, 1) + beta.reshape(1, -1, 1, 1)
    dn = ("NCHW", "HWIO", "NCHW")
    y = lax.conv_general_dilated(y, w1, (1, 1), "VALID", dimension_numbers=dn)
    y = y + b1.reshape(1, -1, 1, 1)
    y = jnp.where(y > 0, y, NEG_SLOPE * y)
    y = lax.reduce_window(y, -jnp.inf, lax.max, (1, 1, 2, 2), (1, 1, 2, 2), "VALID")
    y = lax.conv_general_dilated(y, w2, (1, 1), "VALID", dimension_numbers=dn)
    y = y + b2.reshape(1, -1, 1, 1)
    y = jnp.maximum(y, 0.0)
    y = lax.reduce_window(y, -jnp.inf, lax.max, (1, 1, 2, 2), (1, 1, 2, 2), "VALID")
    h = jnp.einsum("nchw,hwcf->nf", y, wfc1) + bfc1
    h = jnp.maximum(h, 0.0)
    return h @ wfc3 + bfc3


if __name__ == "__main__":
    key = jax.random.PRNGKey(0)
    kx, kp = jax.random.split(key)

    # Net(width=28, height=28, channel=3) -> fc1 input = 16*4*4 = 256
    N, Cin, H, W = 8, 3, 28, 28
    x = jax.random.normal(kx, (N, Cin, H, W), jnp.float32)
    params = init_params(kp, Cin=Cin)

    ref = net_reference(x, params)

    # f32 MXU path: tight check against the pure-JAX reference.
    out_f32 = jax.block_until_ready(net_forward(x, params, mxu_dtype=jnp.float32))
    assert out_f32.shape == (N, 1), out_f32.shape
    if not jnp.allclose(out_f32, ref, rtol=2e-3, atol=2e-3):
        raise AssertionError(f"f32 kernel mismatch vs reference:\n{out_f32}\n{ref}")

    # default bf16 MXU-operand path (f32 accumulation): looser tolerance.
    out = jax.block_until_ready(net_forward(x, params))
    assert out.shape == (N, 1), out.shape
    if not jnp.allclose(out, ref, rtol=5e-2, atol=5e-2):
        raise AssertionError(f"bf16 kernel mismatch vs reference:\n{out}\n{ref}")

    print("KERNEL_OK")
</pallas_src>

<mosaic_0001>
module attributes {stable_mosaic.version = 11 : i64} {
  func.func @net_kernel(%arg0: memref<28x8x128xf32, #tpu.memory_space<vmem>>, %arg1: memref<16x128xf32, #tpu.memory_space<vmem>>, %arg2: memref<5x128x256xf32, #tpu.memory_space<vmem>>, %arg3: memref<5x128x128xf32, #tpu.memory_space<vmem>>, %arg4: memref<512x120xf32, #tpu.memory_space<vmem>>, %arg5: memref<8x1xf32, #tpu.memory_space<vmem>>) attributes {dimension_semantics = [], scalar_prefetch = 0 : i64, scratch_operands = 0 : i64, tpu.core_type = #tpu.core_type<tc>} {
    %c0 = arith.constant 0 : index
    %c0_0 = arith.constant 0 : index
    %c0_1 = arith.constant 0 : index
    %0 = vector.load %arg0[%c0, %c0_0, %c0_1] : memref<28x8x128xf32, #tpu.memory_space<vmem>>, vector<28x8x128xf32>
    %c0_2 = arith.constant 0 : index
    %c0_3 = arith.constant 0 : index
    %1 = vector.load %arg1[%c0_2, %c0_3] : memref<16x128xf32, #tpu.memory_space<vmem>>, vector<16x128xf32>
    %2 = vector.extract_strided_slice %1 {offsets = [0, 0], sizes = [3, 128], strides = [1, 1]} : vector<16x128xf32> to vector<3x128xf32>
    %3 = vector.extract_strided_slice %1 {offsets = [3, 0], sizes = [3, 1], strides = [1, 1]} : vector<16x128xf32> to vector<3x1xf32>
    %4 = vector.extract_strided_slice %1 {offsets = [6, 0], sizes = [3, 1], strides = [1, 1]} : vector<16x128xf32> to vector<3x1xf32>
    %5 = vector.extract_strided_slice %1 {offsets = [9, 0], sizes = [1, 128], strides = [1, 1]} : vector<16x128xf32> to vector<1x128xf32>
    %6 = vector.extract_strided_slice %1 {offsets = [10, 0], sizes = [1, 128], strides = [1, 1]} : vector<16x128xf32> to vector<1x128xf32>
    %7 = vector.extract_strided_slice %1 {offsets = [11, 0], sizes = [1, 120], strides = [1, 1]} : vector<16x128xf32> to vector<1x120xf32>
    %8 = vector.extract_strided_slice %1 {offsets = [12, 0], sizes = [1, 120], strides = [1, 1]} : vector<16x128xf32> to vector<1x120xf32>
    %9 = vector.extract_strided_slice %1 {offsets = [13, 0], sizes = [1, 1], strides = [1, 1]} : vector<16x128xf32> to vector<1x1xf32>
    %cst = arith.constant dense<0.000000e+00> : vector<128xf32>
    %10 = vector.multi_reduction <add>, %0, %cst [0, 1] : vector<28x8x128xf32> to vector<128xf32>
    %11 = vector.shape_cast %10 : vector<128xf32> to vector<1x1x128xf32>
    %12 = vector.shape_cast %11 : vector<1x1x128xf32> to vector<1x128xf32>
    %13 = vector.broadcast %12 : vector<1x128xf32> to vector<3x128xf32>
    %14 = arith.mulf %13, %2 : vector<3x128xf32>
    %cst_4 = arith.constant dense<0.000000e+00> : vector<3xf32>
    %15 = vector.multi_reduction <add>, %14, %cst_4 [1] : vector<3x128xf32> to vector<3xf32>
    %16 = vector.shape_cast %15 : vector<3xf32> to vector<3x1xf32>
    %cst_5 = arith.constant 1.59438772E-4 : f32
    %17 = vector.broadcast %cst_5 : f32 to vector<3x1xf32>
    %18 = arith.mulf %16, %17 : vector<3x1xf32>
    %19 = vector.broadcast %18 : vector<3x1xf32> to vector<3x128xf32>
    %20 = arith.mulf %19, %2 : vector<3x128xf32>
    %cst_6 = arith.constant dense<0.000000e+00> : vector<128xf32>
    %21 = vector.multi_reduction <add>, %20, %cst_6 [0] : vector<3x128xf32> to vector<128xf32>
    %22 = vector.shape_cast %21 : vector<128xf32> to vector<1x128xf32>
    %23 = vector.shape_cast %22 : vector<1x128xf32> to vector<1x1x128xf32>
    %24 = vector.broadcast %23 : vector<1x1x128xf32> to vector<28x8x128xf32>
    %25 = arith.subf %0, %24 : vector<28x8x128xf32>
    %26 = arith.mulf %25, %25 : vector<28x8x128xf32>
    %cst_7 = arith.constant dense<0.000000e+00> : vector<128xf32>
    %27 = vector.multi_reduction <add>, %26, %cst_7 [0, 1] : vector<28x8x128xf32> to vector<128xf32>
    %28 = vector.shape_cast %27 : vector<128xf32> to vector<1x1x128xf32>
    %29 = vector.shape_cast %28 : vector<1x1x128xf32> to vector<1x128xf32>
    %30 = vector.broadcast %29 : vector<1x128xf32> to vector<3x128xf32>
    %31 = arith.mulf %30, %2 : vector<3x128xf32>
    %cst_8 = arith.constant dense<0.000000e+00> : vector<3xf32>
    %32 = vector.multi_reduction <add>, %31, %cst_8 [1] : vector<3x128xf32> to vector<3xf32>
    %33 = vector.shape_cast %32 : vector<3xf32> to vector<3x1xf32>
    %cst_9 = arith.constant 1.59438772E-4 : f32
    %34 = vector.broadcast %cst_9 : f32 to vector<3x1xf32>
    %35 = arith.mulf %33, %34 : vector<3x1xf32>
    %cst_10 = arith.constant 9.99999974E-6 : f32
    %36 = vector.broadcast %cst_10 : f32 to vector<3x1xf32>
    %37 = arith.addf %35, %36 : vector<3x1xf32>
    %38 = math.rsqrt %37 : vector<3x1xf32>
    %39 = arith.mulf %3, %38 : vector<3x1xf32>
    %40 = vector.broadcast %39 : vector<3x1xf32> to vector<3x128xf32>
    %41 = arith.mulf %40, %2 : vector<3x128xf32>
    %cst_11 = arith.constant dense<0.000000e+00> : vector<128xf32>
    %42 = vector.multi_reduction <add>, %41, %cst_11 [0] : vector<3x128xf32> to vector<128xf32>
    %43 = vector.shape_cast %42 : vector<128xf32> to vector<1x128xf32>
    %44 = vector.broadcast %4 : vector<3x1xf32> to vector<3x128xf32>
    %45 = arith.mulf %44, %2 : vector<3x128xf32>
    %cst_12 = arith.constant dense<0.000000e+00> : vector<128xf32>
    %46 = vector.multi_reduction <add>, %45, %cst_12 [0] : vector<3x128xf32> to vector<128xf32>
    %47 = vector.shape_cast %46 : vector<128xf32> to vector<1x128xf32>
    %48 = vector.shape_cast %43 : vector<1x128xf32> to vector<1x1x128xf32>
    %49 = vector.broadcast %48 : vector<1x1x128xf32> to vector<28x8x128xf32>
    %50 = arith.mulf %25, %49 : vector<28x8x128xf32>
    %51 = vector.shape_cast %47 : vector<1x128xf32> to vector<1x1x128xf32>
    %52 = vector.broadcast %51 : vector<1x1x128xf32> to vector<28x8x128xf32>
    %53 = arith.addf %50, %52 : vector<28x8x128xf32>
    %54 = vector.extract_strided_slice %53 {offsets = [0, 0, 0], sizes = [24, 8, 128], strides = [1, 1, 1]} : vector<28x8x128xf32> to vector<24x8x128xf32>
    %55 = vector.shape_cast %54 : vector<24x8x128xf32> to vector<192x128xf32>
    %c0_13 = arith.constant 0 : index
    %c0_14 = arith.constant 0 : index
    %c0_15 = arith.constant 0 : index
    %56 = vector.load %arg2[%c0_13, %c0_14, %c0_15] : memref<5x128x256xf32, #tpu.memory_space<vmem>>, vector<1x128x256xf32>
    %57 = vector.shape_cast %56 : vector<1x128x256xf32> to vector<128x256xf32>
    %cst_16 = arith.constant dense<0.000000e+00> : vector<192x256xf32>
    %58 = tpu.matmul %55, %57, %cst_16 {dimension_numbers = #tpu.dot_dimension_numbers<[1], [0], [0], [1], [0, 0, 1, 1], [], []>} : vector<192x128xf32>, vector<128x256xf32>, vector<192x256xf32> -> vector<192x256xf32>
    %59 = vector.extract_strided_slice %53 {offsets = [1, 0, 0], sizes = [24, 8, 128], strides = [1, 1, 1]} : vector<28x8x128xf32> to vector<24x8x128xf32>
    %60 = vector.shape_cast %59 : vector<24x8x128xf32> to vector<192x128xf32>
    %c1 = arith.constant 1 : index
    %c0_17 = arith.constant 0 : index
    %c0_18 = arith.constant 0 : index
    %61 = vector.load %arg2[%c1, %c0_17, %c0_18] : memref<5x128x256xf32, #tpu.memory_space<vmem>>, vector<1x128x256xf32>
    %62 = vector.shape_cast %61 : vector<1x128x256xf32> to vector<128x256xf32>
    %cst_19 = arith.constant dense<0.000000e+00> : vector<192x256xf32>
    %63 = tpu.matmul %60, %62, %cst_19 {dimension_numbers = #tpu.dot_dimension_numbers<[1], [0], [0], [1], [0, 0, 1, 1], [], []>} : vector<192x128xf32>, vector<128x256xf32>, vector<192x256xf32> -> vector<192x256xf32>
    %64 = arith.addf %58, %63 : vector<192x256xf32>
    %65 = vector.extract_strided_slice %53 {offsets = [2, 0, 0], sizes = [24, 8, 128], strides = [1, 1, 1]} : vector<28x8x128xf32> to vector<24x8x128xf32>
    %66 = vector.shape_cast %65 : vector<24x8x128xf32> to vector<192x128xf32>
    %c2 = arith.constant 2 : index
    %c0_20 = arith.constant 0 : index
    %c0_21 = arith.constant 0 : index
    %67 = vector.load %arg2[%c2, %c0_20, %c0_21] : memref<5x128x256xf32, #tpu.memory_space<vmem>>, vector<1x128x256xf32>
    %68 = vector.shape_cast %67 : vector<1x128x256xf32> to vector<128x256xf32>
    %cst_22 = arith.constant dense<0.000000e+00> : vector<192x256xf32>
    %69 = tpu.matmul %66, %68, %cst_22 {dimension_numbers = #tpu.dot_dimension_numbers<[1], [0], [0], [1], [0, 0, 1, 1], [], []>} : vector<192x128xf32>, vector<128x256xf32>, vector<192x256xf32> -> vector<192x256xf32>
    %70 = arith.addf %64, %69 : vector<192x256xf32>
    %71 = vector.extract_strided_slice %53 {offsets = [3, 0, 0], sizes = [24, 8, 128], strides = [1, 1, 1]} : vector<28x8x128xf32> to vector<24x8x128xf32>
    %72 = vector.shape_cast %71 : vector<24x8x128xf32> to vector<192x128xf32>
    %c3 = arith.constant 3 : index
    %c0_23 = arith.constant 0 : index
    %c0_24 = arith.constant 0 : index
    %73 = vector.load %arg2[%c3, %c0_23, %c0_24] : memref<5x128x256xf32, #tpu.memory_space<vmem>>, vector<1x128x256xf32>
    %74 = vector.shape_cast %73 : vector<1x128x256xf32> to vector<128x256xf32>
    %cst_25 = arith.constant dense<0.000000e+00> : vector<192x256xf32>
    %75 = tpu.matmul %72, %74, %cst_25 {dimension_numbers = #tpu.dot_dimension_numbers<[1], [0], [0], [1], [0, 0, 1, 1], [], []>} : vector<192x128xf32>, vector<128x256xf32>, vector<192x256xf32> -> vector<192x256xf32>
    %76 = arith.addf %70, %75 : vector<192x256xf32>
    %77 = vector.extract_strided_slice %53 {offsets = [4, 0, 0], sizes = [24, 8, 128], strides = [1, 1, 1]} : vector<28x8x128xf32> to vector<24x8x128xf32>
    %78 = vector.shape_cast %77 : vector<24x8x128xf32> to vector<192x128xf32>
    %c4 = arith.constant 4 : index
    %c0_26 = arith.constant 0 : index
    %c0_27 = arith.constant 0 : index
    %79 = vector.load %arg2[%c4, %c0_26, %c0_27] : memref<5x128x256xf32, #tpu.memory_space<vmem>>, vector<1x128x256xf32>
    %80 = vector.shape_cast %79 : vector<1x128x256xf32> to vector<128x256xf32>
    %cst_28 = arith.constant dense<0.000000e+00> : vector<192x256xf32>
    %81 = tpu.matmul %78, %80, %cst_28 {dimension_numbers = #tpu.dot_dimension_numbers<[1], [0], [0], [1], [0, 0, 1, 1], [], []>} : vector<192x128xf32>, vector<128x256xf32>, vector<192x256xf32> -> vector<192x256xf32>
    %82 = arith.addf %76, %81 : vector<192x256xf32>
    %83 = vector.extract_strided_slice %82 {offsets = [0, 0], sizes = [192, 128], strides = [1, 1]} : vector<192x256xf32> to vector<192x128xf32>
    %84 = vector.extract_strided_slice %82 {offsets = [0, 128], sizes = [192, 128], strides = [1, 1]} : vector<192x256xf32> to vector<192x128xf32>
    %85 = arith.maximumf %83, %84 : vector<192x128xf32>
    %86 = vector.shape_cast %85 : vector<192x128xf32> to vector<12x2x8x128xf32>
    %cst_29 = arith.constant dense<0xFF800000> : vector<12x8x128xf32>
    %87 = vector.multi_reduction <maximumf>, %86, %cst_29 [1] : vector<12x2x8x128xf32> to vector<12x8x128xf32>
    %88 = vector.shape_cast %5 : vector<1x128xf32> to vector<1x1x128xf32>
    %89 = vector.broadcast %88 : vector<1x1x128xf32> to vector<12x8x128xf32>
    %90 = arith.addf %87, %89 : vector<12x8x128xf32>
    %cst_30 = arith.constant 0.00999999977 : f32
    %91 = vector.broadcast %cst_30 : f32 to vector<12x8x128xf32>
    %92 = arith.mulf %91, %90 : vector<12x8x128xf32>
    %93 = arith.maximumf %90, %92 : vector<12x8x128xf32>
    %94 = vector.extract_strided_slice %93 {offsets = [0, 0, 0], sizes = [8, 8, 128], strides = [1, 1, 1]} : vector<12x8x128xf32> to vector<8x8x128xf32>
    %95 = vector.shape_cast %94 : vector<8x8x128xf32> to vector<64x128xf32>
    %c0_31 = arith.constant 0 : index
    %c0_32 = arith.constant 0 : index
    %c0_33 = arith.constant 0 : index
    %96 = vector.load %arg3[%c0_31, %c0_32, %c0_33] : memref<5x128x128xf32, #tpu.memory_space<vmem>>, vector<1x128x128xf32>
    %97 = vector.shape_cast %96 : vector<1x128x128xf32> to vector<128x128xf32>
    %cst_34 = arith.constant dense<0.000000e+00> : vector<64x128xf32>
    %98 = tpu.matmul %95, %97, %cst_34 {dimension_numbers = #tpu.dot_dimension_numbers<[1], [0], [0], [1], [0, 0, 1, 1], [], []>} : vector<64x128xf32>, vector<128x128xf32>, vector<64x128xf32> -> vector<64x128xf32>
    %99 = vector.extract_strided_slice %93 {offsets = [1, 0, 0], sizes = [8, 8, 128], strides = [1, 1, 1]} : vector<12x8x128xf32> to vector<8x8x128xf32>
    %100 = vector.shape_cast %99 : vector<8x8x128xf32> to vector<64x128xf32>
    %c1_35 = arith.constant 1 : index
    %c0_36 = arith.constant 0 : index
    %c0_37 = arith.constant 0 : index
    %101 = vector.load %arg3[%c1_35, %c0_36, %c0_37] : memref<5x128x128xf32, #tpu.memory_space<vmem>>, vector<1x128x128xf32>
    %102 = vector.shape_cast %101 : vector<1x128x128xf32> to vector<128x128xf32>
    %cst_38 = arith.constant dense<0.000000e+00> : vector<64x128xf32>
    %103 = tpu.matmul %100, %102, %cst_38 {dimension_numbers = #tpu.dot_dimension_numbers<[1], [0], [0], [1], [0, 0, 1, 1], [], []>} : vector<64x128xf32>, vector<128x128xf32>, vector<64x128xf32> -> vector<64x128xf32>
    %104 = arith.addf %98, %103 : vector<64x128xf32>
    %105 = vector.extract_strided_slice %93 {offsets = [2, 0, 0], sizes = [8, 8, 128], strides = [1, 1, 1]} : vector<12x8x128xf32> to vector<8x8x128xf32>
    %106 = vector.shape_cast %105 : vector<8x8x128xf32> to vector<64x128xf32>
    %c2_39 = arith.constant 2 : index
    %c0_40 = arith.constant 0 : index
    %c0_41 = arith.constant 0 : index
    %107 = vector.load %arg3[%c2_39, %c0_40, %c0_41] : memref<5x128x128xf32, #tpu.memory_space<vmem>>, vector<1x128x128xf32>
    %108 = vector.shape_cast %107 : vector<1x128x128xf32> to vector<128x128xf32>
    %cst_42 = arith.constant dense<0.000000e+00> : vector<64x128xf32>
    %109 = tpu.matmul %106, %108, %cst_42 {dimension_numbers = #tpu.dot_dimension_numbers<[1], [0], [0], [1], [0, 0, 1, 1], [], []>} : vector<64x128xf32>, vector<128x128xf32>, vector<64x128xf32> -> vector<64x128xf32>
    %110 = arith.addf %104, %109 : vector<64x128xf32>
    %111 = vector.extract_strided_slice %93 {offsets = [3, 0, 0], sizes = [8, 8, 128], strides = [1, 1, 1]} : vector<12x8x128xf32> to vector<8x8x128xf32>
    %112 = vector.shape_cast %111 : vector<8x8x128xf32> to vector<64x128xf32>
    %c3_43 = arith.constant 3 : index
    %c0_44 = arith.constant 0 : index
    %c0_45 = arith.constant 0 : index
    %113 = vector.load %arg3[%c3_43, %c0_44, %c0_45] : memref<5x128x128xf32, #tpu.memory_space<vmem>>, vector<1x128x128xf32>
    %114 = vector.shape_cast %113 : vector<1x128x128xf32> to vector<128x128xf32>
    %cst_46 = arith.constant dense<0.000000e+00> : vector<64x128xf32>
    %115 = tpu.matmul %112, %114, %cst_46 {dimension_numbers = #tpu.dot_dimension_numbers<[1], [0], [0], [1], [0, 0, 1, 1], [], []>} : vector<64x128xf32>, vector<128x128xf32>, vector<64x128xf32> -> vector<64x128xf32>
    %116 = arith.addf %110, %115 : vector<64x128xf32>
    %117 = vector.extract_strided_slice %93 {offsets = [4, 0, 0], sizes = [8, 8, 128], strides = [1, 1, 1]} : vector<12x8x128xf32> to vector<8x8x128xf32>
    %118 = vector.shape_cast %117 : vector<8x8x128xf32> to vector<64x128xf32>
    %c4_47 = arith.constant 4 : index
    %c0_48 = arith.constant 0 : index
    %c0_49 = arith.constant 0 : index
    %119 = vector.load %arg3[%c4_47, %c0_48, %c0_49] : memref<5x128x128xf32, #tpu.memory_space<vmem>>, vector<1x128x128xf32>
    %120 = vector.shape_cast %119 : vector<1x128x128xf32> to vector<128x128xf32>
    %cst_50 = arith.constant dense<0.000000e+00> : vector<64x128xf32>
    %121 = tpu.matmul %118, %120, %cst_50 {dimension_numbers = #tpu.dot_dimension_numbers<[1], [0], [0], [1], [0, 0, 1, 1], [], []>} : vector<64x128xf32>, vector<128x128xf32>, vector<64x128xf32> -> vector<64x128xf32>
    %122 = arith.addf %116, %121 : vector<64x128xf32>
    %c64_i32 = arith.constant 64 : i32
    %123 = tpu.dynamic_rotate %122 by %c64_i32 dim 1 : vector<64x128xf32>, i32 -> vector<64x128xf32>
    %124 = arith.maximumf %122, %123 : vector<64x128xf32>
    %125 = vector.shape_cast %124 : vector<64x128xf32> to vector<4x2x8x128xf32>
    %cst_51 = arith.constant dense<0xFF800000> : vector<4x8x128xf32>
    %126 = vector.multi_reduction <maximumf>, %125, %cst_51 [1] : vector<4x2x8x128xf32> to vector<4x8x128xf32>
    %127 = vector.shape_cast %6 : vector<1x128xf32> to vector<1x1x128xf32>
    %128 = vector.broadcast %127 : vector<1x1x128xf32> to vector<4x8x128xf32>
    %129 = arith.addf %126, %128 : vector<4x8x128xf32>
    %cst_52 = arith.constant 0.000000e+00 : f32
    %130 = vector.broadcast %cst_52 : f32 to vector<4x8x128xf32>
    %131 = arith.maximumf %129, %130 : vector<4x8x128xf32>
    %132 = vector.extract_strided_slice %131 {offsets = [0, 0, 0], sizes = [1, 8, 128], strides = [1, 1, 1]} : vector<4x8x128xf32> to vector<1x8x128xf32>
    %133 = vector.shape_cast %132 : vector<1x8x128xf32> to vector<8x128xf32>
    %134 = vector.extract_strided_slice %131 {offsets = [1, 0, 0], sizes = [1, 8, 128], strides = [1, 1, 1]} : vector<4x8x128xf32> to vector<1x8x128xf32>
    %135 = vector.shape_cast %134 : vector<1x8x128xf32> to vector<8x128xf32>
    %136 = vector.extract_strided_slice %131 {offsets = [2, 0, 0], sizes = [1, 8, 128], strides = [1, 1, 1]} : vector<4x8x128xf32> to vector<1x8x128xf32>
    %137 = vector.shape_cast %136 : vector<1x8x128xf32> to vector<8x128xf32>
    %138 = vector.extract_strided_slice %131 {offsets = [3, 0, 0], sizes = [1, 8, 128], strides = [1, 1, 1]} : vector<4x8x128xf32> to vector<1x8x128xf32>
    %139 = vector.shape_cast %138 : vector<1x8x128xf32> to vector<8x128xf32>
    %140 = tpu.concatenate %133, %135, %137, %139 in 1 : vector<8x128xf32>, vector<8x128xf32>, vector<8x128xf32>, vector<8x128xf32> -> vector<8x512xf32>
    %c0_53 = arith.constant 0 : index
    %c0_54 = arith.constant 0 : index
    %141 = vector.load %arg4[%c0_53, %c0_54] : memref<512x120xf32, #tpu.memory_space<vmem>>, vector<512x120xf32>
    %cst_55 = arith.constant dense<0.000000e+00> : vector<8x120xf32>
    %142 = tpu.matmul %140, %141, %cst_55 {dimension_numbers = #tpu.dot_dimension_numbers<[1], [0], [0], [1], [0, 0, 1, 1], [], []>} : vector<8x512xf32>, vector<512x120xf32>, vector<8x120xf32> -> vector<8x120xf32>
    %143 = vector.broadcast %7 : vector<1x120xf32> to vector<8x120xf32>
    %144 = arith.addf %142, %143 : vector<8x120xf32>
    %cst_56 = arith.constant 0.000000e+00 : f32
    %145 = vector.broadcast %cst_56 : f32 to vector<8x120xf32>
    %146 = arith.maximumf %144, %145 : vector<8x120xf32>
    %147 = vector.broadcast %8 : vector<1x120xf32> to vector<8x120xf32>
    %148 = arith.mulf %146, %147 : vector<8x120xf32>
    %cst_57 = arith.constant dense<0.000000e+00> : vector<8xf32>
    %149 = vector.multi_reduction <add>, %148, %cst_57 [1] : vector<8x120xf32> to vector<8xf32>
    %150 = vector.shape_cast %149 : vector<8xf32> to vector<8x1xf32>
    %151 = vector.broadcast %9 : vector<1x1xf32> to vector<8x1xf32>
    %152 = arith.addf %150, %151 : vector<8x1xf32>
    %c0_58 = arith.constant 0 : index
    %c0_59 = arith.constant 0 : index
    %153 = vector.load %arg5[%c0_58, %c0_59] : memref<8x1xf32, #tpu.memory_space<vmem>>, vector<8x1xf32>
    tpu.vector_store %arg5[%c0_58, %c0_59], %152 {strides = array<i32>} : memref<8x1xf32, #tpu.memory_space<vmem>>, vector<8x1xf32>,
    return
  }
}

</mosaic_0001>

<bundles_post_ra>
// kernel: tpu_custom_call.1
= control target key start
LH: loop header
LB: loop body
LE: loop exit
PB: predicated region body
PF: predicated region fallthrough
CT: control target
= control target key end

     0   :  { %10 = vsyncpa [#allocation3], 0  ;;  %s3153_s18 = smov [#allocation2]   ;;  %s4972_s0 = inlined_call_operand.vmem [shape: f32[28,8,128], index: 0, kind: input, shape index: {}]   ;;  %s4973_s1 = inlined_call_operand.vmem [shape: f32[16,128], index: 1, kind: input, shape index: {}]   ;;  %s4974_s2 = inlined_call_operand.hbm [shape: f32[5,128,256], index: 2, kind: input, shape index: {}]   ;;  %s4975_s3 = inlined_call_operand.vmem [shape: f32[5,128,128], index: 3, kind: input, shape index: {}]   ;;  %s4976_s4 = inlined_call_operand.vmem [shape: f32[512,120], index: 4, kind: input, shape index: {}]   ;;  %s4977_s5 = inlined_call_operand.vmem [shape: f32[8,1], index: 5, kind: output, shape index: {}]  }
   0x1   :  { %s20_s19 = sshll.u32 %s3153_s18, 4  ;;  %s21_s19 = int_to_ptr.vmem [resolvable:$true] %s20_s19 }
   0x2   :  { %s3139_s20 = scalar_lea.vmem %s21_s19, 20480  ;;  %p3144_p1 = scmp.lt.s32.totalorder %s21_s19, %s21_s19 }
   0x3   :  { %p3140_p0 = scmp.ne.s32.totalorder %s21_s19, %s3139_s20  ;;  %p3145_p2 = scmp.lt.s32.totalorder %s3139_s20, %s3139_s20 }
   0x5   :  { %p3146_p3 = por %p3145_p2, %p3144_p1 }
   0x7   :  { %p3147_p4 = pnand %p3146_p3, %p3140_p0 }
   0x9   :  { %3150 = shalt.err (!%p3147_p4)
}
   0xa   :  { %s3154_s21 = smov 256   ;;  %s3155_s22 = smov 16  }
   0xb   :  { %26 = dma.hbm_to_vmem [thread:$0]  %s4974_s2, 20480, %s21_s19, [#allocation3], %s3154_s21, %s3154_s21, %s3155_s22  }
   0xc   :  { %3151 = dma.done.wait [#allocation3], 20480  }
   0xd   :  { %3152 = vsyncadd [#allocation3], 4294946816  ;;  %v3195_v0 = vld [vmem:[%s4972_s0] sm:$0xff]  ;;  %v3200_v1 = vld [vmem:[%s4972_s0 + $0x8] sm:$0xff]  ;;  %vm98_vm0 = vcmask 1042432   ;;  %vm245_vm1 = vcmask 1041408  }
   0xe   :  { %v3205_v2 = vld [vmem:[%s4972_s0 + $0x10] sm:$0xff]  ;;  %v64_v3 = vadd.f32 %v3200_v1, %v3195_v0  ;;  %v3212_v4 = vld [vmem:[%s4972_s0 + $0x18] sm:$0xff]  ;;  %v3218_v6 = vld [vmem:[%s4972_s0 + $0x20] sm:$0xff]  ;;  %s3158_s25 = smov 64   ;;  %vm2629_vm2 = vcmask 982016   ;;  %vm2638_vm3 = vcmask 7168  }
   0xf   :  { %v3224_v8 = vld [vmem:[%s4972_s0 + $0x28] sm:$0xff]  ;;  %v3230_v10 = vld [vmem:[%s4972_s0 + $0x30] sm:$0xff]  ;;  %v3236_v12 = vld [vmem:[%s4972_s0 + $0x38] sm:$0xff] }
  0x10   :  { %v65_v5 = vadd.f32 %v64_v3, %v3205_v2  ;;  %v3242_v14 = vld [vmem:[%s4972_s0 + $0x40] sm:$0xff]  ;;  %v3248_v16 = vld [vmem:[%s4972_s0 + $0x48] sm:$0xff]  ;;  %v3254_v18 = vld [vmem:[%s4972_s0 + $0x50] sm:$0xff] }
  0x11   :  { %v3260_v20 = vld [vmem:[%s4972_s0 + $0x58] sm:$0xff]  ;;  %v3266_v22 = vld [vmem:[%s4972_s0 + $0x60] sm:$0xff]  ;;  %v3272_v24 = vld [vmem:[%s4972_s0 + $0x68] sm:$0xff] }
  0x12   :  { %v66_v7 = vadd.f32 %v65_v5, %v3212_v4  ;;  %v3278_v26 = vld [vmem:[%s4972_s0 + $0x70] sm:$0xff]  ;;  %v3284_v28 = vld [vmem:[%s4972_s0 + $0x78] sm:$0xff]  ;;  %v3290_v30 = vld [vmem:[%s4972_s0 + $0x80] sm:$0xff] }
  0x13   :  { %v3296_v32 = vld [vmem:[%s4972_s0 + $0x88] sm:$0xff]  ;;  %v3302_v34 = vld [vmem:[%s4972_s0 + $0x90] sm:$0xff]  ;;  %v3308_v36 = vld [vmem:[%s4972_s0 + $0x98] sm:$0xff] }
  0x14   :  { %v67_v9 = vadd.f32 %v66_v7, %v3218_v6  ;;  %v3314_v38 = vld [vmem:[%s4972_s0 + $0xa0] sm:$0xff]  ;;  %v3320_v40 = vld [vmem:[%s4972_s0 + $0xa8] sm:$0xff]  ;;  %v3326_v42 = vld [vmem:[%s4972_s0 + $0xb0] sm:$0xff] }
  0x15   :  { %v3332_v44 = vld [vmem:[%s4972_s0 + $0xb8] sm:$0xff]  ;;  %v3338_v46 = vld [vmem:[%s4972_s0 + $0xc0] sm:$0xff]  ;;  %v3344_v48 = vld [vmem:[%s4972_s0 + $0xc8] sm:$0xff] }
  0x16   :  { %v68_v11 = vadd.f32 %v67_v9, %v3224_v8  ;;  %v3350_v50 = vld [vmem:[%s4972_s0 + $0xd0] sm:$0xff]  ;;  %v3356_v52 = vld [vmem:[%s4972_s0 + $0xd8] sm:$0xff]  ;;  %v3363_v60 = vld [vmem:[%s4973_s1] sm:$0xff] }
  0x18   :  { %v69_v13 = vadd.f32 %v68_v11, %v3230_v10 }
  0x1a   :  { %v70_v15 = vadd.f32 %v69_v13, %v3236_v12 }
  0x1c   :  { %v71_v17 = vadd.f32 %v70_v15, %v3242_v14 }
  0x1e   :  { %v72_v19 = vadd.f32 %v71_v17, %v3248_v16 }
  0x20   :  { %v73_v21 = vadd.f32 %v72_v19, %v3254_v18 }
  0x22   :  { %v74_v23 = vadd.f32 %v73_v21, %v3260_v20 }
  0x24   :  { %v75_v25 = vadd.f32 %v74_v23, %v3266_v22 }
  0x26   :  { %v76_v27 = vadd.f32 %v75_v25, %v3272_v24 }
  0x28   :  { %v77_v29 = vadd.f32 %v76_v27, %v3278_v26 }
  0x2a   :  { %v78_v31 = vadd.f32 %v77_v29, %v3284_v28 }
  0x2c   :  { %v79_v33 = vadd.f32 %v78_v31, %v3290_v30 }
  0x2e   :  { %v80_v35 = vadd.f32 %v79_v33, %v3296_v32 }
  0x30   :  { %v81_v37 = vadd.f32 %v80_v35, %v3302_v34 }
  0x32   :  { %v82_v39 = vadd.f32 %v81_v37, %v3308_v36 }
  0x34   :  { %v83_v41 = vadd.f32 %v82_v39, %v3314_v38 }
  0x36   :  { %v84_v43 = vadd.f32 %v83_v41, %v3320_v40 }
  0x38   :  { %v85_v45 = vadd.f32 %v84_v43, %v3326_v42 }
  0x3a   :  { %v86_v47 = vadd.f32 %v85_v45, %v3332_v44 }
  0x3c   :  { %v87_v49 = vadd.f32 %v86_v47, %v3338_v46 }
  0x3e   :  { %v88_v51 = vadd.f32 %v87_v49, %v3344_v48 }
  0x40   :  { %v89_v53 = vadd.f32 %v88_v51, %v3350_v50 }
  0x42   :  { %v90_v54 = vadd.f32 %v89_v53, %v3356_v52 }
  0x44   :  { %v91_v55 = vrot.slane %v90_v54, 4 }
  0x46   :  { %v92_v56 = vadd.f32 %v91_v55, %v90_v54 }
  0x48   :  { %v93_v57 = vrot.slane %v92_v56, 2 }
  0x4a   :  { %v94_v58 = vadd.f32 %v93_v57, %v92_v56 }
  0x4c   :  { %v95_v59 = vrot.slane %v94_v58, 1 }
  0x4e   :  { %v96_v61 = vadd.f32 %v95_v59, %v94_v58 }
  0x50   :  { %v97_v62 = vmul.f32 %v96_v61, %v3363_v60 }
  0x52   :  { %v99_v63 = vsel %vm98_vm0, %v97_v62, 0.0 }
  0x53   :  { %100 = vadd.xlane.f32.xlu0 %v99_v63 }
  0xdc   :  { %v101_v3 = vpop.xlane.xlu0 %100 }
  0xdd   :  { %v102_v5 = vmul.f32 0.00015943877, %v101_v3 }
  0xdf   :  { %v103_v7 = vmul.f32 %v102_v5, %v3363_v60 }
  0xe1   :  { %v104_v9 = vsel %vm98_vm0, %v103_v7, 0.0 }
  0xe2   :  { %v105_v11 = vrot.slane %v104_v9, 4 }
  0xe4   :  { %v106_v13 = vadd.f32 %v105_v11, %v104_v9 }
  0xe6   :  { %v107_v15 = vrot.slane %v106_v13, 2 }
  0xe8   :  { %v108_v17 = vadd.f32 %v107_v15, %v106_v13 }
  0xea   :  { %v109_v19 = vrot.slane %v108_v17, 1 }
  0xec   :  { %v3369_v21 = vadd.f32 %v109_v19, %v108_v17 }
  0xee   :  { %v3373_v23 = vsub.f32 %v3195_v0, %v3369_v21  ;;  %v3377_v25 = vsub.f32 %v3200_v1, %v3369_v21  ;;  %v3381_v27 = vsub.f32 %v3205_v2, %v3369_v21  ;;  %v3389_v33 = vsub.f32 %v3212_v4, %v3369_v21 }
  0xef   :  { %v3393_v0 = vsub.f32 %v3218_v6, %v3369_v21  ;;  %v3399_v2 = vsub.f32 %v3224_v8, %v3369_v21  ;;  %v3405_v4 = vsub.f32 %v3230_v10, %v3369_v21  ;;  %v3411_v43 = vsub.f32 %v3236_v12, %v3369_v21 }
  0xf0   :  { %v139_v29 = vmul.f32 %v3373_v23, %v3373_v23  ;;  %v140_v31 = vmul.f32 %v3377_v25, %v3377_v25  ;;  %v141_v1 = vmul.f32 %v3381_v27, %v3381_v27  ;;  %v142_v37 = vmul.f32 %v3389_v33, %v3389_v33 }
  0xf1   :  { %v143_v6 = vmul.f32 %v3393_v0, %v3393_v0  ;;  %v144_v8 = vmul.f32 %v3399_v2, %v3399_v2  ;;  %v3417_v47 = vsub.f32 %v3242_v14, %v3369_v21  ;;  %v145_v10 = vmul.f32 %v3405_v4, %v3405_v4 }
  0xf2   :  { %v167_v35 = vadd.f32 %v140_v31, %v139_v29  ;;  %v3423_v51 = vsub.f32 %v3248_v16, %v3369_v21  ;;  %v146_v12 = vmul.f32 %v3411_v43, %v3411_v43  ;;  %v3429_v54 = vsub.f32 %v3254_v18, %v3369_v21 }
  0xf3   :  { %v147_v14 = vmul.f32 %v3417_v47, %v3417_v47  ;;  %v3435_v56 = vsub.f32 %v3260_v20, %v3369_v21  ;;  %v3441_v58 = vsub.f32 %v3266_v22, %v3369_v21  ;;  %v3447_v61 = vsub.f32 %v3272_v24, %v3369_v21 }
  0xf4   :  { %v168_v39 = vadd.f32 %v167_v35, %v141_v1  ;;  %v148_v16 = vmul.f32 %v3423_v51, %v3423_v51  ;;  %v149_v18 = vmul.f32 %v3429_v54, %v3429_v54  ;;  %v3453_v63 = vsub.f32 %v3278_v26, %v3369_v21 }
  0xf5   :  { %v150_v20 = vmul.f32 %v3435_v56, %v3435_v56  ;;  %v151_v22 = vmul.f32 %v3441_v58, %v3441_v58  ;;  %v3459_v5 = vsub.f32 %v3284_v28, %v3369_v21  ;;  %v152_v24 = vmul.f32 %v3447_v61, %v3447_v61 }
  0xf6   :  { %v169_v41 = vadd.f32 %v168_v39, %v142_v37  ;;  %v3465_v9 = vsub.f32 %v3290_v30, %v3369_v21  ;;  %v153_v26 = vmul.f32 %v3453_v63, %v3453_v63  ;;  %v3471_v13 = vsub.f32 %v3296_v32, %v3369_v21 }
  0xf7   :  { %v154_v28 = vmul.f32 %v3459_v5, %v3459_v5  ;;  %v3477_v17 = vsub.f32 %v3302_v34, %v3369_v21  ;;  %v3483_v29 = vsub.f32 %v3308_v36, %v3369_v21  ;;  %v3489_v1 = vsub.f32 %v3314_v38, %v3369_v21 }
  0xf8   :  { %v170_v45 = vadd.f32 %v169_v41, %v143_v6  ;;  %v155_v30 = vmul.f32 %v3465_v9, %v3465_v9  ;;  %v156_v32 = vmul.f32 %v3471_v13, %v3471_v13  ;;  %v3495_v37 = vsub.f32 %v3320_v40, %v3369_v21 }
  0xf9   :  { %v157_v34 = vmul.f32 %v3477_v17, %v3477_v17  ;;  %v158_v36 = vmul.f32 %v3483_v29, %v3483_v29  ;;  %v3501_v6 = vsub.f32 %v3326_v42, %v3369_v21  ;;  %v159_v38 = vmul.f32 %v3489_v1, %v3489_v1 }
  0xfa   :  { %v171_v49 = vadd.f32 %v170_v45, %v144_v8  ;;  %v3507_v8 = vsub.f32 %v3332_v44, %v3369_v21  ;;  %v160_v40 = vmul.f32 %v3495_v37, %v3495_v37 }
  0xfb   :  { %v161_v42 = vmul.f32 %v3501_v6, %v3501_v6 }
  0xfc   :  { %v172_v53 = vadd.f32 %v171_v49, %v145_v10  ;;  %v3513_v10 = vsub.f32 %v3338_v46, %v3369_v21  ;;  %v162_v44 = vmul.f32 %v3507_v8, %v3507_v8 }
  0xfe   :  { %v173_v55 = vadd.f32 %v172_v53, %v146_v12  ;;  %v3519_v12 = vsub.f32 %v3344_v48, %v3369_v21  ;;  %v163_v46 = vmul.f32 %v3513_v10, %v3513_v10 }
 0x100   :  { %v174_v57 = vadd.f32 %v173_v55, %v147_v14  ;;  %v3525_v14 = vsub.f32 %v3350_v50, %v3369_v21  ;;  %v164_v48 = vmul.f32 %v3519_v12, %v3519_v12 }
 0x102   :  { %v175_v59 = vadd.f32 %v174_v57, %v148_v16  ;;  %v3531_v16 = vsub.f32 %v3356_v52, %v3369_v21 }
 0x104   :  { %v176_v62 = vadd.f32 %v175_v59, %v149_v18  ;;  %v165_v18 = vmul.f32 %v3525_v14, %v3525_v14  ;;  %v166_v50 = vmul.f32 %v3531_v16, %v3531_v16 }
 0x106   :  { %v177_v3 = vadd.f32 %v176_v62, %v150_v20 }
 0x108   :  { %v178_v7 = vadd.f32 %v177_v3, %v151_v22 }
 0x10a   :  { %v179_v11 = vadd.f32 %v178_v7, %v152_v24 }
 0x10c   :  { %v180_v15 = vadd.f32 %v179_v11, %v153_v26 }
 0x10e   :  { %v181_v19 = vadd.f32 %v180_v15, %v154_v28  ;;  %v3156_v28 = vmov 0   ;;  %v63_v15 = vld [vmem:[%s4973_s1 + $0x8] sm:$0xff] }
 0x10f   :  { %3125 = vset.pattern.permute.xlu1 %v3156_v28  ;;  %3126 = vset.pattern.permute.xlu0 %v3156_v28  ;;  %v331_v28 = vld [vmem:[#allocation2 + $0x90] sm:$0xff] }
 0x110   :  { %v182_v31 = vadd.f32 %v181_v19, %v155_v30  ;;  %v377_v30 = vld [vmem:[#allocation2 + $0x1f8] sm:$0xff]  ;;  %v376_v19 = vld [vmem:[#allocation2 + $0x1f0] sm:$0xff] }
 0x111   :  { %378 = vmatprep.subr.mxu0 %v377_v30  ;;  %v330_v30 = vld [vmem:[#allocation2 + $0x88] sm:$0xff] }
 0x112   :  { %v183_v35 = vadd.f32 %v182_v31, %v156_v32  ;;  %v344_v32 = vld [vmem:[#allocation2 + $0xf8] sm:$0xff]  ;;  %v375_v31 = vld [vmem:[#allocation2 + $0x1e8] sm:$0xff]  ;;  %379 = vmatpush1.msra.mxu0 %v376_v19  ;;  %v362_v19 = vld [vmem:[#allocation2 + $0x180] sm:$0xff] }
 0x113   :  { %587 = vmatprep.subr.mxu1 %v344_v32  ;;  %380 = vmatprep.subr.mxu0 %v375_v31  ;;  %v329_v32 = vld [vmem:[#allocation2 + $0x80] sm:$0xff]  ;;  %v361_v31 = vld [vmem:[#allocation2 + $0x178] sm:$0xff] }
 0x114   :  { %v184_v39 = vadd.f32 %v183_v35, %v157_v34  ;;  %v343_v34 = vld [vmem:[#allocation2 + $0xf0] sm:$0xff]  ;;  %v374_v35 = vld [vmem:[#allocation2 + $0x1e0] sm:$0xff] }
 0x115   :  { %588 = vmatpush1.msra.mxu1 %v343_v34  ;;  %381 = vmatpush1.msra.mxu0 %v374_v35  ;;  %v328_v34 = vld [vmem:[#allocation2 + $0x78] sm:$0xff]  ;;  %v360_v35 = vld [vmem:[#allocation2 + $0x170] sm:$0xff] }
 0x116   :  { %v185_v41 = vadd.f32 %v184_v39, %v158_v36  ;;  %v342_v36 = vld [vmem:[#allocation2 + $0xe8] sm:$0xff]  ;;  %v373_v39 = vld [vmem:[#allocation2 + $0x1d8] sm:$0xff] }
 0x117   :  { %589 = vmatprep.subr.mxu1 %v342_v36  ;;  %382 = vmatprep.subr.mxu0 %v373_v39  ;;  %v327_v36 = vld [vmem:[#allocation2 + $0x70] sm:$0xff]  ;;  %v359_v39 = vld [vmem:[#allocation2 + $0x168] sm:$0xff] }
 0x118   :  { %v186_v45 = vadd.f32 %v185_v41, %v159_v38  ;;  %v341_v38 = vld [vmem:[#allocation2 + $0xe0] sm:$0xff]  ;;  %v372_v41 = vld [vmem:[#allocation2 + $0x1d0] sm:$0xff] }
 0x119   :  { %590 = vmatpush1.msra.mxu1 %v341_v38  ;;  %383 = vmatpush1.msra.mxu0 %v372_v41  ;;  %v326_v38 = vld [vmem:[#allocation2 + $0x68] sm:$0xff]  ;;  %v358_v41 = vld [vmem:[#allocation2 + $0x160] sm:$0xff] }
 0x11a   :  { %v187_v49 = vadd.f32 %v186_v45, %v160_v40  ;;  %v340_v40 = vld [vmem:[#allocation2 + $0xd8] sm:$0xff]  ;;  %v371_v45 = vld [vmem:[#allocation2 + $0x1c8] sm:$0xff] }
 0x11b   :  { %591 = vmatprep.subr.mxu1 %v340_v40  ;;  %384 = vmatprep.subr.mxu0 %v371_v45  ;;  %v325_v40 = vld [vmem:[#allocation2 + $0x60] sm:$0xff]  ;;  %v357_v45 = vld [vmem:[#allocation2 + $0x158] sm:$0xff] }
 0x11c   :  { %v188_v53 = vadd.f32 %v187_v49, %v161_v42  ;;  %v339_v42 = vld [vmem:[#allocation2 + $0xd0] sm:$0xff]  ;;  %v338_v49 = vld [vmem:[#allocation2 + $0xc8] sm:$0xff] }
 0x11d   :  { %592 = vmatpush1.msra.mxu1 %v339_v42  ;;  %v324_v42 = vld [vmem:[#allocation2 + $0x58] sm:$0xff] }
 0x11e   :  { %v189_v55 = vadd.f32 %v188_v53, %v162_v44  ;;  %v370_v44 = vld [vmem:[#allocation2 + $0x1c0] sm:$0xff]  ;;  %593 = vmatprep.subr.mxu1 %v338_v49  ;;  %v356_v49 = vld [vmem:[#allocation2 + $0x150] sm:$0xff] }
 0x11f   :  { %v337_v53 = vld [vmem:[#allocation2 + $0xc0] sm:$0xff]  ;;  %385 = vmatpush1.msra.mxu0 %v370_v44  ;;  %v323_v44 = vld [vmem:[#allocation2 + $0x50] sm:$0xff] }
 0x120   :  { %v190_v57 = vadd.f32 %v189_v55, %v163_v46  ;;  %v369_v46 = vld [vmem:[#allocation2 + $0x1b8] sm:$0xff]  ;;  %594 = vmatpush1.msra.mxu1 %v337_v53  ;;  %v355_v53 = vld [vmem:[#allocation2 + $0x148] sm:$0xff] }
 0x121   :  { %386 = vmatprep.subr.mxu0 %v369_v46  ;;  %v322_v46 = vld [vmem:[#allocation2 + $0x48] sm:$0xff] }
 0x122   :  { %v191_v59 = vadd.f32 %v190_v57, %v164_v48 }
 0x124   :  { %v192_v20 = vadd.f32 %v191_v59, %v165_v18 }
 0x126   :  { %v193_v62 = vadd.f32 %v192_v20, %v166_v50  ;;  %v336_v50 = vld [vmem:[#allocation2 + $0xb8] sm:$0xff]  ;;  %v368_v20 = vld [vmem:[#allocation2 + $0x1b0] sm:$0xff] }
 0x127   :  { %595 = vmatprep.subr.mxu1 %v336_v50  ;;  %387 = vmatpush1.msra.mxu0 %v368_v20  ;;  %v319_v50 = vld [vmem:[#allocation2 + $0x30] sm:$0xff]  ;;  %v351_v20 = vld [vmem:[#allocation2 + $0x128] sm:$0xff] }
 0x128   :  { %v194_v22 = vrot.slane %v193_v62, 4 }
 0x12a   :  { %v195_v3 = vadd.f32 %v194_v22, %v193_v62  ;;  %v335_v62 = vld [vmem:[#allocation2 + $0xb0] sm:$0xff] }
 0x12b   :  { %596 = vmatpush1.msra.mxu1 %v335_v62  ;;  %v318_v62 = vld [vmem:[#allocation2 + $0x28] sm:$0xff] }
 0x12c   :  { %v196_v24 = vrot.slane %v195_v3, 2 }
 0x12e   :  { %v197_v7 = vadd.f32 %v196_v24, %v195_v3  ;;  %v367_v3 = vld [vmem:[#allocation2 + $0x1a8] sm:$0xff] }
 0x12f   :  { %v334_v24 = vld [vmem:[#allocation2 + $0xa8] sm:$0xff]  ;;  %388 = vmatprep.subr.mxu0 %v367_v3  ;;  %v317_v3 = vld [vmem:[#allocation2 + $0x20] sm:$0xff] }
 0x130   :  { %v198_v26 = vrot.slane %v197_v7, 1  ;;  %597 = vmatprep.subr.mxu1 %v334_v24  ;;  %v349_v24 = vld [vmem:[#allocation2 + $0x118] sm:$0xff] }
 0x132   :  { %v199_v52 = vadd.f32 %v198_v26, %v197_v7  ;;  %v366_v7 = vld [vmem:[#allocation2 + $0x1a0] sm:$0xff] }
 0x133   :  { %v333_v26 = vld [vmem:[#allocation2 + $0xa0] sm:$0xff]  ;;  %389 = vmatpush1.msra.mxu0 %v366_v7  ;;  %v348_v7 = vld [vmem:[#allocation2 + $0x110] sm:$0xff] }
 0x134   :  { %v200_v21 = vmul.f32 %v199_v52, %v3363_v60  ;;  %v365_v52 = vld [vmem:[#allocation2 + $0x198] sm:$0xff]  ;;  %598 = vmatpush1.msra.mxu1 %v333_v26 }
 0x135   :  { %390 = vmatprep.subr.mxu0 %v365_v52  ;;  %v316_v26 = vld [vmem:[#allocation2 + $0x18] sm:$0xff]  ;;  %v347_v52 = vld [vmem:[#allocation2 + $0x108] sm:$0xff] }
 0x136   :  { %v201_v11 = vsel %vm98_vm0, %v200_v21, 0.0  ;;  %v332_v21 = vld [vmem:[#allocation2 + $0x98] sm:$0xff] }
 0x137   :  { %202 = vadd.xlane.f32.xlu0 %v201_v11  ;;  %v364_v11 = vld [vmem:[#allocation2 + $0x190] sm:$0xff]  ;;  %599 = vmatprep.subr.mxu1 %v332_v21 }
 0x138   :  { %391 = vmatpush1.msra.mxu0 %v364_v11  ;;  %600 = vmatpush1.msra.mxu1 %v331_v28  ;;  %v315_v21 = vld [vmem:[#allocation2 + $0x10] sm:$0xff]  ;;  %v346_v11 = vld [vmem:[#allocation2 + $0x100] sm:$0xff]  ;;  %v314_v28 = vld [vmem:[#allocation2 + $0x8] sm:$0xff] }
 0x139   :  { %601 = vmatprep.subr.mxu1 %v330_v30  ;;  %v828_v30 = vld [vmem:[#allocation2 + $0x2f8] sm:$0xff] }
 0x13a   :  { %602 = vmatpush1.msra.mxu1 %v329_v32  ;;  %v1118_v32 = vld [vmem:[#allocation2 + $0x3f8] sm:$0xff] }
 0x13b   :  { %603 = vmatprep.subr.mxu1 %v328_v34  ;;  %v239_v34 = vrot.slane %v3363_v60, 2 }
 0x13c   :  { %604 = vmatpush1.msra.mxu1 %v327_v36 }
 0x13d   :  { %605 = vmatprep.subr.mxu1 %v326_v38 }
 0x13e   :  { %606 = vmatpush1.msra.mxu1 %v325_v40 }
 0x13f   :  { %607 = vmatprep.subr.mxu1 %v324_v42 }
 0x140   :  { %608 = vmatpush1.msra.mxu1 %v323_v44 }
 0x141   :  { %609 = vmatprep.subr.mxu1 %v322_v46 }
 0x14d   :  { %236 = vperm.xlu0 %3126, %v63_v15   ;;  %v363_v15 = vld [vmem:[#allocation2 + $0x188] sm:$0xff] }
 0x14e   :  { %392 = vmatprep.subr.mxu0 %v363_v15  ;;  %v313_v15 = vld [vmem:[#allocation2] sm:$0xff] }
 0x14f   :  { %393 = vmatpush1.msra.mxu0 %v362_v19  ;;  %v4978_v19 = vmov 0.0  }
 0x150   :  { %394 = vmatprep.subr.mxu0 %v361_v31  ;;  %442 = vmatprep.mubr.f32.mxu0 %v4978_v19  ;;  %v217_v31 = vrot.slane %v3363_v60, 5 }
 0x151   :  { %395 = vmatpush1.msra.mxu0 %v360_v35  ;;  %651 = vmatprep.mubr.f32.mxu1 %v4978_v19 }
 0x152   :  { %396 = vmatprep.subr.mxu0 %v359_v39 }
 0x153   :  { %397 = vmatpush1.msra.mxu0 %v358_v41 }
 0x154   :  { %398 = vmatprep.subr.mxu0 %v357_v45 }
 0x155   :  { %399 = vmatpush1.msra.mxu0 %v356_v49 }
 0x156   :  { %400 = vmatprep.subr.mxu0 %v355_v53 }
 0x1c0   :  { %v203_v55 = vpop.xlane.xlu0 %202 }
 0x1c1   :  { %v204_v48 = vmul.f32 0.00015943877, %v203_v55  ;;  %v354_v55 = vld [vmem:[#allocation2 + $0x140] sm:$0xff] }
 0x1c2   :  { %401 = vmatpush1.msra.mxu0 %v354_v55 }
 0x1c3   :  { %v205_v57 = vadd.f32 1e-05, %v204_v48  ;;  %v321_v48 = vld [vmem:[#allocation2 + $0x40] sm:$0xff] }
 0x1c4   :  { %610 = vmatpush1.msra.mxu1 %v321_v48 }
 0x1c5   :  { %3127 = vrsqrt.f32 %v205_v57  ;;  %v353_v57 = vld [vmem:[#allocation2 + $0x138] sm:$0xff] }
 0x1c6   :  { %402 = vmatprep.subr.mxu0 %v353_v57 }
 0x1c8   :  { %v237_v35 = vpop.permute.xlu0 %236 }
 0x1c9   :  { %v242_v38 = vmul.f32 %v239_v34, %v237_v35  ;;  %v1116_v35 = vld [vmem:[#allocation2 + $0x3e8] sm:$0xff] }
 0x1cb   :  { %v247_v49 = vrot.slane %v242_v38, 6  ;;  %v1115_v38 = vld [vmem:[#allocation2 + $0x3e0] sm:$0xff] }
 0x1d2   :  { %v3128_v18 = vpop.eup %3127 }
 0x1d3   :  { %v208_v59 = vrot.slane %v3128_v18, 5  ;;  %v320_v18 = vld [vmem:[#allocation2 + $0x38] sm:$0xff] }
 0x1d4   :  { %611 = vmatprep.subr.mxu1 %v320_v18 }
 0x1d5   :  { %v210_v22 = vmul.f32 %v208_v59, %v3363_v60  ;;  %v352_v59 = vld [vmem:[#allocation2 + $0x130] sm:$0xff]  ;;  %612 = vmatpush1.msra.mxu1 %v319_v50 }
 0x1d6   :  { %403 = vmatpush1.msra.mxu0 %v352_v59  ;;  %613 = vmatprep.subr.mxu1 %v318_v62 }
 0x1d7   :  { %213 = vperm.xlu1 %3125, %v210_v22   ;;  %404 = vmatprep.subr.mxu0 %v351_v20  ;;  %v350_v22 = vld [vmem:[#allocation2 + $0x120] sm:$0xff] }
 0x1d8   :  { %405 = vmatpush1.msra.mxu0 %v350_v22  ;;  %614 = vmatpush1.msra.mxu1 %v317_v3 }
 0x1d9   :  { %406 = vmatprep.subr.mxu0 %v349_v24  ;;  %615 = vmatprep.subr.mxu1 %v316_v26 }
 0x1da   :  { %407 = vmatpush1.msra.mxu0 %v348_v7  ;;  %616 = vmatpush1.msra.mxu1 %v315_v21 }
 0x1db   :  { %231 = vperm.xlu1 %3125, %v3363_v60   ;;  %408 = vmatprep.subr.mxu0 %v347_v52 }
 0x1dc   :  { %409 = vmatpush1.msra.mxu0 %v346_v11  ;;  %617 = vmatprep.subr.mxu1 %v314_v28  ;;  %v827_v11 = vld [vmem:[#allocation2 + $0x2f0] sm:$0xff]  ;;  %v826_v28 = vld [vmem:[#allocation2 + $0x2e8] sm:$0xff] }
 0x1dd   :  { %618 = vmatpush1.msra.mxu1 %v313_v15  ;;  %829 = vmatprep.subr.mxu0 %v828_v30  ;;  %v825_v30 = vld [vmem:[#allocation2 + $0x2e0] sm:$0xff] }
 0x1de   :  { %1119 = vmatprep.subr.mxu1 %v1118_v32 }
 0x252   :  { %v214_v36 = vpop.permute.xlu1 %213 }
 0x253   :  { %v219_v39 = vmul.f32 %v217_v31, %v214_v36  ;;  %v1117_v31 = vld [vmem:[#allocation2 + $0x3f0] sm:$0xff] }
 0x255   :  { %v221_v41 = vrot.slane %v219_v39, 3  ;;  %v823_v39 = vld [vmem:[#allocation2 + $0x2d0] sm:$0xff] }
 0x256   :  { %v232_v40 = vpop.permute.xlu1 %231 }
 0x257   :  { %v223_v45 = vsel %vm98_vm0, %v221_v41, 0.0  ;;  %v241_v42 = vmul.f32 %v239_v34, %v232_v40 }
 0x258   :  { %v224_v44 = vrot.slane %v223_v45, 4 }
 0x259   :  { %v246_v53 = vrot.slane %v241_v42, 6 }
 0x25a   :  { %v225_v46 = vadd.f32 %v224_v44, %v223_v45  ;;  %v1114_v44 = vld [vmem:[#allocation2 + $0x3d8] sm:$0xff] }
 0x25b   :  { %v248_v55 = vsel %vm245_vm1, %v246_v53, %v247_v49  ;;  %v822_v49 = vld [vmem:[#allocation2 + $0x2c8] sm:$0xff] }
 0x25c   :  { %v226_v48 = vrot.slane %v225_v46, 2  ;;  %v250_v57 = vsel %vm98_vm0, %v248_v55, 0.0 }
 0x25d   :  { %v251_v18 = vrot.slane %v250_v57, 4 }
 0x25e   :  { %v227_v60 = vadd.f32 %v226_v48, %v225_v46  ;;  %v821_v48 = vld [vmem:[#allocation2 + $0x2c0] sm:$0xff] }
 0x25f   :  { %v252_v59 = vadd.f32 %v251_v18, %v250_v57  ;;  %v1113_v57 = vld [vmem:[#allocation2 + $0x3d0] sm:$0xff] }
 0x260   :  { %v228_v50 = vrot.slane %v227_v60, 1 }
 0x261   :  { %v253_v20 = vrot.slane %v252_v59, 2 }
 0x262   :  { %v3552_v62 = vadd.f32 %v228_v50, %v227_v60  ;;  %v1112_v50 = vld [vmem:[#allocation2 + $0x3c8] sm:$0xff] }
 0x263   :  { %v254_v22 = vadd.f32 %v253_v20, %v252_v59  ;;  %v820_v59 = vld [vmem:[#allocation2 + $0x2b8] sm:$0xff] }
 0x264   :  { %v258_v7 = vmul.f32 %v3552_v62, %v3377_v25  ;;  %v257_v26 = vmul.f32 %v3552_v62, %v3373_v23  ;;  %v259_v15 = vmul.f32 %v3552_v62, %v3381_v27  ;;  %v260_v32 = vmul.f32 %v3552_v62, %v3389_v33  ;;  %v824_v27 = vld [vmem:[#allocation2 + $0x2d8] sm:$0xff] }
 0x265   :  { %v255_v3 = vrot.slane %v254_v22, 1  ;;  %v274_v23 = vmul.f32 %v3552_v62, %v3471_v13  ;;  %v275_v36 = vmul.f32 %v3552_v62, %v3477_v17  ;;  %v276_v13 = vmul.f32 %v3552_v62, %v3483_v29 }
 0x266   :  { %v277_v41 = vmul.f32 %v3552_v62, %v3489_v1  ;;  %v278_v40 = vmul.f32 %v3552_v62, %v3495_v37  ;;  %v279_v45 = vmul.f32 %v3552_v62, %v3501_v6  ;;  %v280_v42 = vmul.f32 %v3552_v62, %v3507_v8 }
 0x267   :  { %v3554_v24 = vadd.f32 %v255_v3, %v254_v22  ;;  %v281_v8 = vmul.f32 %v3552_v62, %v3513_v10  ;;  %v282_v46 = vmul.f32 %v3552_v62, %v3519_v12  ;;  %v261_v55 = vmul.f32 %v3552_v62, %v3393_v0  ;;  %v819_v22 = vld [vmem:[#allocation2 + $0x2b0] sm:$0xff]  ;;  %v1111_v3 = vld [vmem:[#allocation2 + $0x3c0] sm:$0xff] }
 0x268   :  { %v283_v18 = vmul.f32 %v3552_v62, %v3525_v14  ;;  %v284_v60 = vmul.f32 %v3552_v62, %v3531_v16  ;;  %v262_v20 = vmul.f32 %v3552_v62, %v3399_v2  ;;  %v263_v2 = vmul.f32 %v3552_v62, %v3405_v4 }
 0x269   :  { %v286_v52 = vadd.f32 %v258_v7, %v3554_v24  ;;  %v285_v21 = vadd.f32 %v257_v26, %v3554_v24  ;;  %v3571_v25 = vadd.f32 %v259_v15, %v3554_v24  ;;  %v3574_v34 = vadd.f32 %v260_v32, %v3554_v24  ;;  %v818_v26 = vld [vmem:[#allocation2 + $0x2a8] sm:$0xff]  ;;  %v816_v15 = vld [vmem:[#allocation2 + $0x298] sm:$0xff]  ;;  %v815_v32 = vld [vmem:[#allocation2 + $0x290] sm:$0xff] }
 0x26a   :  { %v3577_v33 = vadd.f32 %v274_v23, %v3554_v24  ;;  %v3593_v17 = vadd.f32 %v275_v36, %v3554_v24  ;;  %v3596_v29 = vadd.f32 %v276_v13, %v3554_v24  ;;  %v3601_v1 = vadd.f32 %v277_v41, %v3554_v24  ;;  %v813_v36 = vld [vmem:[#allocation2 + $0x280] sm:$0xff]  ;;  %v1105_v13 = vld [vmem:[#allocation2 + $0x390] sm:$0xff]  ;;  %v1104_v41 = vld [vmem:[#allocation2 + $0x388] sm:$0xff] }
 0x26b   :  { %443 = vmatmul.mubr.f32.vlgmr.msra.gmra.mxu0 %v286_v52  ;;  %652 = vmatmul.mubr.f32.vlgmr.msra.gmra.mxu1 %v285_v21  ;;  %v3604_v37 = vadd.f32 %v278_v40, %v3554_v24  ;;  %v3607_v6 = vadd.f32 %v279_v45, %v3554_v24  ;;  %v3610_v53 = vadd.f32 %v280_v42, %v3554_v24  ;;  %v817_v21 = vld [vmem:[#allocation2 + $0x2a0] sm:$0xff]  ;;  %v811_v40 = vld [vmem:[#allocation2 + $0x270] sm:$0xff] }
 0x26c   :  { %830 = vmatpush1.msra.mxu0 %v827_v11  ;;  %448 = vmatprep.mubr.f32.mxu0 %v4978_v19  ;;  %v3627_v10 = vadd.f32 %v281_v8, %v3554_v24  ;;  %v3630_v12 = vadd.f32 %v282_v46, %v3554_v24  ;;  %v3633_v0 = vadd.f32 %v261_v55, %v3554_v24  ;;  %v1109_v11 = vld [vmem:[#allocation2 + $0x3b0] sm:$0xff]  ;;  %v1103_v45 = vld [vmem:[#allocation2 + $0x380] sm:$0xff] }
 0x26d   :  { %657 = vmatprep.mubr.f32.mxu1 %v4978_v19  ;;  %831 = vmatprep.subr.mxu0 %v826_v28  ;;  %v3636_v14 = vadd.f32 %v283_v18, %v3554_v24  ;;  %v3639_v16 = vadd.f32 %v284_v60, %v3554_v24  ;;  %v3648_v7 = vadd.f32 %v262_v20, %v3554_v24  ;;  %v809_v8 = vld [vmem:[#allocation2 + $0x260] sm:$0xff]  ;;  %v1101_v46 = vld [vmem:[#allocation2 + $0x370] sm:$0xff]  ;;  %v1098_v20 = vld [vmem:[#allocation2 + $0x358] sm:$0xff] }
 0x26e   :  { %832 = vmatpush1.msra.mxu0 %v825_v30  ;;  %1120 = vmatpush1.msra.mxu1 %v1117_v31  ;;  %v3657_v28 = vadd.f32 %v263_v2, %v3554_v24  ;;  %v1108_v30 = vld [vmem:[#allocation2 + $0x3a8] sm:$0xff]  ;;  %v264_v4 = vmul.f32 %v3552_v62, %v3411_v43  ;;  %v1107_v31 = vld [vmem:[#allocation2 + $0x3a0] sm:$0xff]  ;;  %v265_v43 = vmul.f32 %v3552_v62, %v3417_v47  ;;  %v807_v18 = vld [vmem:[#allocation2 + $0x250] sm:$0xff] }
 0x26f   :  { %449 = vmatmul.mubr.f32.gmra.mxu0 %v3571_v25  ;;  %658 = vmatmul.mubr.f32.gmra.mxu1 %v286_v52  ;;  %v1110_v52 = vld [vmem:[#allocation2 + $0x3b8] sm:$0xff]  ;;  %v266_v47 = vmul.f32 %v3552_v62, %v3423_v51  ;;  %v267_v51 = vmul.f32 %v3552_v62, %v3429_v54  ;;  %v268_v54 = vmul.f32 %v3552_v62, %v3435_v56  ;;  %v1099_v60 = vld [vmem:[#allocation2 + $0x360] sm:$0xff]  ;;  %v1096_v2 = vld [vmem:[#allocation2 + $0x348] sm:$0xff] }
 0x270   :  { %454 = vmatprep.mubr.f32.mxu0 %v4978_v19  ;;  %663 = vmatprep.mubr.f32.mxu1 %v4978_v19  ;;  %v3666_v23 = vadd.f32 %v264_v4, %v3554_v24  ;;  %v269_v56 = vmul.f32 %v3552_v62, %v3441_v58  ;;  %v270_v58 = vmul.f32 %v3552_v62, %v3447_v61  ;;  %v1094_v4 = vld [vmem:[#allocation2 + $0x338] sm:$0xff] }
 0x271   :  { %833 = vmatprep.subr.mxu0 %v824_v27  ;;  %1121 = vmatprep.subr.mxu1 %v1116_v35  ;;  %v814_v27 = vld [vmem:[#allocation2 + $0x288] sm:$0xff]  ;;  %v1106_v35 = vld [vmem:[#allocation2 + $0x398] sm:$0xff]  ;;  %v3684_v42 = vadd.f32 %v266_v47, %v3554_v24  ;;  %v3693_v55 = vadd.f32 %v267_v51, %v3554_v24  ;;  %v271_v61 = vmul.f32 %v3552_v62, %v3453_v63 }
 0x272   :  { %834 = vmatpush1.msra.mxu0 %v823_v39  ;;  %1122 = vmatpush1.msra.mxu1 %v1115_v38  ;;  %v3675_v39 = vadd.f32 %v265_v43, %v3554_v24  ;;  %v812_v38 = vld [vmem:[#allocation2 + $0x278] sm:$0xff]  ;;  %v1092_v43 = vld [vmem:[#allocation2 + $0x328] sm:$0xff]  ;;  %v272_v63 = vmul.f32 %v3552_v62, %v3459_v5  ;;  %v273_v5 = vmul.f32 %v3552_v62, %v3465_v9  ;;  %v1087_v9 = vld [vmem:[#allocation2 + $0x300] sm:$0xff] }
 0x273   :  { %455 = vmatmul.mubr.f32.gmra.mxu0 %v3574_v34  ;;  %664 = vmatmul.mubr.f32.gmra.mxu1 %v3571_v25  ;;  %v1090_v47 = vld [vmem:[#allocation2 + $0x318] sm:$0xff]  ;;  %v1407_v62 = vld [vmem:[#allocation2 + $0x4f0] sm:$0xff] }
 0x274   :  { %460 = vmatprep.mubr.f32.mxu0 %v4978_v19  ;;  %669 = vmatprep.mubr.f32.mxu1 %v4978_v19  ;;  %v1408_v51 = vld [vmem:[#allocation2 + $0x4f8] sm:$0xff] }
 0x275   :  { %835 = vmatprep.subr.mxu0 %v822_v49  ;;  %1123 = vmatprep.subr.mxu1 %v1114_v44  ;;  %v810_v49 = vld [vmem:[#allocation2 + $0x268] sm:$0xff]  ;;  %v1102_v44 = vld [vmem:[#allocation2 + $0x378] sm:$0xff] }
 0x276   :  { %836 = vmatpush1.msra.mxu0 %v821_v48  ;;  %1124 = vmatpush1.msra.mxu1 %v1113_v57  ;;  %v808_v48 = vld [vmem:[#allocation2 + $0x258] sm:$0xff]  ;;  %v1100_v57 = vld [vmem:[#allocation2 + $0x368] sm:$0xff] }
 0x277   :  { %461 = vmatmul.mubr.f32.gmra.mxu0 %v3633_v0  ;;  %670 = vmatmul.mubr.f32.gmra.mxu1 %v3574_v34 }
 0x278   :  { %466 = vmatprep.mubr.f32.mxu0 %v4978_v19  ;;  %675 = vmatprep.mubr.f32.mxu1 %v4978_v19 }
 0x279   :  { %837 = vmatprep.subr.mxu0 %v820_v59  ;;  %1125 = vmatprep.subr.mxu1 %v1112_v50  ;;  %v3702_v59 = vadd.f32 %v268_v54, %v3554_v24  ;;  %v806_v50 = vld [vmem:[#allocation2 + $0x248] sm:$0xff]  ;;  %v1399_v54 = vld [vmem:[#allocation2 + $0x4b0] sm:$0xff] }
 0x27a   :  { %838 = vmatpush1.msra.mxu0 %v819_v22  ;;  %1126 = vmatpush1.msra.mxu1 %v1111_v3  ;;  %v805_v22 = vld [vmem:[#allocation2 + $0x240] sm:$0xff]  ;;  %v1097_v3 = vld [vmem:[#allocation2 + $0x350] sm:$0xff] }
 0x27b   :  { %467 = vmatmul.mubr.f32.gmra.mxu0 %v3648_v7  ;;  %676 = vmatmul.mubr.f32.gmra.mxu1 %v3633_v0 }
 0x27c   :  { %472 = vmatprep.mubr.f32.mxu0 %v4978_v19  ;;  %681 = vmatprep.mubr.f32.mxu1 %v4978_v19 }
 0x27d   :  { %839 = vmatprep.subr.mxu0 %v818_v26  ;;  %1127 = vmatprep.subr.mxu1 %v1110_v52  ;;  %v3711_v26 = vadd.f32 %v269_v56, %v3554_v24  ;;  %v804_v52 = vld [vmem:[#allocation2 + $0x238] sm:$0xff]  ;;  %v1394_v56 = vld [vmem:[#allocation2 + $0x488] sm:$0xff] }
 0x27e   :  { %840 = vmatpush1.msra.mxu0 %v817_v21  ;;  %1128 = vmatpush1.msra.mxu1 %v1109_v11  ;;  %v803_v21 = vld [vmem:[#allocation2 + $0x230] sm:$0xff]  ;;  %v1095_v11 = vld [vmem:[#allocation2 + $0x340] sm:$0xff] }
 0x27f   :  { %473 = vmatmul.mubr.f32.gmra.mxu0 %v3657_v28  ;;  %682 = vmatmul.mubr.f32.gmra.mxu1 %v3648_v7 }
 0x280   :  { %478 = vmatprep.mubr.f32.mxu0 %v4978_v19  ;;  %687 = vmatprep.mubr.f32.mxu1 %v4978_v19 }
 0x281   :  { %841 = vmatprep.subr.mxu0 %v816_v15  ;;  %1129 = vmatprep.subr.mxu1 %v1108_v30  ;;  %v3720_v15 = vadd.f32 %v270_v58, %v3554_v24  ;;  %v802_v30 = vld [vmem:[#allocation2 + $0x228] sm:$0xff]  ;;  %v1389_v58 = vld [vmem:[#allocation2 + $0x460] sm:$0xff] }
 0x282   :  { %842 = vmatpush1.msra.mxu0 %v815_v32  ;;  %1130 = vmatpush1.msra.mxu1 %v1107_v31  ;;  %v801_v32 = vld [vmem:[#allocation2 + $0x220] sm:$0xff]  ;;  %v1093_v31 = vld [vmem:[#allocation2 + $0x330] sm:$0xff] }
 0x283   :  { %479 = vmatmul.mubr.f32.gmra.mxu0 %v3666_v23  ;;  %688 = vmatmul.mubr.f32.gmra.mxu1 %v3657_v28 }
 0x284   :  { %484 = vmatprep.mubr.f32.mxu0 %v4978_v19  ;;  %693 = vmatprep.mubr.f32.mxu1 %v4978_v19 }
 0x285   :  { %843 = vmatprep.subr.mxu0 %v814_v27  ;;  %1131 = vmatprep.subr.mxu1 %v1106_v35  ;;  %v3729_v27 = vadd.f32 %v271_v61, %v3554_v24  ;;  %v800_v35 = vld [vmem:[#allocation2 + $0x218] sm:$0xff] }
 0x286   :  { %844 = vmatpush1.msra.mxu0 %v813_v36  ;;  %1132 = vmatpush1.msra.mxu1 %v1105_v13  ;;  %v799_v36 = vld [vmem:[#allocation2 + $0x210] sm:$0xff]  ;;  %v1091_v13 = vld [vmem:[#allocation2 + $0x320] sm:$0xff]  ;;  %v1384_v61 = vld [vmem:[#allocation2 + $0x438] sm:$0xff] }
 0x287   :  { %485 = vmatmul.mubr.f32.gmra.mxu0 %v3675_v39  ;;  %694 = vmatmul.mubr.f32.gmra.mxu1 %v3666_v23 }
 0x288   :  { %490 = vmatprep.mubr.f32.mxu0 %v4978_v19  ;;  %699 = vmatprep.mubr.f32.mxu1 %v4978_v19 }
 0x289   :  { %845 = vmatprep.subr.mxu0 %v812_v38  ;;  %1133 = vmatprep.subr.mxu1 %v1104_v41  ;;  %v3738_v38 = vadd.f32 %v272_v63, %v3554_v24  ;;  %v798_v41 = vld [vmem:[#allocation2 + $0x208] sm:$0xff]  ;;  %v1379_v63 = vld [vmem:[#allocation2 + $0x410] sm:$0xff] }
 0x28a   :  { %846 = vmatpush1.msra.mxu0 %v811_v40  ;;  %1134 = vmatpush1.msra.mxu1 %v1103_v45  ;;  %v797_v40 = vld [vmem:[#allocation2 + $0x200] sm:$0xff]  ;;  %v1089_v45 = vld [vmem:[#allocation2 + $0x310] sm:$0xff] }
 0x28b   :  { %491 = vmatmul.mubr.f32.gmra.mxu0 %v3684_v42  ;;  %700 = vmatmul.mubr.f32.gmra.mxu1 %v3675_v39 }
 0x28c   :  { %496 = vmatprep.mubr.f32.mxu0 %v4978_v19  ;;  %705 = vmatprep.mubr.f32.mxu1 %v4978_v19 }
 0x28d   :  { %847 = vmatprep.subr.mxu0 %v810_v49  ;;  %1135 = vmatprep.subr.mxu1 %v1102_v44  ;;  %v3747_v49 = vadd.f32 %v273_v5, %v3554_v24  ;;  %v1088_v44 = vld [vmem:[#allocation2 + $0x308] sm:$0xff] }
 0x28e   :  { %848 = vmatpush1.msra.mxu0 %v809_v8  ;;  %1136 = vmatpush1.msra.mxu1 %v1101_v46  ;;  %v1406_v24 = vld [vmem:[#allocation2 + $0x4e8] sm:$0xff]  ;;  %v1405_v8 = vld [vmem:[#allocation2 + $0x4e0] sm:$0xff]  ;;  %v1404_v46 = vld [vmem:[#allocation2 + $0x4d8] sm:$0xff] }
 0x28f   :  { %497 = vmatmul.mubr.f32.gmra.mxu0 %v3693_v55  ;;  %706 = vmatmul.mubr.f32.gmra.mxu1 %v3684_v42 }
 0x290   :  { %502 = vmatprep.mubr.f32.mxu0 %v4978_v19  ;;  %711 = vmatprep.mubr.f32.mxu1 %v4978_v19 }
 0x291   :  { %849 = vmatprep.subr.mxu0 %v808_v48  ;;  %1137 = vmatprep.subr.mxu1 %v1100_v57  ;;  %v1403_v48 = vld [vmem:[#allocation2 + $0x4d0] sm:$0xff]  ;;  %v1401_v57 = vld [vmem:[#allocation2 + $0x4c0] sm:$0xff] }
 0x292   :  { %850 = vmatpush1.msra.mxu0 %v807_v18  ;;  %1138 = vmatpush1.msra.mxu1 %v1099_v60  ;;  %v1398_v18 = vld [vmem:[#allocation2 + $0x4a8] sm:$0xff]  ;;  %v1397_v60 = vld [vmem:[#allocation2 + $0x4a0] sm:$0xff] }
 0x293   :  { %503 = vmatmul.mubr.f32.gmra.mxu0 %v3702_v59  ;;  %712 = vmatmul.mubr.f32.gmra.mxu1 %v3693_v55 }
 0x294   :  { %508 = vmatprep.mubr.f32.mxu0 %v4978_v19  ;;  %717 = vmatprep.mubr.f32.mxu1 %v4978_v19 }
 0x295   :  { %851 = vmatprep.subr.mxu0 %v806_v50  ;;  %1139 = vmatprep.subr.mxu1 %v1098_v20  ;;  %v1396_v50 = vld [vmem:[#allocation2 + $0x498] sm:$0xff]  ;;  %v1395_v20 = vld [vmem:[#allocation2 + $0x490] sm:$0xff] }
 0x296   :  { %852 = vmatpush1.msra.mxu0 %v805_v22  ;;  %1140 = vmatpush1.msra.mxu1 %v1097_v3  ;;  %v1393_v22 = vld [vmem:[#allocation2 + $0x480] sm:$0xff]  ;;  %v1392_v3 = vld [vmem:[#allocation2 + $0x478] sm:$0xff] }
 0x297   :  { %509 = vmatmul.mubr.f32.gmra.mxu0 %v3711_v26  ;;  %718 = vmatmul.mubr.f32.gmra.mxu1 %v3702_v59 }
 0x298   :  { %514 = vmatprep.mubr.f32.mxu0 %v4978_v19  ;;  %723 = vmatprep.mubr.f32.mxu1 %v4978_v19 }
 0x299   :  { %853 = vmatprep.subr.mxu0 %v804_v52  ;;  %1141 = vmatprep.subr.mxu1 %v1096_v2  ;;  %v1391_v52 = vld [vmem:[#allocation2 + $0x470] sm:$0xff]  ;;  %v1390_v2 = vld [vmem:[#allocation2 + $0x468] sm:$0xff] }
 0x29a   :  { %854 = vmatpush1.msra.mxu0 %v803_v21  ;;  %1142 = vmatpush1.msra.mxu1 %v1095_v11  ;;  %v1388_v21 = vld [vmem:[#allocation2 + $0x458] sm:$0xff]  ;;  %v1387_v11 = vld [vmem:[#allocation2 + $0x450] sm:$0xff] }
 0x29b   :  { %515 = vmatmul.mubr.f32.gmra.mxu0 %v3720_v15  ;;  %724 = vmatmul.mubr.f32.gmra.mxu1 %v3711_v26 }
 0x29c   :  { %520 = vmatprep.mubr.f32.mxu0 %v4978_v19  ;;  %729 = vmatprep.mubr.f32.mxu1 %v4978_v19 }
 0x29d   :  { %855 = vmatprep.subr.mxu0 %v802_v30  ;;  %1143 = vmatprep.subr.mxu1 %v1094_v4  ;;  %v1386_v30 = vld [vmem:[#allocation2 + $0x448] sm:$0xff]  ;;  %v1385_v4 = vld [vmem:[#allocation2 + $0x440] sm:$0xff] }
 0x29e   :  { %856 = vmatpush1.msra.mxu0 %v801_v32  ;;  %1144 = vmatpush1.msra.mxu1 %v1093_v31  ;;  %v1383_v32 = vld [vmem:[#allocation2 + $0x430] sm:$0xff]  ;;  %v1382_v31 = vld [vmem:[#allocation2 + $0x428] sm:$0xff] }
 0x29f   :  { %521 = vmatmul.mubr.f32.gmra.mxu0 %v3729_v27  ;;  %730 = vmatmul.mubr.f32.gmra.mxu1 %v3720_v15 }
 0x2a0   :  { %526 = vmatprep.mubr.f32.mxu0 %v4978_v19  ;;  %735 = vmatprep.mubr.f32.mxu1 %v4978_v19 }
 0x2a1   :  { %857 = vmatprep.subr.mxu0 %v800_v35  ;;  %1145 = vmatprep.subr.mxu1 %v1092_v43  ;;  %v1381_v35 = vld [vmem:[#allocation2 + $0x420] sm:$0xff]  ;;  %v1380_v43 = vld [vmem:[#allocation2 + $0x418] sm:$0xff] }
 0x2a2   :  { %858 = vmatpush1.msra.mxu0 %v799_v36  ;;  %1146 = vmatpush1.msra.mxu1 %v1091_v13  ;;  %v1378_v36 = vld [vmem:[#allocation2 + $0x408] sm:$0xff]  ;;  %v1377_v13 = vld [vmem:[#allocation2 + $0x400] sm:$0xff] }
 0x2a3   :  { %527 = vmatmul.mubr.f32.gmra.mxu0 %v3738_v38  ;;  %736 = vmatmul.mubr.f32.gmra.mxu1 %v3729_v27 }
 0x2a4   :  { %532 = vmatprep.mubr.f32.mxu0 %v4978_v19  ;;  %741 = vmatprep.mubr.f32.mxu1 %v4978_v19 }
 0x2a5   :  { %859 = vmatprep.subr.mxu0 %v798_v41  ;;  %1147 = vmatprep.subr.mxu1 %v1090_v47 }
 0x2a6   :  { %860 = vmatpush1.msra.mxu0 %v797_v40  ;;  %1148 = vmatpush1.msra.mxu1 %v1089_v45 }
 0x2a7   :  { %533 = vmatmul.mubr.f32.gmra.mxu0 %v3747_v49  ;;  %742 = vmatmul.mubr.f32.gmra.mxu1 %v3738_v38 }
 0x2a8   :  { %538 = vmatprep.mubr.f32.mxu0 %v4978_v19  ;;  %747 = vmatprep.mubr.f32.mxu1 %v4978_v19 }
 0x2a9   :  { %1149 = vmatprep.subr.mxu1 %v1088_v44  ;;  %1409 = vmatprep.subr.mxu0 %v1408_v51 }
 0x2aa   :  { %1150 = vmatpush1.msra.mxu1 %v1087_v9 }
 0x2ab   :  { %539 = vmatmul.mubr.f32.gmra.mxu0 %v3577_v33  ;;  %748 = vmatmul.mubr.f32.gmra.mxu1 %v3747_v49 }
 0x2ac   :  { %544 = vmatprep.mubr.f32.mxu0 %v4978_v19  ;;  %753 = vmatprep.mubr.f32.mxu1 %v4978_v19 }
 0x2af   :  { %545 = vmatmul.mubr.f32.gmra.mxu0 %v3593_v17  ;;  %754 = vmatmul.mubr.f32.gmra.mxu1 %v3577_v33 }
 0x2b0   :  { %550 = vmatprep.mubr.f32.mxu0 %v4978_v19  ;;  %759 = vmatprep.mubr.f32.mxu1 %v4978_v19 }
 0x2b3   :  { %551 = vmatmul.mubr.f32.gmra.mxu0 %v3596_v29  ;;  %760 = vmatmul.mubr.f32.gmra.mxu1 %v3593_v17 }
 0x2b4   :  { %556 = vmatprep.mubr.f32.mxu0 %v4978_v19  ;;  %765 = vmatprep.mubr.f32.mxu1 %v4978_v19 }
 0x2b7   :  { %557 = vmatmul.mubr.f32.gmra.mxu0 %v3601_v1  ;;  %766 = vmatmul.mubr.f32.gmra.mxu1 %v3596_v29 }
 0x2b8   :  { %562 = vmatprep.mubr.f32.mxu0 %v4978_v19  ;;  %771 = vmatprep.mubr.f32.mxu1 %v4978_v19 }
 0x2bb   :  { %563 = vmatmul.mubr.f32.gmra.mxu0 %v3604_v37  ;;  %772 = vmatmul.mubr.f32.gmra.mxu1 %v3601_v1 }
 0x2bc   :  { %568 = vmatprep.mubr.f32.mxu0 %v4978_v19  ;;  %777 = vmatprep.mubr.f32.mxu1 %v4978_v19 }
 0x2bf   :  { %569 = vmatmul.mubr.f32.gmra.mxu0 %v3607_v6  ;;  %778 = vmatmul.mubr.f32.gmra.mxu1 %v3604_v37 }
 0x2c0   :  { %574 = vmatprep.mubr.f32.mxu0 %v4978_v19  ;;  %783 = vmatprep.mubr.f32.mxu1 %v4978_v19 }
 0x2c3   :  { %575 = vmatmul.mubr.f32.gmra.mxu0 %v3610_v53  ;;  %784 = vmatmul.mubr.f32.gmra.mxu1 %v3607_v6 }
 0x2c4   :  { %580 = vmatprep.mubr.f32.mxu0 %v4978_v19  ;;  %789 = vmatprep.mubr.f32.mxu1 %v4978_v19 }
 0x2c7   :  { %581 = vmatmul.mubr.f32.gmra.mxu0 %v3627_v10  ;;  %790 = vmatmul.mubr.f32.gmra.mxu1 %v3610_v53 }
 0x2c8   :  { %893 = vmatprep.mubr.f32.mxu0 %v4978_v19  ;;  %1183 = vmatprep.mubr.f32.mxu1 %v4978_v19 }
 0x2cb   :  { %894 = vmatmul.mubr.f32.vlgmr.msra.gmra.mxu0 %v3571_v25  ;;  %1184 = vmatmul.mubr.f32.vlgmr.msra.gmra.mxu1 %v3574_v34  ;;  %v1402_v25 = vld [vmem:[#allocation2 + $0x4c8] sm:$0xff] }
 0x2cc   :  { %1410 = vmatpush1.msra.mxu0 %v1407_v62  ;;  %899 = vmatprep.mubr.f32.mxu0 %v4978_v19 }
 0x2cd   :  { %1189 = vmatprep.mubr.f32.mxu1 %v4978_v19  ;;  %1411 = vmatprep.subr.mxu0 %v1406_v24 }
 0x2ce   :  { %1412 = vmatpush1.msra.mxu0 %v1405_v8 }
 0x2cf   :  { %900 = vmatmul.mubr.f32.gmra.mxu0 %v3574_v34  ;;  %1190 = vmatmul.mubr.f32.gmra.mxu1 %v3633_v0  ;;  %v1400_v34 = vld [vmem:[#allocation2 + $0x4b8] sm:$0xff] }
 0x2d0   :  { %905 = vmatprep.mubr.f32.mxu0 %v4978_v19  ;;  %1195 = vmatprep.mubr.f32.mxu1 %v4978_v19 }
 0x2d1   :  { %1413 = vmatprep.subr.mxu0 %v1404_v46 }
 0x2d2   :  { %1414 = vmatpush1.msra.mxu0 %v1403_v48 }
 0x2d3   :  { %906 = vmatmul.mubr.f32.gmra.mxu0 %v3633_v0  ;;  %1196 = vmatmul.mubr.f32.gmra.mxu1 %v3648_v7 }
 0x2d4   :  { %911 = vmatprep.mubr.f32.mxu0 %v4978_v19  ;;  %1201 = vmatprep.mubr.f32.mxu1 %v4978_v19 }
 0x2d5   :  { %1415 = vmatprep.subr.mxu0 %v1402_v25 }
 0x2d6   :  { %1416 = vmatpush1.msra.mxu0 %v1401_v57 }
 0x2d7   :  { %912 = vmatmul.mubr.f32.gmra.mxu0 %v3648_v7  ;;  %1202 = vmatmul.mubr.f32.gmra.mxu1 %v3657_v28 }
 0x2d8   :  { %917 = vmatprep.mubr.f32.mxu0 %v4978_v19  ;;  %1207 = vmatprep.mubr.f32.mxu1 %v4978_v19 }
 0x2d9   :  { %1417 = vmatprep.subr.mxu0 %v1400_v34 }
 0x2da   :  { %1418 = vmatpush1.msra.mxu0 %v1399_v54 }
 0x2db   :  { %918 = vmatmul.mubr.f32.gmra.mxu0 %v3657_v28  ;;  %1208 = vmatmul.mubr.f32.gmra.mxu1 %v3666_v23 }
 0x2dc   :  { %923 = vmatprep.mubr.f32.mxu0 %v4978_v19  ;;  %1213 = vmatprep.mubr.f32.mxu1 %v4978_v19 }
 0x2dd   :  { %1419 = vmatprep.subr.mxu0 %v1398_v18 }
 0x2de   :  { %1420 = vmatpush1.msra.mxu0 %v1397_v60 }
 0x2df   :  { %924 = vmatmul.mubr.f32.gmra.mxu0 %v3666_v23  ;;  %1214 = vmatmul.mubr.f32.gmra.mxu1 %v3675_v39 }
 0x2e0   :  { %929 = vmatprep.mubr.f32.mxu0 %v4978_v19  ;;  %1219 = vmatprep.mubr.f32.mxu1 %v4978_v19 }
 0x2e1   :  { %1421 = vmatprep.subr.mxu0 %v1396_v50 }
 0x2e2   :  { %1422 = vmatpush1.msra.mxu0 %v1395_v20 }
 0x2e3   :  { %930 = vmatmul.mubr.f32.gmra.mxu0 %v3675_v39  ;;  %1220 = vmatmul.mubr.f32.gmra.mxu1 %v3684_v42 }
 0x2e4   :  { %935 = vmatprep.mubr.f32.mxu0 %v4978_v19  ;;  %1225 = vmatprep.mubr.f32.mxu1 %v4978_v19 }
 0x2e5   :  { %1423 = vmatprep.subr.mxu0 %v1394_v56 }
 0x2e6   :  { %1424 = vmatpush1.msra.mxu0 %v1393_v22 }
 0x2e7   :  { %936 = vmatmul.mubr.f32.gmra.mxu0 %v3684_v42  ;;  %1226 = vmatmul.mubr.f32.gmra.mxu1 %v3693_v55 }
 0x2e8   :  { %941 = vmatprep.mubr.f32.mxu0 %v4978_v19  ;;  %1231 = vmatprep.mubr.f32.mxu1 %v4978_v19 }
 0x2e9   :  { %1425 = vmatprep.subr.mxu0 %v1392_v3 }
 0x2ea   :  { %1426 = vmatpush1.msra.mxu0 %v1391_v52 }
 0x2eb   :  { %942 = vmatmul.mubr.f32.gmra.mxu0 %v3693_v55  ;;  %1232 = vmatmul.mubr.f32.gmra.mxu1 %v3702_v59 }
 0x2ec   :  { %947 = vmatprep.mubr.f32.mxu0 %v4978_v19  ;;  %1237 = vmatprep.mubr.f32.mxu1 %v4978_v19 }
 0x2ed   :  { %1427 = vmatprep.subr.mxu0 %v1390_v2 }
 0x2ee   :  { %1428 = vmatpush1.msra.mxu0 %v1389_v58 }
 0x2ef   :  { %948 = vmatmul.mubr.f32.gmra.mxu0 %v3702_v59  ;;  %1238 = vmatmul.mubr.f32.gmra.mxu1 %v3711_v26 }
 0x2f0   :  { %953 = vmatprep.mubr.f32.mxu0 %v4978_v19  ;;  %1243 = vmatprep.mubr.f32.mxu1 %v4978_v19 }
 0x2f1   :  { %1429 = vmatprep.subr.mxu0 %v1388_v21 }
 0x2f2   :  { %1430 = vmatpush1.msra.mxu0 %v1387_v11 }
 0x2f3   :  { %954 = vmatmul.mubr.f32.gmra.mxu0 %v3711_v26  ;;  %1244 = vmatmul.mubr.f32.gmra.mxu1 %v3720_v15 }
 0x2f4   :  { %959 = vmatprep.mubr.f32.mxu0 %v4978_v19  ;;  %1249 = vmatprep.mubr.f32.mxu1 %v4978_v19 }
 0x2f5   :  { %1431 = vmatprep.subr.mxu0 %v1386_v30 }
 0x2f6   :  { %1432 = vmatpush1.msra.mxu0 %v1385_v4 }
 0x2f7   :  { %960 = vmatmul.mubr.f32.gmra.mxu0 %v3720_v15  ;;  %1250 = vmatmul.mubr.f32.gmra.mxu1 %v3729_v27 }
 0x2f8   :  { %965 = vmatprep.mubr.f32.mxu0 %v4978_v19  ;;  %1255 = vmatprep.mubr.f32.mxu1 %v4978_v19 }
 0x2f9   :  { %1433 = vmatprep.subr.mxu0 %v1384_v61 }
 0x2fa   :  { %1434 = vmatpush1.msra.mxu0 %v1383_v32 }
 0x2fb   :  { %966 = vmatmul.mubr.f32.gmra.mxu0 %v3729_v27  ;;  %1256 = vmatmul.mubr.f32.gmra.mxu1 %v3738_v38 }
 0x2fc   :  { %971 = vmatprep.mubr.f32.mxu0 %v4978_v19  ;;  %1261 = vmatprep.mubr.f32.mxu1 %v4978_v19 }
 0x2fd   :  { %1435 = vmatprep.subr.mxu0 %v1382_v31 }
 0x2fe   :  { %1436 = vmatpush1.msra.mxu0 %v1381_v35  ;;  %v2659_v35 = vld [vmem:[%s4975_s3 + $0xf0] sm:$0xff] }
 0x2ff   :  { %972 = vmatmul.mubr.f32.gmra.mxu0 %v3738_v38  ;;  %1262 = vmatmul.mubr.f32.gmra.mxu1 %v3747_v49 }
 0x300   :  { %977 = vmatprep.mubr.f32.mxu0 %v4978_v19  ;;  %1267 = vmatprep.mubr.f32.mxu1 %v4978_v19 }
 0x301   :  { %1437 = vmatprep.subr.mxu0 %v1380_v43 }
 0x302   :  { %1438 = vmatpush1.msra.mxu0 %v1379_v63 }
 0x303   :  { %978 = vmatmul.mubr.f32.gmra.mxu0 %v3747_v49  ;;  %1268 = vmatmul.mubr.f32.gmra.mxu1 %v3577_v33 }
 0x304   :  { %983 = vmatprep.mubr.f32.mxu0 %v4978_v19  ;;  %1273 = vmatprep.mubr.f32.mxu1 %v4978_v19 }
 0x305   :  { %1439 = vmatprep.subr.mxu0 %v1378_v36 }
 0x306   :  { %1440 = vmatpush1.msra.mxu0 %v1377_v13 }
 0x307   :  { %984 = vmatmul.mubr.f32.gmra.mxu0 %v3577_v33  ;;  %1274 = vmatmul.mubr.f32.gmra.mxu1 %v3593_v17 }
 0x308   :  { %989 = vmatprep.mubr.f32.mxu0 %v4978_v19  ;;  %1279 = vmatprep.mubr.f32.mxu1 %v4978_v19 }
 0x30b   :  { %990 = vmatmul.mubr.f32.gmra.mxu0 %v3593_v17  ;;  %1280 = vmatmul.mubr.f32.gmra.mxu1 %v3596_v29 }
 0x30c   :  { %995 = vmatprep.mubr.f32.mxu0 %v4978_v19  ;;  %1285 = vmatprep.mubr.f32.mxu1 %v4978_v19 }
 0x30f   :  { %996 = vmatmul.mubr.f32.gmra.mxu0 %v3596_v29  ;;  %1286 = vmatmul.mubr.f32.gmra.mxu1 %v3601_v1 }
 0x310   :  { %1001 = vmatprep.mubr.f32.mxu0 %v4978_v19  ;;  %1291 = vmatprep.mubr.f32.mxu1 %v4978_v19 }
 0x313   :  { %1002 = vmatmul.mubr.f32.gmra.mxu0 %v3601_v1  ;;  %1292 = vmatmul.mubr.f32.gmra.mxu1 %v3604_v37 }
 0x314   :  { %1007 = vmatprep.mubr.f32.mxu0 %v4978_v19  ;;  %1297 = vmatprep.mubr.f32.mxu1 %v4978_v19 }
 0x317   :  { %1008 = vmatmul.mubr.f32.gmra.mxu0 %v3604_v37  ;;  %1298 = vmatmul.mubr.f32.gmra.mxu1 %v3607_v6 }
 0x318   :  { %1013 = vmatprep.mubr.f32.mxu0 %v4978_v19  ;;  %1303 = vmatprep.mubr.f32.mxu1 %v4978_v19 }
 0x31b   :  { %1014 = vmatmul.mubr.f32.gmra.mxu0 %v3607_v6  ;;  %1304 = vmatmul.mubr.f32.gmra.mxu1 %v3610_v53 }
 0x31c   :  { %1019 = vmatprep.mubr.f32.mxu0 %v4978_v19  ;;  %1309 = vmatprep.mubr.f32.mxu1 %v4978_v19 }
 0x31f   :  { %1020 = vmatmul.mubr.f32.gmra.mxu0 %v3610_v53  ;;  %1310 = vmatmul.mubr.f32.gmra.mxu1 %v3627_v10 }
 0x320   :  { %1025 = vmatprep.mubr.f32.mxu0 %v4978_v19  ;;  %1315 = vmatprep.mubr.f32.mxu1 %v4978_v19 }
 0x323   :  { %1026 = vmatmul.mubr.f32.gmra.mxu0 %v3627_v10  ;;  %1316 = vmatmul.mubr.f32.gmra.mxu1 %v3630_v12 }
 0x324   :  { %1031 = vmatprep.mubr.f32.mxu0 %v4978_v19  ;;  %1321 = vmatprep.mubr.f32.mxu1 %v4978_v19 }
 0x327   :  { %1032 = vmatmul.mubr.f32.gmra.mxu0 %v3630_v12  ;;  %1322 = vmatmul.mubr.f32.gmra.mxu1 %v3636_v14 }
 0x328   :  { %1473 = vmatprep.mubr.f32.mxu0 %v4978_v19 }
 0x32b   :  { %v444_v41 = vpop.f32.mrf.mxu0  ;;  %v653_v47 = vpop.f32.mrf.mxu1  ;;  %1474 = vmatmul.mubr.f32.vlgmr.msra.gmra.mxu0 %v3633_v0 }
 0x32c   :  { %v3881_v5 = vadd.f32 %v653_v47, %v444_v41  ;;  %1479 = vmatprep.mubr.f32.mxu0 %v4978_v19 }
 0x32d   :  { %v3884_v40 = vpop.f32.mrf.mxu0  ;;  %v3886_v45 = vpop.f32.mrf.mxu1 }
 0x32f   :  { %v450_v44 = vpop.f32.mrf.mxu0  ;;  %v659_v51 = vpop.f32.mrf.mxu1  ;;  %1480 = vmatmul.mubr.f32.gmra.mxu0 %v3648_v7 }
 0x330   :  { %v3889_v9 = vadd.f32 %v659_v51, %v450_v44  ;;  %1485 = vmatprep.mubr.f32.mxu0 %v4978_v19 }
 0x331   :  { %v3892_v62 = vpop.f32.mrf.mxu0  ;;  %v3894_v24 = vpop.f32.mrf.mxu1 }
 0x333   :  { %v456_v0 = vpop.f32.mrf.mxu0  ;;  %v665_v8 = vpop.f32.mrf.mxu1  ;;  %1486 = vmatmul.mubr.f32.gmra.mxu0 %v3657_v28 }
 0x334   :  { %v3897_v46 = vadd.f32 %v665_v8, %v456_v0  ;;  %1491 = vmatprep.mubr.f32.mxu0 %v4978_v19 }
 0x335   :  { %v3900_v48 = vpop.f32.mrf.mxu0  ;;  %v3902_v25 = vpop.f32.mrf.mxu1 }
 0x337   :  { %v462_v7 = vpop.f32.mrf.mxu0  ;;  %v671_v57 = vpop.f32.mrf.mxu1  ;;  %1492 = vmatmul.mubr.f32.gmra.mxu0 %v3666_v23 }
 0x338   :  { %v3905_v34 = vadd.f32 %v671_v57, %v462_v7  ;;  %1497 = vmatprep.mubr.f32.mxu0 %v4978_v19 }
 0x339   :  { %v3908_v54 = vpop.f32.mrf.mxu0  ;;  %v3910_v18 = vpop.f32.mrf.mxu1 }
 0x33b   :  { %v468_v28 = vpop.f32.mrf.mxu0  ;;  %v677_v60 = vpop.f32.mrf.mxu1  ;;  %1498 = vmatmul.mubr.f32.gmra.mxu0 %v3675_v39 }
 0x33c   :  { %v3913_v50 = vadd.f32 %v677_v60, %v468_v28  ;;  %1503 = vmatprep.mubr.f32.mxu0 %v4978_v19 }
 0x33d   :  { %v3916_v20 = vpop.f32.mrf.mxu0  ;;  %v3918_v56 = vpop.f32.mrf.mxu1 }
 0x33f   :  { %v474_v23 = vpop.f32.mrf.mxu0  ;;  %v683_v22 = vpop.f32.mrf.mxu1  ;;  %1504 = vmatmul.mubr.f32.gmra.mxu0 %v3684_v42  ;;  %v2660_v42 = vld [vmem:[%s4975_s3 + $0xf8] sm:$0xff] }
 0x340   :  { %v3921_v3 = vadd.f32 %v683_v22, %v474_v23  ;;  %1509 = vmatprep.mubr.f32.mxu0 %v4978_v19  ;;  %2899 = vmatprep.subr.mxu1 %v2660_v42  ;;  %v2657_v22 = vld [vmem:[%s4975_s3 + $0xe0] sm:$0xff] }
 0x341   :  { %v3924_v52 = vpop.f32.mrf.mxu0  ;;  %v3926_v2 = vpop.f32.mrf.mxu1  ;;  %2900 = vmatpush3.msra.mxu1 %v2660_v42 }
 0x342   :  { %2901 = vmatprep.subr.mxu1 %v2659_v35 }
 0x343   :  { %v480_v39 = vpop.f32.mrf.mxu0  ;;  %v689_v58 = vpop.f32.mrf.mxu1  ;;  %1510 = vmatmul.mubr.f32.gmra.mxu0 %v3693_v55  ;;  %2902 = vmatpush3.msra.mxu1 %v2659_v35 }
 0x344   :  { %v3929_v21 = vadd.f32 %v689_v58, %v480_v39  ;;  %1515 = vmatprep.mubr.f32.mxu0 %v4978_v19 }
 0x345   :  { %v3935_v11 = vpop.f32.mrf.mxu0  ;;  %v3937_v30 = vpop.f32.mrf.mxu1 }
 0x347   :  { %v486_v4 = vpop.f32.mrf.mxu0  ;;  %v695_v61 = vpop.f32.mrf.mxu1  ;;  %1516 = vmatmul.mubr.f32.gmra.mxu0 %v3702_v59 }
 0x348   :  { %v3940_v32 = vadd.f32 %v695_v61, %v486_v4  ;;  %1521 = vmatprep.mubr.f32.mxu0 %v4978_v19 }
 0x349   :  { %v3943_v55 = vpop.f32.mrf.mxu0  ;;  %v3945_v31 = vpop.f32.mrf.mxu1 }
 0x34b   :  { %v492_v43 = vpop.f32.mrf.mxu0  ;;  %v701_v63 = vpop.f32.mrf.mxu1  ;;  %1522 = vmatmul.mubr.f32.gmra.mxu0 %v3711_v26  ;;  %v2658_v26 = vld [vmem:[%s4975_s3 + $0xe8] sm:$0xff] }
 0x34c   :  { %v3951_v36 = vadd.f32 %v701_v63, %v492_v43  ;;  %1527 = vmatprep.mubr.f32.mxu0 %v4978_v19  ;;  %2903 = vmatprep.subr.mxu1 %v2658_v26 }
 0x34d   :  { %v3954_v59 = vpop.f32.mrf.mxu0  ;;  %v3956_v13 = vpop.f32.mrf.mxu1  ;;  %2904 = vmatpush3.msra.mxu1 %v2658_v26 }
 0x34e   :  { %2905 = vmatprep.subr.mxu1 %v2657_v22 }
 0x34f   :  { %v498_v41 = vpop.f32.mrf.mxu0  ;;  %v707_v47 = vpop.f32.mrf.mxu1  ;;  %1528 = vmatmul.mubr.f32.gmra.mxu0 %v3720_v15  ;;  %2906 = vmatpush3.msra.mxu1 %v2657_v22 }
 0x350   :  { %v3959_v44 = vadd.f32 %v707_v47, %v498_v41  ;;  %1533 = vmatprep.mubr.f32.mxu0 %v4978_v19 }
 0x351   :  { %v500_v51 = vpop.f32.mrf.mxu0  ;;  %v709_v0 = vpop.f32.mrf.mxu1 }
 0x352   :  { %v3965_v8 = vadd.f32 %v709_v0, %v500_v51 }
 0x353   :  { %v504_v7 = vpop.f32.mrf.mxu0  ;;  %v713_v57 = vpop.f32.mrf.mxu1  ;;  %1534 = vmatmul.mubr.f32.gmra.mxu0 %v3729_v27 }
 0x354   :  { %v3968_v28 = vadd.f32 %v713_v57, %v504_v7  ;;  %1539 = vmatprep.mubr.f32.mxu0 %v4978_v19 }
 0x355   :  { %v506_v15 = vpop.f32.mrf.mxu0  ;;  %v715_v60 = vpop.f32.mrf.mxu1 }
 0x356   :  { %v3971_v23 = vadd.f32 %v715_v60, %v506_v15  ;;  %v2655_v60 = vld [vmem:[%s4975_s3 + $0xd0] sm:$0xff] }
 0x357   :  { %v510_v39 = vpop.f32.mrf.mxu0  ;;  %v719_v58 = vpop.f32.mrf.mxu1  ;;  %1540 = vmatmul.mubr.f32.gmra.mxu0 %v3738_v38  ;;  %v2656_v38 = vld [vmem:[%s4975_s3 + $0xd8] sm:$0xff] }
 0x358   :  { %v3977_v42 = vadd.f32 %v719_v58, %v510_v39  ;;  %1545 = vmatprep.mubr.f32.mxu0 %v4978_v19  ;;  %2907 = vmatprep.subr.mxu1 %v2656_v38 }
 0x359   :  { %v512_v27 = vpop.f32.mrf.mxu0  ;;  %v721_v4 = vpop.f32.mrf.mxu1  ;;  %2908 = vmatpush3.msra.mxu1 %v2656_v38 }
 0x35a   :  { %v3980_v61 = vadd.f32 %v721_v4, %v512_v27  ;;  %2909 = vmatprep.subr.mxu1 %v2655_v60 }
 0x35b   :  { %v516_v35 = vpop.f32.mrf.mxu0  ;;  %v725_v43 = vpop.f32.mrf.mxu1  ;;  %1546 = vmatmul.mubr.f32.gmra.mxu0 %v3747_v49  ;;  %2910 = vmatpush3.msra.mxu1 %v2655_v60 }
 0x35c   :  { %v3983_v63 = vadd.f32 %v725_v43, %v516_v35  ;;  %1551 = vmatprep.mubr.f32.mxu0 %v4978_v19 }
 0x35d   :  { %v518_v41 = vpop.f32.mrf.mxu0  ;;  %v727_v47 = vpop.f32.mrf.mxu1 }
 0x35e   :  { %v3989_v26 = vadd.f32 %v727_v47, %v518_v41 }
 0x35f   :  { %v522_v51 = vpop.f32.mrf.mxu0  ;;  %v731_v0 = vpop.f32.mrf.mxu1  ;;  %1552 = vmatmul.mubr.f32.gmra.mxu0 %v3577_v33 }
 0x360   :  { %v3992_v7 = vadd.f32 %v731_v0, %v522_v51  ;;  %1557 = vmatprep.mubr.f32.mxu0 %v4978_v19 }
 0x361   :  { %v524_v49 = vpop.f32.mrf.mxu0  ;;  %v733_v57 = vpop.f32.mrf.mxu1 }
 0x362   :  { %v3995_v15 = vadd.f32 %v733_v57, %v524_v49 }
 0x363   :  { %v528_v22 = vpop.f32.mrf.mxu0  ;;  %v737_v39 = vpop.f32.mrf.mxu1  ;;  %1558 = vmatmul.mubr.f32.gmra.mxu0 %v3593_v17  ;;  %v2654_v17 = vld [vmem:[%s4975_s3 + $0xc8] sm:$0xff] }
 0x364   :  { %v4001_v58 = vadd.f32 %v737_v39, %v528_v22  ;;  %1563 = vmatprep.mubr.f32.mxu0 %v4978_v19  ;;  %2911 = vmatprep.subr.mxu1 %v2654_v17 }
 0x365   :  { %v530_v33 = vpop.f32.mrf.mxu0  ;;  %v739_v27 = vpop.f32.mrf.mxu1  ;;  %2912 = vmatpush3.msra.mxu1 %v2654_v17 }
 0x366   :  { %v4004_v4 = vadd.f32 %v739_v27, %v530_v33 }
 0x367   :  { %v534_v35 = vpop.f32.mrf.mxu0  ;;  %v743_v43 = vpop.f32.mrf.mxu1  ;;  %1564 = vmatmul.mubr.f32.gmra.mxu0 %v3596_v29  ;;  %v2653_v29 = vld [vmem:[%s4975_s3 + $0xc0] sm:$0xff] }
 0x368   :  { %v4007_v38 = vadd.f32 %v743_v43, %v534_v35  ;;  %1569 = vmatprep.mubr.f32.mxu0 %v4978_v19  ;;  %2913 = vmatprep.subr.mxu1 %v2653_v29 }
 0x369   :  { %v536_v41 = vpop.f32.mrf.mxu0  ;;  %v745_v47 = vpop.f32.mrf.mxu1  ;;  %2914 = vmatpush3.msra.mxu1 %v2653_v29 }
 0x36a   :  { %v4013_v51 = vadd.f32 %v745_v47, %v536_v41 }
 0x36b   :  { %v540_v0 = vpop.f32.mrf.mxu0  ;;  %v749_v49 = vpop.f32.mrf.mxu1  ;;  %1570 = vmatmul.mubr.f32.gmra.mxu0 %v3601_v1 }
 0x36c   :  { %v4016_v57 = vadd.f32 %v749_v49, %v540_v0  ;;  %1575 = vmatprep.mubr.f32.mxu0 %v4978_v19 }
 0x36d   :  { %v4022_v60 = vpop.f32.mrf.mxu0  ;;  %v4024_v22 = vpop.f32.mrf.mxu1 }
 0x36f   :  { %v546_v39 = vpop.f32.mrf.mxu0  ;;  %v755_v33 = vpop.f32.mrf.mxu1  ;;  %1576 = vmatmul.mubr.f32.gmra.mxu0 %v3604_v37  ;;  %v2652_v37 = vld [vmem:[%s4975_s3 + $0xb8] sm:$0xff] }
 0x370   :  { %v4027_v27 = vadd.f32 %v755_v33, %v546_v39  ;;  %1581 = vmatprep.mubr.f32.mxu0 %v4978_v19  ;;  %2915 = vmatprep.subr.mxu1 %v2652_v37 }
 0x371   :  { %v4030_v1 = vpop.f32.mrf.mxu0  ;;  %v4032_v35 = vpop.f32.mrf.mxu1  ;;  %2916 = vmatpush3.msra.mxu1 %v2652_v37 }
 0x373   :  { %v552_v43 = vpop.f32.mrf.mxu0  ;;  %v761_v17 = vpop.f32.mrf.mxu1  ;;  %1582 = vmatmul.mubr.f32.gmra.mxu0 %v3607_v6  ;;  %v2651_v6 = vld [vmem:[%s4975_s3 + $0xb0] sm:$0xff] }
 0x374   :  { %v4035_v41 = vadd.f32 %v761_v17, %v552_v43  ;;  %1587 = vmatprep.mubr.f32.mxu0 %v4978_v19  ;;  %2917 = vmatprep.subr.mxu1 %v2651_v6 }
 0x375   :  { %v4038_v47 = vpop.f32.mrf.mxu0  ;;  %v4040_v0 = vpop.f32.mrf.mxu1  ;;  %2918 = vmatpush3.msra.mxu1 %v2651_v6  ;;  %v2691_v6 = vld [vmem:[%s4975_s3 + $0x1f0] sm:$0xff] }
 0x376   :  { %4979 = vst [vmem:[#allocation5_spill] sm:$0xff] %v4035_v41  ;;  %4980 = vst [vmem:[#allocation6_spill] sm:$0xff] %v4038_v47 }
 0x377   :  { %4981 = vst [vmem:[#allocation7_spill] sm:$0xff] %v4040_v0  ;;  %v558_v49 = vpop.f32.mrf.mxu0  ;;  %v767_v29 = vpop.f32.mrf.mxu1  ;;  %1588 = vmatmul.mubr.f32.gmra.mxu0 %v3610_v53 }
 0x378   :  { %v4046_v39 = vadd.f32 %v767_v29, %v558_v49  ;;  %1593 = vmatprep.mubr.f32.mxu0 %v4978_v19 }
 0x379   :  { %v4052_v33 = vpop.f32.mrf.mxu0  ;;  %v4054_v43 = vpop.f32.mrf.mxu1 }
 0x37a   :  { %4982 = vst [vmem:[#allocation8_spill] sm:$0xff] %v4046_v39  ;;  %4983 = vst [vmem:[#allocation9_spill] sm:$0xff] %v4052_v33 }
 0x37b   :  { %4984 = vst [vmem:[#allocation10_spill] sm:$0xff] %v4054_v43  ;;  %v564_v17 = vpop.f32.mrf.mxu0  ;;  %v773_v41 = vpop.f32.mrf.mxu1  ;;  %1594 = vmatmul.mubr.f32.gmra.mxu0 %v3627_v10  ;;  %v2650_v10 = vld [vmem:[%s4975_s3 + $0xa8] sm:$0xff] }
 0x37c   :  { %v4057_v53 = vadd.f32 %v773_v41, %v564_v17  ;;  %1599 = vmatprep.mubr.f32.mxu0 %v4978_v19  ;;  %v2692_v41 = vld [vmem:[%s4975_s3 + $0x1f8] sm:$0xff]  ;;  %2919 = vmatprep.subr.mxu1 %v2650_v10 }
 0x37d   :  { %v4060_v49 = vpop.f32.mrf.mxu0  ;;  %v4062_v37 = vpop.f32.mrf.mxu1  ;;  %3031 = vmatprep.subr.mxu0 %v2692_v41  ;;  %2920 = vmatpush3.msra.mxu1 %v2650_v10 }
 0x37e   :  { %4985 = vst [vmem:[#allocation11_spill] sm:$0xff] %v4057_v53  ;;  %4986 = vst [vmem:[#allocation12_spill] sm:$0xff] %v4060_v49  ;;  %3032 = vmatpush3.msra.mxu0 %v2692_v41 }
 0x37f   :  { %4987 = vst [vmem:[#allocation13_spill] sm:$0xff] %v4062_v37  ;;  %v570_v29 = vpop.f32.mrf.mxu0  ;;  %v779_v39 = vpop.f32.mrf.mxu1  ;;  %1600 = vmatmul.mubr.f32.gmra.mxu0 %v3630_v12  ;;  %3033 = vmatprep.subr.mxu0 %v2691_v6 }
 0x380   :  { %v4065_v33 = vadd.f32 %v779_v39, %v570_v29  ;;  %1605 = vmatprep.mubr.f32.mxu0 %v4978_v19  ;;  %3034 = vmatpush3.msra.mxu0 %v2691_v6 }
 0x381   :  { %v572_v17 = vpop.f32.mrf.mxu0  ;;  %v781_v53 = vpop.f32.mrf.mxu1 }
 0x382   :  { %4988 = vst [vmem:[#allocation14_spill] sm:$0xff] %v4065_v33  ;;  %v4077_v12 = vadd.f32 %v781_v53, %v572_v17  ;;  %v4989_v33 = vmov 0.0  }
 0x383   :  { %v576_v39 = vpop.f32.mrf.mxu0  ;;  %v785_v29 = vpop.f32.mrf.mxu1  ;;  %1606 = vmatmul.mubr.f32.gmra.mxu0 %v3636_v14 }
 0x384   :  { %v4080_v19 = vadd.f32 %v785_v29, %v576_v39  ;;  %1611 = vmatprep.mubr.f32.mxu0 %v4989_v33  ;;  %v656_v33 = vadd.f32 %v3886_v45, %v3884_v40  ;;  %v2688_v29 = vld [vmem:[%s4975_s3 + $0x1d8] sm:$0xff] }
 0x385   :  { %v578_v37 = vpop.f32.mrf.mxu0  ;;  %v787_v49 = vpop.f32.mrf.mxu1 }
 0x386   :  { %v4083_v43 = vadd.f32 %v787_v49, %v578_v37  ;;  %v2690_v49 = vld [vmem:[%s4975_s3 + $0x1e8] sm:$0xff] }
 0x387   :  { %v582_v0 = vpop.f32.mrf.mxu0  ;;  %v791_v47 = vpop.f32.mrf.mxu1  ;;  %1612 = vmatmul.mubr.f32.gmra.mxu0 %v3639_v16  ;;  %v2649_v16 = vld [vmem:[%s4975_s3 + $0xa0] sm:$0xff]  ;;  %3035 = vmatprep.subr.mxu0 %v2690_v49 }
 0x388   :  { %v4086_v53 = vadd.f32 %v791_v47, %v582_v0  ;;  %v2689_v47 = vld [vmem:[%s4975_s3 + $0x1e0] sm:$0xff]  ;;  %2921 = vmatprep.subr.mxu1 %v2649_v16  ;;  %3036 = vmatpush3.msra.mxu0 %v2690_v49 }
 0x389   :  { %v584_v10 = vpop.f32.mrf.mxu0  ;;  %v793_v41 = vpop.f32.mrf.mxu1  ;;  %2922 = vmatpush3.msra.mxu1 %v2649_v16  ;;  %3037 = vmatprep.subr.mxu0 %v2689_v47 }
 0x38a   :  { %v4088_v17 = vadd.f32 %v793_v41, %v584_v10  ;;  %v2647_v10 = vld [vmem:[%s4975_s3 + $0x90] sm:$0xff]  ;;  %3038 = vmatpush3.msra.mxu0 %v2689_v47 }
 0x38b   :  { %v895_v14 = vpop.f32.mrf.mxu0  ;;  %v1185_v39 = vpop.f32.mrf.mxu1  ;;  %3039 = vmatprep.subr.mxu0 %v2688_v29 }
 0x38c   :  { %4990 = vst [vmem:[#allocation15_spill] sm:$0xff] %v4088_v17  ;;  %v1038_v6 = vadd.f32 %v895_v14, %v3881_v5  ;;  %v2648_v5 = vld [vmem:[%s4975_s3 + $0x98] sm:$0xff]  ;;  %v662_v17 = vadd.f32 %v3894_v24, %v3892_v62  ;;  %3040 = vmatpush3.msra.mxu0 %v2688_v29  ;;  %v2646_v62 = vld [vmem:[%s4975_s3 + $0x88] sm:$0xff]  ;;  %v2645_v24 = vld [vmem:[%s4975_s3 + $0x80] sm:$0xff] }
 0x38d   :  { %v897_v0 = vpop.f32.mrf.mxu0  ;;  %v1187_v37 = vpop.f32.mrf.mxu1  ;;  %2923 = vmatprep.subr.mxu1 %v2648_v5  ;;  %v2685_v29 = vld [vmem:[%s4975_s3 + $0x1c0] sm:$0xff] }
 0x38e   :  { %v4105_v40 = vadd.f32 %v1185_v39, %v1038_v6  ;;  %v1039_v45 = vadd.f32 %v897_v0, %v656_v33  ;;  %2924 = vmatpush3.msra.mxu1 %v2648_v5  ;;  %v2687_v6 = vld [vmem:[%s4975_s3 + $0x1d0] sm:$0xff] }
 0x38f   :  { %v901_v41 = vpop.f32.mrf.mxu0  ;;  %v1191_v14 = vpop.f32.mrf.mxu1  ;;  %2925 = vmatprep.subr.mxu1 %v2647_v10  ;;  %3041 = vmatprep.subr.mxu0 %v2687_v6 }
 0x390   :  { %v4115_v39 = vadd.f32 %v1187_v37, %v1039_v45  ;;  %v1040_v33 = vadd.f32 %v901_v41, %v3889_v9  ;;  %2926 = vmatpush3.msra.mxu1 %v2647_v10  ;;  %v2686_v9 = vld [vmem:[%s4975_s3 + $0x1c8] sm:$0xff]  ;;  %3042 = vmatpush3.msra.mxu0 %v2687_v6 }
 0x391   :  { %v903_v49 = vpop.f32.mrf.mxu0  ;;  %v1193_v47 = vpop.f32.mrf.mxu1  ;;  %2927 = vmatprep.subr.mxu1 %v2646_v62  ;;  %3043 = vmatprep.subr.mxu0 %v2686_v9 }
 0x392   :  { %v4121_v16 = vadd.f32 %v1191_v14, %v1040_v33  ;;  %v1041_v0 = vadd.f32 %v903_v49, %v662_v17  ;;  %v668_v17 = vadd.f32 %v3902_v25, %v3900_v48  ;;  %2928 = vmatpush3.msra.mxu1 %v2646_v62  ;;  %3044 = vmatpush3.msra.mxu0 %v2686_v9  ;;  %v2684_v48 = vld [vmem:[%s4975_s3 + $0x1b8] sm:$0xff]  ;;  %v2683_v33 = vld [vmem:[%s4975_s3 + $0x1b0] sm:$0xff]  ;;  %v2681_v9 = vld [vmem:[%s4975_s3 + $0x1a0] sm:$0xff] }
 0x393   :  { %v907_v37 = vpop.f32.mrf.mxu0  ;;  %2929 = vmatprep.subr.mxu1 %v2645_v24  ;;  %3045 = vmatprep.subr.mxu0 %v2685_v29 }
 0x394   :  { %v4134_v5 = vadd.f32 %v1193_v47, %v1041_v0  ;;  %v4137_v45 = vadd.f32 %v907_v37, %v3897_v46  ;;  %2930 = vmatpush3.msra.mxu1 %v2645_v24  ;;  %v674_v46 = vadd.f32 %v3910_v18, %v3908_v54  ;;  %3046 = vmatpush3.msra.mxu0 %v2685_v29  ;;  %v4157_v0 = vpop.f32.mrf.mxu1  ;;  %v2682_v18 = vld [vmem:[%s4975_s3 + $0x1a8] sm:$0xff]  ;;  %v2679_v29 = vld [vmem:[%s4975_s3 + $0x190] sm:$0xff] }
 0x395   :  { %v909_v10 = vpop.f32.mrf.mxu0  ;;  %3047 = vmatprep.subr.mxu0 %v2684_v48  ;;  %v680_v54 = vadd.f32 %v3918_v56, %v3916_v20  ;;  %v2680_v20 = vld [vmem:[%s4975_s3 + $0x198] sm:$0xff]  ;;  %v686_v37 = vadd.f32 %v3926_v2, %v3924_v52  ;;  %v692_v52 = vadd.f32 %v3937_v30, %v3935_v11  ;;  %v2678_v2 = vld [vmem:[%s4975_s3 + $0x188] sm:$0xff] }
 0x396   :  { %v4142_v41 = vadd.f32 %v909_v10, %v668_v17  ;;  %3048 = vmatpush3.msra.mxu0 %v2684_v48 }
 0x397   :  { %v913_v25 = vpop.f32.mrf.mxu0  ;;  %3049 = vmatprep.subr.mxu0 %v2683_v33 }
 0x398   :  { %v4150_v14 = vadd.f32 %v913_v25, %v3905_v34  ;;  %3050 = vmatpush3.msra.mxu0 %v2683_v33  ;;  %v2677_v33 = vld [vmem:[%s4975_s3 + $0x180] sm:$0xff] }
 0x399   :  { %v915_v6 = vpop.f32.mrf.mxu0  ;;  %3051 = vmatprep.subr.mxu0 %v2682_v18 }
 0x39a   :  { %v4155_v49 = vadd.f32 %v915_v6, %v674_v46  ;;  %3052 = vmatpush3.msra.mxu0 %v2682_v18 }
 0x39b   :  { %v919_v62 = vpop.f32.mrf.mxu0  ;;  %3053 = vmatprep.subr.mxu0 %v2681_v9 }
 0x39c   :  { %v4162_v34 = vadd.f32 %v919_v62, %v3913_v50  ;;  %v4175_v50 = vpop.f32.mrf.mxu1  ;;  %3054 = vmatpush3.msra.mxu0 %v2681_v9 }
 0x39d   :  { %v921_v24 = vpop.f32.mrf.mxu0  ;;  %3055 = vmatprep.subr.mxu0 %v2680_v20 }
 0x39e   :  { %v4170_v47 = vadd.f32 %v921_v24, %v680_v54  ;;  %3056 = vmatpush3.msra.mxu0 %v2680_v20  ;;  %v4187_v25 = vpop.f32.mrf.mxu1 }
 0x39f   :  { %v925_v56 = vpop.f32.mrf.mxu0  ;;  %3057 = vmatprep.subr.mxu0 %v2679_v29 }
 0x3a0   :  { %v4180_v17 = vadd.f32 %v925_v56, %v3921_v3  ;;  %3058 = vmatpush3.msra.mxu0 %v2679_v29  ;;  %v4202_v54 = vpop.f32.mrf.mxu1  ;;  %v704_v56 = vadd.f32 %v3956_v13, %v3954_v59 }
 0x3a1   :  { %v927_v10 = vpop.f32.mrf.mxu0  ;;  %3059 = vmatprep.subr.mxu0 %v2678_v2 }
 0x3a2   :  { %v4185_v48 = vadd.f32 %v927_v10, %v686_v37  ;;  %3060 = vmatpush3.msra.mxu0 %v2678_v2  ;;  %v4211_v24 = vpop.f32.mrf.mxu1 }
 0x3a3   :  { %v931_v46 = vpop.f32.mrf.mxu0  ;;  %3061 = vmatprep.subr.mxu0 %v2677_v33 }
 0x3a4   :  { %v4192_v3 = vadd.f32 %v931_v46, %v3929_v21  ;;  %v698_v21 = vadd.f32 %v3945_v31, %v3943_v55  ;;  %3062 = vmatpush3.msra.mxu0 %v2677_v33  ;;  %v4221_v55 = vld [vmem:[%s4975_s3 + $0x78] sm:$0xff]  ;;  %v4226_v29 = vpop.f32.mrf.mxu1 }
 0x3a5   :  { %v933_v6 = vpop.f32.mrf.mxu0  ;;  %2943 = vmatprep.subr.mxu1 %v4221_v55 }
 0x3a6   :  { %v4200_v62 = vadd.f32 %v933_v6, %v692_v52  ;;  %v4234_v13 = vpop.f32.mrf.mxu1 }
 0x3a7   :  { %v937_v11 = vpop.f32.mrf.mxu0 }
 0x3a8   :  { %v4207_v30 = vadd.f32 %v937_v11, %v3940_v32  ;;  %v4242_v11 = vpop.f32.mrf.mxu1 }
 0x3a9   :  { %v939_v18 = vpop.f32.mrf.mxu0 }
 0x3aa   :  { %v4209_v9 = vadd.f32 %v939_v18, %v698_v21 }
 0x3ab   :  { %v943_v20 = vpop.f32.mrf.mxu0 }
 0x3ac   :  { %v4216_v37 = vadd.f32 %v943_v20, %v3951_v36  ;;  %v4250_v20 = vpop.f32.mrf.mxu1 }
 0x3ad   :  { %v945_v32 = vpop.f32.mrf.mxu0 }
 0x3ae   :  { %v4224_v31 = vadd.f32 %v945_v32, %v704_v56 }
 0x3af   :  { %v949_v10 = vpop.f32.mrf.mxu0 }
 0x3b0   :  { %v4229_v46 = vadd.f32 %v949_v10, %v3959_v44  ;;  %v4258_v10 = vpop.f32.mrf.mxu1 }
 0x3b1   :  { %v951_v59 = vpop.f32.mrf.mxu0 }
 0x3b2   :  { %v4232_v36 = vadd.f32 %v951_v59, %v3965_v8 }
 0x3b3   :  { %v955_v52 = vpop.f32.mrf.mxu0 }
 0x3b4   :  { %v4237_v2 = vadd.f32 %v955_v52, %v3968_v28 }
 0x3b5   :  { %v957_v33 = vpop.f32.mrf.mxu0 }
 0x3b6   :  { %v4240_v6 = vadd.f32 %v957_v33, %v3971_v23  ;;  %v4266_v33 = vpop.f32.mrf.mxu1 }
 0x3b7   :  { %v961_v21 = vpop.f32.mrf.mxu0 }
 0x3b8   :  { %v4245_v44 = vadd.f32 %v961_v21, %v3977_v42 }
 0x3b9   :  { %v963_v18 = vpop.f32.mrf.mxu0 }
 0x3ba   :  { %v4248_v8 = vadd.f32 %v963_v18, %v3980_v61 }
 0x3bb   :  { %v967_v56 = vpop.f32.mrf.mxu0 }
 0x3bc   :  { %v4253_v28 = vadd.f32 %v967_v56, %v3983_v63  ;;  %v4274_v56 = vpop.f32.mrf.mxu1 }
 0x3bd   :  { %v969_v32 = vpop.f32.mrf.mxu0 }
 0x3be   :  { %v4256_v23 = vadd.f32 %v969_v32, %v3989_v26 }
 0x3bf   :  { %v973_v59 = vpop.f32.mrf.mxu0 }
 0x3c0   :  { %4991 = vst [vmem:[#allocation16_spill] sm:$0xff] %v4256_v23  ;;  %v4261_v42 = vadd.f32 %v973_v59, %v3992_v7 }
 0x3c1   :  { %v975_v52 = vpop.f32.mrf.mxu0 }
 0x3c2   :  { %4992 = vst [vmem:[#allocation17_spill] sm:$0xff] %v4261_v42  ;;  %v4264_v61 = vadd.f32 %v975_v52, %v3995_v15  ;;  %v4282_v52 = vpop.f32.mrf.mxu1 }
 0x3c3   :  { %v979_v21 = vpop.f32.mrf.mxu0 }
 0x3c4   :  { %4993 = vst [vmem:[#allocation18_spill] sm:$0xff] %v4264_v61  ;;  %v4269_v63 = vadd.f32 %v979_v21, %v4001_v58  ;;  %v752_v58 = vadd.f32 %v4024_v22, %v4022_v60  ;;  %v5003_v22 = vld [vmem:[#allocation7_spill] sm:$0xff] }
 0x3c5   :  { %v981_v18 = vpop.f32.mrf.mxu0 }
 0x3c6   :  { %4994 = vst [vmem:[#allocation19_spill] sm:$0xff] %v4269_v63  ;;  %v4272_v26 = vadd.f32 %v981_v18, %v4004_v4 }
 0x3c7   :  { %v985_v32 = vpop.f32.mrf.mxu0 }
 0x3c8   :  { %4995 = vst [vmem:[#allocation20_spill] sm:$0xff] %v4272_v26  ;;  %v4277_v7 = vadd.f32 %v985_v32, %v4007_v38  ;;  %v4291_v26 = vpop.f32.mrf.mxu1  ;;  %v758_v32 = vadd.f32 %v4032_v35, %v4030_v1  ;;  %v5008_v35 = vld [vmem:[#allocation10_spill] sm:$0xff] }
 0x3c9   :  { %v987_v59 = vpop.f32.mrf.mxu0 }
 0x3ca   :  { %4996 = vst [vmem:[#allocation21_spill] sm:$0xff] %v4277_v7  ;;  %v4280_v15 = vadd.f32 %v987_v59, %v4013_v51  ;;  %v4300_v7 = vpop.f32.mrf.mxu1 }
 0x3cb   :  { %v991_v61 = vpop.f32.mrf.mxu0 }
 0x3cc   :  { %4997 = vst [vmem:[#allocation22_spill] sm:$0xff] %v4280_v15  ;;  %v4287_v21 = vadd.f32 %v991_v61, %v4016_v57  ;;  %v5002_v57 = vld [vmem:[#allocation6_spill] sm:$0xff]  ;;  %v4309_v63 = vpop.f32.mrf.mxu1 }
 0x3cd   :  { %v993_v4 = vpop.f32.mrf.mxu0  ;;  %v764_v61 = vadd.f32 %v5003_v22, %v5002_v57  ;;  %v5012_v22 = vld [vmem:[#allocation13_spill] sm:$0xff] }
 0x3ce   :  { %4998 = vst [vmem:[#allocation23_spill] sm:$0xff] %v4287_v21  ;;  %v4289_v18 = vadd.f32 %v993_v4, %v752_v58  ;;  %v5004_v58 = vld [vmem:[#allocation5_spill] sm:$0xff]  ;;  %v4318_v42 = vpop.f32.mrf.mxu1 }
 0x3cf   :  { %v997_v38 = vpop.f32.mrf.mxu0 }
 0x3d0   :  { %4999 = vst [vmem:[#allocation24_spill] sm:$0xff] %v4289_v18  ;;  %v4296_v51 = vadd.f32 %v997_v38, %v4027_v27  ;;  %v5007_v27 = vld [vmem:[#allocation9_spill] sm:$0xff]  ;;  %v4327_v23 = vpop.f32.mrf.mxu1 }
 0x3d1   :  { %v999_v59 = vpop.f32.mrf.mxu0  ;;  %v770_v38 = vadd.f32 %v5008_v35, %v5007_v27 }
 0x3d2   :  { %5000 = vst [vmem:[#allocation25_spill] sm:$0xff] %v4296_v51  ;;  %v4298_v15 = vadd.f32 %v999_v59, %v758_v32  ;;  %v5009_v32 = vld [vmem:[#allocation8_spill] sm:$0xff] }
 0x3d3   :  { %v1003_v60 = vpop.f32.mrf.mxu0 }
 0x3d4   :  { %5001 = vst [vmem:[#allocation26_spill] sm:$0xff] %v4298_v15  ;;  %v4305_v4 = vadd.f32 %v1003_v60, %v5004_v58  ;;  %v5011_v60 = vld [vmem:[#allocation12_spill] sm:$0xff] }
 0x3d5   :  { %v1005_v18 = vpop.f32.mrf.mxu0  ;;  %v776_v58 = vadd.f32 %v5012_v22, %v5011_v60 }
 0x3d6   :  { %5005 = vst [vmem:[#allocation6_spill] sm:$0xff] %v4305_v4  ;;  %v4307_v21 = vadd.f32 %v1005_v18, %v764_v61  ;;  %v5013_v18 = vld [vmem:[#allocation11_spill] sm:$0xff] }
 0x3d7   :  { %v1009_v1 = vpop.f32.mrf.mxu0 }
 0x3d8   :  { %5006 = vst [vmem:[#allocation7_spill] sm:$0xff] %v4307_v21  ;;  %v4314_v59 = vadd.f32 %v1009_v1, %v5009_v32  ;;  %v5015_v1 = vld [vmem:[#allocation14_spill] sm:$0xff]  ;;  %v4335_v32 = vpop.f32.mrf.mxu1 }
 0x3d9   :  { %v1011_v15 = vpop.f32.mrf.mxu0 }
 0x3da   :  { %v4316_v51 = vadd.f32 %v1011_v15, %v770_v38  ;;  %v4343_v22 = vpop.f32.mrf.mxu1 }
 0x3db   :  { %v1015_v57 = vpop.f32.mrf.mxu0 }
 0x3dc   :  { %5010 = vst [vmem:[#allocation5_spill] sm:$0xff] %v4316_v51  ;;  %v4323_v61 = vadd.f32 %v1015_v57, %v5013_v18 }
 0x3dd   :  { %v1017_v21 = vpop.f32.mrf.mxu0 }
 0x3de   :  { %v4325_v4 = vadd.f32 %v1017_v21, %v776_v58 }
 0x3df   :  { %v1021_v27 = vpop.f32.mrf.mxu0 }
 0x3e0   :  { %5014 = vst [vmem:[#allocation9_spill] sm:$0xff] %v4325_v4  ;;  %v4330_v35 = vadd.f32 %v1021_v27, %v5015_v1  ;;  %v5021_v1 = vld [vmem:[#allocation15_spill] sm:$0xff] }
 0x3e1   :  { %v1023_v15 = vpop.f32.mrf.mxu0 }
 0x3e2   :  { %5016 = vst [vmem:[#allocation10_spill] sm:$0xff] %v4330_v35  ;;  %v4333_v38 = vadd.f32 %v1023_v15, %v4077_v12  ;;  %v4351_v15 = vpop.f32.mrf.mxu1 }
 0x3e3   :  { %v1027_v51 = vpop.f32.mrf.mxu0 }
 0x3e4   :  { %5017 = vst [vmem:[#allocation8_spill] sm:$0xff] %v4333_v38  ;;  %v4338_v60 = vadd.f32 %v1027_v51, %v4080_v19 }
 0x3e5   :  { %v1029_v57 = vpop.f32.mrf.mxu0 }
 0x3e6   :  { %5018 = vst [vmem:[#allocation12_spill] sm:$0xff] %v4338_v60  ;;  %v4341_v21 = vadd.f32 %v1029_v57, %v4083_v43  ;;  %v4355_v43 = vpop.f32.mrf.mxu1 }
 0x3e7   :  { %v1033_v58 = vpop.f32.mrf.mxu0 }
 0x3e8   :  { %5019 = vst [vmem:[#allocation13_spill] sm:$0xff] %v4341_v21  ;;  %v4346_v18 = vadd.f32 %v1033_v58, %v4086_v53  ;;  %v1702_v58 = vlaneseq }
 0x3e9   :  { %v1035_v27 = vpop.f32.mrf.mxu0 }
 0x3ea   :  { %5020 = vst [vmem:[#allocation11_spill] sm:$0xff] %v4346_v18  ;;  %v4349_v12 = vadd.f32 %v1035_v27, %v5021_v1  ;;  %v4359_v27 = vpop.f32.mrf.mxu1 }
 0x3eb   :  { %v1475_v38 = vpop.f32.mrf.mxu0 }
 0x3ec   :  { %5022 = vst [vmem:[#allocation14_spill] sm:$0xff] %v4349_v12  ;;  %v1618_v19 = vadd.f32 %v1475_v38, %v4105_v40  ;;  %v1332_v12 = vadd.f32 %v4157_v0, %v4137_v45  ;;  %v1333_v40 = vadd.f32 %v4175_v50, %v4142_v41  ;;  %v1335_v45 = vadd.f32 %v4202_v54, %v4155_v49  ;;  %v3129_v49 = vld [vmem:[%s4973_s1 + $0x8] sm:$0xff] }
 0x3ed   :  { %v1477_v51 = vpop.f32.mrf.mxu0 }
 0x3ee   :  { %v1619_v60 = vadd.f32 %v1477_v51, %v4115_v39  ;;  %v4365_v51 = vshrl.u32 %v1702_v58, 7  ;;  %v1337_v58 = vadd.f32 %v4226_v29, %v4170_v47  ;;  %v1339_v47 = vadd.f32 %v4242_v11, %v4185_v48 }
 0x3ef   :  { %v1481_v57 = vpop.f32.mrf.mxu0 }
 0x3f0   :  { %v1666_v21 = vmax.f32 %v1618_v19, %v1619_v60  ;;  %v1620_v35 = vadd.f32 %v1481_v57, %v4121_v16  ;;  %v4369_v57 = vpop.f32.mrf.mxu1  ;;  %v1704_v41 = vsub.s32 1, %v4365_v51 }
 0x3f1   :  { %v1483_v53 = vpop.f32.mrf.mxu0 }
 0x3f2   :  { %v1621_v18 = vadd.f32 %v1483_v53, %v4134_v5  ;;  %v1334_v53 = vadd.f32 %v4187_v25, %v4150_v14  ;;  %v4385_v25 = vrot.slane %v3129_v49, %v1704_v41  ;;  %v1340_v41 = vadd.f32 %v4250_v20, %v4192_v3 }
 0x3f3   :  { %v1487_v1 = vpop.f32.mrf.mxu0  ;;  %v1343_v3 = vadd.f32 %v4274_v56, %v4209_v9  ;;  %v1756_v56 = vld [vmem:[%s4975_s3 + $0x70] sm:$0xff] }
 0x3f4   :  { %v1667_v39 = vmax.f32 %v1620_v35, %v1621_v18  ;;  %v1622_v16 = vadd.f32 %v1487_v1, %v1332_v12  ;;  %v4376_v18 = vpop.f32.mrf.mxu1  ;;  %v1336_v12 = vadd.f32 %v4211_v24, %v4162_v34  ;;  %v1338_v34 = vadd.f32 %v4234_v13, %v4180_v17 }
 0x3f5   :  { %v1489_v38 = vpop.f32.mrf.mxu0 }
 0x3f6   :  { %v4367_v60 = vmax.f32 %v1666_v21, %v1667_v39  ;;  %v1623_v19 = vadd.f32 %v1489_v38, %v1333_v40  ;;  %v4387_v39 = vpop.f32.mrf.mxu1 }
 0x3f7   :  { %v1493_v5 = vpop.f32.mrf.mxu0 }
 0x3f8   :  { %v1668_v0 = vmax.f32 %v1622_v16, %v1623_v19  ;;  %v1624_v50 = vadd.f32 %v1493_v5, %v1334_v53 }
 0x3f9   :  { %v1495_v4 = vpop.f32.mrf.mxu0 }
 0x3fa   :  { %v1625_v35 = vadd.f32 %v1495_v4, %v1335_v45  ;;  %v4394_v45 = vpop.f32.mrf.mxu1 }
 0x3fb   :  { %v1499_v21 = vpop.f32.mrf.mxu0 }
 0x3fc   :  { %v1669_v1 = vmax.f32 %v1624_v50, %v1625_v35  ;;  %v1626_v40 = vadd.f32 %v1499_v21, %v1336_v12  ;;  %v1341_v50 = vadd.f32 %v4258_v10, %v4200_v62  ;;  %v4403_v12 = vpop.f32.mrf.mxu1 }
 0x3fd   :  { %v1501_v14 = vpop.f32.mrf.mxu0 }
 0x3fe   :  { %v1691_v54 = vmax.f32 %v1668_v0, %v1669_v1  ;;  %v1627_v4 = vadd.f32 %v1501_v14, %v1337_v58  ;;  %v1342_v1 = vadd.f32 %v4266_v33, %v4207_v30 }
 0x3ff   :  { %v1505_v38 = vpop.f32.mrf.mxu0 }
 0x400   :  { %v1670_v24 = vmax.f32 %v1626_v40, %v1627_v4  ;;  %v1707_v29 = vadd.f32 %v4385_v25, %v1691_v54  ;;  %v1628_v19 = vadd.f32 %v1505_v38, %v1338_v34  ;;  %v4410_v40 = vpop.f32.mrf.mxu1  ;;  %v1344_v38 = vadd.f32 %v4282_v52, %v4216_v37  ;;  %v1755_v37 = vld [vmem:[%s4975_s3 + $0x68] sm:$0xff] }
 0x401   :  { %v1507_v16 = vpop.f32.mrf.mxu0  ;;  %v1345_v34 = vadd.f32 %v4291_v26, %v4224_v31  ;;  %v1346_v31 = vadd.f32 %v4300_v7, %v4229_v46  ;;  %v1347_v26 = vadd.f32 %v4309_v63, %v4232_v36  ;;  %v1348_v36 = vadd.f32 %v4318_v42, %v4237_v2  ;;  %v1752_v2 = vld [vmem:[%s4975_s3 + $0x50] sm:$0xff] }
 0x402   :  { %v1629_v5 = vadd.f32 %v1507_v16, %v1339_v47  ;;  %v1719_v53 = vmul.f32 0.01, %v1707_v29  ;;  %v4422_v16 = vpop.f32.mrf.mxu1  ;;  %v1349_v63 = vadd.f32 %v4327_v23, %v4240_v6  ;;  %v1350_v42 = vadd.f32 %v4335_v32, %v4245_v44  ;;  %v1750_v44 = vld [vmem:[%s4975_s3 + $0x40] sm:$0xff] }
 0x403   :  { %v1511_v0 = vpop.f32.mrf.mxu0 }
 0x404   :  { %v1671_v17 = vmax.f32 %v1628_v19, %v1629_v5  ;;  %v4400_v13 = vmax.f32 %v1707_v29, %v1719_v53  ;;  %v1630_v35 = vadd.f32 %v1511_v0, %v1340_v41 }
 0x405   :  { %v1513_v48 = vpop.f32.mrf.mxu0 }
 0x406   :  { %v1692_v11 = vmax.f32 %v1670_v24, %v1671_v17  ;;  %v1631_v21 = vadd.f32 %v1513_v48, %v1341_v50  ;;  %2931 = vmatprep.mubr.f32.mxu1 %v4400_v13  ;;  %v4436_v17 = vpop.f32.mrf.mxu1 }
 0x407   :  { %v1517_v58 = vpop.f32.mrf.mxu0 }
 0x408   :  { %v1708_v62 = vadd.f32 %v4385_v25, %v1692_v11  ;;  %v1672_v20 = vmax.f32 %v1630_v35, %v1631_v21  ;;  %v1632_v49 = vadd.f32 %v1517_v58, %v1342_v1  ;;  %v1753_v11 = vld [vmem:[%s4975_s3 + $0x58] sm:$0xff]  ;;  %v4452_v6 = vpop.f32.mrf.mxu1 }
 0x409   :  { %v1519_v10 = vpop.f32.mrf.mxu0 }
 0x40a   :  { %v1720_v14 = vmul.f32 0.01, %v1708_v62  ;;  %v1633_v54 = vadd.f32 %v1519_v10, %v1343_v3  ;;  %v1351_v3 = vadd.f32 %v4343_v22, %v4248_v8  ;;  %v1751_v10 = vld [vmem:[%s4975_s3 + $0x48] sm:$0xff]  ;;  %v4465_v32 = vpop.f32.mrf.mxu1  ;;  %v1352_v22 = vadd.f32 %v4351_v15, %v4253_v28 }
 0x40b   :  { %v1523_v4 = vpop.f32.mrf.mxu0 }
 0x40c   :  { %v4416_v30 = vmax.f32 %v1708_v62, %v1720_v14  ;;  %v1673_v33 = vmax.f32 %v1632_v49, %v1633_v54  ;;  %v1634_v24 = vadd.f32 %v1523_v4, %v1344_v38  ;;  %v5023_v38 = vld [vmem:[#allocation16_spill] sm:$0xff]  ;;  %v4478_v28 = vpop.f32.mrf.mxu1 }
 0x40d   :  { %v1525_v9 = vpop.f32.mrf.mxu0 }
 0x40e   :  { %v1693_v47 = vmax.f32 %v1672_v20, %v1673_v33  ;;  %v1635_v29 = vadd.f32 %v1525_v9, %v1345_v34  ;;  %2932 = vmatmul.mubr.f32.vlgmr.msra.gmra.mxu1 %v4416_v30  ;;  %v1353_v34 = vadd.f32 %v4355_v43, %v5023_v38  ;;  %v1748_v43 = vld [vmem:[%s4975_s3 + $0x30] sm:$0xff] }
 0x40f   :  { %v1529_v19 = vpop.f32.mrf.mxu0  ;;  %2944 = vmatpush3.msra.mxu1 %v4221_v55  ;;  %v1754_v55 = vld [vmem:[%s4975_s3 + $0x60] sm:$0xff] }
 0x410   :  { %v1709_v52 = vadd.f32 %v4385_v25, %v1693_v47  ;;  %v1674_v5 = vmax.f32 %v1634_v24, %v1635_v29  ;;  %2945 = vmatprep.subr.mxu1 %v1756_v56  ;;  %v1636_v41 = vadd.f32 %v1529_v19, %v1346_v31  ;;  %v1749_v47 = vld [vmem:[%s4975_s3 + $0x38] sm:$0xff] }
 0x411   :  { %v1531_v53 = vpop.f32.mrf.mxu0  ;;  %2946 = vmatpush3.msra.mxu1 %v1756_v56 }
 0x412   :  { %v1721_v0 = vmul.f32 0.01, %v1709_v52  ;;  %v1637_v50 = vadd.f32 %v1531_v53, %v1347_v26  ;;  %2947 = vmatprep.subr.mxu1 %v1755_v37  ;;  %v5025_v26 = vld [vmem:[#allocation18_spill] sm:$0xff] }
 0x413   :  { %v1535_v46 = vpop.f32.mrf.mxu0  ;;  %2948 = vmatpush3.msra.mxu1 %v1755_v37  ;;  %v5024_v37 = vld [vmem:[#allocation17_spill] sm:$0xff] }
 0x414   :  { %v1675_v7 = vmax.f32 %v1636_v41, %v1637_v50  ;;  %v4442_v48 = vmax.f32 %v1709_v52, %v1721_v0  ;;  %2949 = vmatprep.subr.mxu1 %v1754_v55  ;;  %v1638_v58 = vadd.f32 %v1535_v46, %v1348_v36  ;;  %v1354_v31 = vadd.f32 %v4359_v27, %v5024_v37  ;;  %v1747_v0 = vld [vmem:[%s4975_s3 + $0x28] sm:$0xff]  ;;  %v4491_v36 = vpop.f32.mrf.mxu1 }
 0x415   :  { %v1537_v35 = vpop.f32.mrf.mxu0  ;;  %2950 = vmatpush3.msra.mxu1 %v1754_v55  ;;  %v1355_v52 = vadd.f32 %v4369_v57, %v5025_v26 }
 0x416   :  { %v1694_v21 = vmax.f32 %v1674_v5, %v1675_v7  ;;  %v1639_v1 = vadd.f32 %v1537_v35, %v1349_v63  ;;  %2934 = vmatprep.mubr.f32.mxu1 %v4442_v48  ;;  %3063 = vmatprep.mubr.f32.mxu0 %v4442_v48  ;;  %v5026_v63 = vld [vmem:[#allocation19_spill] sm:$0xff]  ;;  %v5027_v7 = vld [vmem:[#allocation20_spill] sm:$0xff] }
 0x417   :  { %v1541_v23 = vpop.f32.mrf.mxu0  ;;  %2951 = vmatprep.subr.mxu1 %v1753_v11  ;;  %v1356_v57 = vadd.f32 %v4376_v18, %v5026_v63  ;;  %v1745_v18 = vld [vmem:[%s4975_s3 + $0x18] sm:$0xff] }
 0x418   :  { %v1710_v62 = vadd.f32 %v4385_v25, %v1694_v21  ;;  %v1676_v20 = vmax.f32 %v1638_v58, %v1639_v1  ;;  %2952 = vmatpush3.msra.mxu1 %v1753_v11  ;;  %v1640_v54 = vadd.f32 %v1541_v23, %v1350_v42  ;;  %v1357_v11 = vadd.f32 %v4387_v39, %v5027_v7  ;;  %v1746_v58 = vld [vmem:[%s4975_s3 + $0x20] sm:$0xff]  ;;  %v4507_v39 = vpop.f32.mrf.mxu1 }
 0x419   :  { %v1543_v14 = vpop.f32.mrf.mxu0  ;;  %2953 = vmatprep.subr.mxu1 %v1752_v2 }
 0x41a   :  { %v1722_v49 = vmul.f32 0.01, %v1710_v62  ;;  %v1641_v4 = vadd.f32 %v1543_v14, %v1351_v3  ;;  %2954 = vmatpush3.msra.mxu1 %v1752_v2 }
 0x41b   :  { %v1547_v8 = vpop.f32.mrf.mxu0  ;;  %2955 = vmatprep.subr.mxu1 %v1751_v10 }
 0x41c   :  { %v4471_v33 = vmax.f32 %v1710_v62, %v1722_v49  ;;  %v1677_v9 = vmax.f32 %v1640_v54, %v1641_v4  ;;  %2956 = vmatpush3.msra.mxu1 %v1751_v10  ;;  %v1642_v29 = vadd.f32 %v1547_v8, %v1352_v22  ;;  %v5028_v62 = vld [vmem:[#allocation21_spill] sm:$0xff]  ;;  %v5029_v10 = vld [vmem:[#allocation22_spill] sm:$0xff]  ;;  %v1744_v4 = vld [vmem:[%s4975_s3 + $0x10] sm:$0xff] }
 0x41d   :  { %v1549_v56 = vpop.f32.mrf.mxu0  ;;  %2957 = vmatprep.subr.mxu1 %v1750_v44  ;;  %v1359_v14 = vadd.f32 %v4403_v12, %v5029_v10 }
 0x41e   :  { %v1695_v24 = vmax.f32 %v1676_v20, %v1677_v9  ;;  %v1643_v19 = vadd.f32 %v1549_v56, %v1353_v34  ;;  %2935 = vmatmul.mubr.f32.gmra.mxu1 %v4471_v33  ;;  %3064 = vmatmul.mubr.f32.vlgmr.msra.gmra.mxu0 %v4471_v33  ;;  %v1358_v20 = vadd.f32 %v4394_v45, %v5028_v62  ;;  %v1743_v45 = vld [vmem:[%s4975_s3 + $0x8] sm:$0xff]  ;;  %v1305_v34 = vpop.f32.mrf.mxu1  ;;  %v5030_v9 = vld [vmem:[#allocation23_spill] sm:$0xff] }
 0x41f   :  { %v1553_v15 = vpop.f32.mrf.mxu0  ;;  %2958 = vmatpush3.msra.mxu1 %v1750_v44  ;;  %v1360_v56 = vadd.f32 %v4410_v40, %v5030_v9  ;;  %v5037_v9 = vld [vmem:[#allocation9_spill] sm:$0xff] }
 0x420   :  { %v1711_v5 = vadd.f32 %v4385_v25, %v1695_v24  ;;  %v1678_v53 = vmax.f32 %v1642_v29, %v1643_v19  ;;  %2959 = vmatprep.subr.mxu1 %v1749_v47  ;;  %v1644_v50 = vadd.f32 %v1553_v15, %v1354_v31  ;;  %v1307_v40 = vpop.f32.mrf.mxu1 }
 0x421   :  { %v1555_v55 = vpop.f32.mrf.mxu0  ;;  %2960 = vmatpush3.msra.mxu1 %v1749_v47  ;;  %v5031_v47 = vld [vmem:[#allocation24_spill] sm:$0xff] }
 0x422   :  { %v1723_v41 = vmul.f32 0.01, %v1711_v5  ;;  %v1645_v46 = vadd.f32 %v1555_v55, %v1355_v52  ;;  %2961 = vmatprep.subr.mxu1 %v1748_v43  ;;  %v1361_v24 = vadd.f32 %v4422_v16, %v5031_v47  ;;  %v2676_v16 = vld [vmem:[%s4975_s3 + $0x178] sm:$0xff]  ;;  %v5033_v55 = vld [vmem:[#allocation26_spill] sm:$0xff]  ;;  %v1311_v7 = vpop.f32.mrf.mxu1 }
 0x423   :  { %v1559_v27 = vpop.f32.mrf.mxu0  ;;  %2962 = vmatpush3.msra.mxu1 %v1748_v43  ;;  %v1742_v43 = vld [vmem:[%s4975_s3] sm:$0xff] }
 0x424   :  { %v4497_v35 = vmax.f32 %v1711_v5, %v1723_v41  ;;  %v1679_v21 = vmax.f32 %v1644_v50, %v1645_v46  ;;  %2963 = vmatprep.subr.mxu1 %v1747_v0  ;;  %v1646_v23 = vadd.f32 %v1559_v27, %v1356_v57  ;;  %v5032_v5 = vld [vmem:[#allocation25_spill] sm:$0xff] }
 0x425   :  { %v1561_v1 = vpop.f32.mrf.mxu0  ;;  %2964 = vmatpush3.msra.mxu1 %v1747_v0  ;;  %v1363_v0 = vadd.f32 %v4452_v6, %v5033_v55 }
 0x426   :  { %v1696_v2 = vmax.f32 %v1678_v53, %v1679_v21  ;;  %v1647_v42 = vadd.f32 %v1561_v1, %v1357_v11  ;;  %2937 = vmatprep.mubr.f32.mxu1 %v4497_v35  ;;  %3066 = vmatprep.mubr.f32.mxu0 %v4497_v35  ;;  %v1362_v53 = vadd.f32 %v4436_v17, %v5032_v5  ;;  %v5034_v21 = vld [vmem:[#allocation6_spill] sm:$0xff]  ;;  %v5035_v1 = vld [vmem:[#allocation7_spill] sm:$0xff] }
 0x427   :  { %v1565_v3 = vpop.f32.mrf.mxu0  ;;  %2965 = vmatprep.subr.mxu1 %v1746_v58  ;;  %v1365_v17 = vadd.f32 %v4478_v28, %v5035_v1  ;;  %v5036_v28 = vld [vmem:[#allocation5_spill] sm:$0xff] }
 0x428   :  { %v1712_v49 = vadd.f32 %v4385_v25, %v1696_v2  ;;  %v1680_v54 = vmax.f32 %v1646_v23, %v1647_v42  ;;  %2966 = vmatpush3.msra.mxu1 %v1746_v58  ;;  %v1648_v22 = vadd.f32 %v1565_v3, %v1358_v20  ;;  %v1364_v58 = vadd.f32 %v4465_v32, %v5034_v21  ;;  %v1313_v20 = vpop.f32.mrf.mxu1 }
 0x429   :  { %v1567_v44 = vpop.f32.mrf.mxu0  ;;  %2967 = vmatprep.subr.mxu1 %v1745_v18  ;;  %v1706_v42 = vadd.f32 %v4385_v25, %v4367_v60  ;;  %v1366_v32 = vadd.f32 %v4491_v36, %v4314_v59 }
 0x42a   :  { %v1724_v8 = vmul.f32 0.01, %v1712_v49  ;;  %v1649_v38 = vadd.f32 %v1567_v44, %v1359_v14  ;;  %2968 = vmatpush3.msra.mxu1 %v1745_v18  ;;  %v1367_v14 = vadd.f32 %v4507_v39, %v5036_v28 }
 0x42b   :  { %v1571_v12 = vpop.f32.mrf.mxu0  ;;  %2969 = vmatprep.subr.mxu1 %v1744_v4  ;;  %v1718_v60 = vmul.f32 0.01, %v1706_v42 }
 0x42c   :  { %v4524_v29 = vmax.f32 %v1712_v49, %v1724_v8  ;;  %v1681_v19 = vmax.f32 %v1648_v22, %v1649_v38  ;;  %2970 = vmatpush3.msra.mxu1 %v1744_v4  ;;  %v1650_v31 = vadd.f32 %v1571_v12, %v1360_v56  ;;  %v1317_v38 = vpop.f32.mrf.mxu1  ;;  %v1368_v12 = vadd.f32 %v1305_v34, %v4323_v61  ;;  %v5039_v61 = vld [vmem:[#allocation8_spill] sm:$0xff] }
 0x42d   :  { %v1573_v15 = vpop.f32.mrf.mxu0  ;;  %2971 = vmatprep.subr.mxu1 %v1743_v45  ;;  %v1369_v56 = vadd.f32 %v1307_v40, %v5037_v9  ;;  %v1730_v36 = vmax.f32 %v1706_v42, %v1718_v60  ;;  %v1371_v34 = vadd.f32 %v1313_v20, %v5039_v61  ;;  %v5043_v20 = vld [vmem:[#allocation14_spill] sm:$0xff]  ;;  %v2667_v9 = vld [vmem:[%s4975_s3 + $0x130] sm:$0xff]  ;;  %v2701_v61 = vld [vmem:[%s4975_s3 + $0x240] sm:$0xff] }
 0x42e   :  { %v1697_v37 = vmax.f32 %v1680_v54, %v1681_v19  ;;  %v1651_v26 = vadd.f32 %v1573_v15, %v1361_v24  ;;  %2938 = vmatmul.mubr.f32.gmra.mxu1 %v4524_v29  ;;  %3067 = vmatmul.mubr.f32.gmra.mxu0 %v4524_v29 }
 0x42f   :  { %v1577_v52 = vpop.f32.mrf.mxu0  ;;  %2972 = vmatpush3.msra.mxu1 %v1743_v45 }
 0x430   :  { %v1713_v41 = vadd.f32 %v4385_v25, %v1697_v37  ;;  %v1682_v50 = vmax.f32 %v1650_v31, %v1651_v26  ;;  %2973 = vmatprep.subr.mxu1 %v1742_v43  ;;  %v1652_v63 = vadd.f32 %v1577_v52, %v1362_v53  ;;  %v5038_v31 = vld [vmem:[#allocation10_spill] sm:$0xff]  ;;  %v2675_v53 = vld [vmem:[%s4975_s3 + $0x170] sm:$0xff] }
 0x431   :  { %v1579_v46 = vpop.f32.mrf.mxu0  ;;  %2974 = vmatpush3.msra.mxu1 %v1742_v43  ;;  %v1319_v43 = vpop.f32.mrf.mxu1  ;;  %v1370_v26 = vadd.f32 %v1311_v7, %v5038_v31  ;;  %v5041_v7 = vld [vmem:[#allocation13_spill] sm:$0xff]  ;;  %v2703_v31 = vld [vmem:[%s4975_s3 + $0x250] sm:$0xff] }
 0x432   :  { %v1725_v27 = vmul.f32 0.01, %v1713_v41  ;;  %v1653_v57 = vadd.f32 %v1579_v46, %v1363_v0  ;;  %2987 = vmatprep.subr.mxu1 %v2676_v16 }
 0x433   :  { %v1583_v11 = vpop.f32.mrf.mxu0 }
 0x434   :  { %v4543_v2 = vmax.f32 %v1713_v41, %v1725_v27  ;;  %v1683_v6 = vmax.f32 %v1652_v63, %v1653_v57  ;;  %v1654_v3 = vadd.f32 %v1583_v11, %v1364_v58  ;;  %v2674_v27 = vld [vmem:[%s4975_s3 + $0x168] sm:$0xff]  ;;  %v5040_v63 = vld [vmem:[#allocation12_spill] sm:$0xff]  ;;  %v1373_v11 = vadd.f32 %v1319_v43, %v5041_v7 }
 0x435   :  { %v1585_v23 = vpop.f32.mrf.mxu0  ;;  %v1372_v57 = vadd.f32 %v1317_v38, %v5040_v63  ;;  %v2669_v38 = vld [vmem:[%s4975_s3 + $0x140] sm:$0xff]  ;;  %v2706_v43 = vld [vmem:[%s4975_s3 + $0x268] sm:$0xff]  ;;  %v2442_v7 = vld [vmem:[%s4976_s4 + $0xd8] sm:$0xff] }
 0x436   :  { %v1698_v18 = vmax.f32 %v1682_v50, %v1683_v6  ;;  %v1655_v62 = vadd.f32 %v1585_v23, %v1365_v17  ;;  %2940 = vmatprep.mubr.f32.mxu1 %v4543_v2  ;;  %3069 = vmatprep.mubr.f32.mxu0 %v4543_v2  ;;  %v1323_v50 = vpop.f32.mrf.mxu1  ;;  %v5042_v23 = vld [vmem:[#allocation11_spill] sm:$0xff]  ;;  %v2443_v63 = vld [vmem:[%s4976_s4 + $0xe0] sm:$0xff] }
 0x437   :  { %v1589_v10 = vpop.f32.mrf.mxu0  ;;  %v1374_v42 = vadd.f32 %v1323_v50, %v5042_v23 }
 0x438   :  { %v1714_v49 = vadd.f32 %v4385_v25, %v1698_v18  ;;  %v1684_v54 = vmax.f32 %v1654_v3, %v1655_v62  ;;  %v1656_v8 = vadd.f32 %v1589_v10, %v1366_v32  ;;  %v1325_v18 = vpop.f32.mrf.mxu1  ;;  %v2672_v62 = vld [vmem:[%s4975_s3 + $0x158] sm:$0xff] }
 0x439   :  { %v1591_v4 = vpop.f32.mrf.mxu0  ;;  %v1375_v10 = vadd.f32 %v1325_v18, %v5043_v20 }
 0x43a   :  { %v1726_v44 = vmul.f32 0.01, %v1714_v49  ;;  %v1657_v22 = vadd.f32 %v1591_v4, %v1367_v14 }
 0x43b   :  { %v1595_v45 = vpop.f32.mrf.mxu0 }
 0x43c   :  { %v1685_v47 = vmax.f32 %v1656_v8, %v1657_v22  ;;  %v4556_v24 = vmax.f32 %v1714_v49, %v1726_v44  ;;  %v1658_v19 = vadd.f32 %v1595_v45, %v1368_v12  ;;  %v2671_v49 = vld [vmem:[%s4975_s3 + $0x150] sm:$0xff]  ;;  %v2670_v44 = vld [vmem:[%s4975_s3 + $0x148] sm:$0xff]  ;;  %v2668_v12 = vld [vmem:[%s4975_s3 + $0x138] sm:$0xff] }
 0x43d   :  { %v1597_v59 = vpop.f32.mrf.mxu0 }
 0x43e   :  { %v1699_v39 = vmax.f32 %v1684_v54, %v1685_v47  ;;  %v1659_v15 = vadd.f32 %v1597_v59, %v1369_v56  ;;  %2941 = vmatmul.mubr.f32.gmra.mxu1 %v4556_v24  ;;  %3070 = vmatmul.mubr.f32.gmra.mxu0 %v4556_v24  ;;  %v2666_v56 = vld [vmem:[%s4975_s3 + $0x128] sm:$0xff]  ;;  %v2665_v47 = vld [vmem:[%s4975_s3 + $0x120] sm:$0xff]  ;;  %v2663_v59 = vld [vmem:[%s4975_s3 + $0x110] sm:$0xff] }
 0x43f   :  { %v1601_v37 = vpop.f32.mrf.mxu0  ;;  %2975 = vmatprep.mubr.f32.mxu1 %v1730_v36  ;;  %v2662_v36 = vld [vmem:[%s4975_s3 + $0x108] sm:$0xff] }
 0x440   :  { %v1686_v40 = vmax.f32 %v1658_v19, %v1659_v15  ;;  %v1715_v52 = vadd.f32 %v4385_v25, %v1699_v39  ;;  %v1660_v55 = vadd.f32 %v1601_v37, %v1370_v26  ;;  %v2661_v39 = vld [vmem:[%s4975_s3 + $0x100] sm:$0xff]  ;;  %v2708_v19 = vld [vmem:[%s4975_s3 + $0x278] sm:$0xff]  ;;  %v2707_v15 = vld [vmem:[%s4975_s3 + $0x270] sm:$0xff] }
 0x441   :  { %v1603_v5 = vpop.f32.mrf.mxu0  ;;  %v2705_v37 = vld [vmem:[%s4975_s3 + $0x260] sm:$0xff]  ;;  %v2702_v26 = vld [vmem:[%s4975_s3 + $0x248] sm:$0xff] }
 0x442   :  { %v1661_v0 = vadd.f32 %v1603_v5, %v1371_v34  ;;  %2976 = vmatmul.mubr.f32.vlgmr.msra.gmra.mxu1 %v4400_v13  ;;  %v1727_v41 = vmul.f32 0.01, %v1715_v52  ;;  %v2700_v34 = vld [vmem:[%s4975_s3 + $0x238] sm:$0xff] }
 0x443   :  { %2988 = vmatpush3.msra.mxu1 %v2676_v16  ;;  %v1607_v46 = vpop.f32.mrf.mxu0  ;;  %2978 = vmatprep.mubr.f32.mxu1 %v4416_v30  ;;  %v2673_v16 = vld [vmem:[%s4975_s3 + $0x160] sm:$0xff]  ;;  %v2696_v5 = vld [vmem:[%s4975_s3 + $0x218] sm:$0xff] }
 0x444   :  { %v1687_v21 = vmax.f32 %v1660_v55, %v1661_v0  ;;  %2989 = vmatprep.subr.mxu1 %v2675_v53  ;;  %v4573_v58 = vmax.f32 %v1715_v52, %v1727_v41  ;;  %v1662_v17 = vadd.f32 %v1607_v46, %v1372_v57  ;;  %v2698_v52 = vld [vmem:[%s4975_s3 + $0x228] sm:$0xff]  ;;  %v2693_v0 = vld [vmem:[%s4975_s3 + $0x200] sm:$0xff] }
 0x445   :  { %2990 = vmatpush3.msra.mxu1 %v2675_v53  ;;  %v1609_v13 = vpop.f32.mrf.mxu0  ;;  %v2695_v53 = vld [vmem:[%s4975_s3 + $0x210] sm:$0xff]  ;;  %v2694_v55 = vld [vmem:[%s4975_s3 + $0x208] sm:$0xff]  ;;  %v2427_v57 = vld [vmem:[%s4976_s4 + $0x60] sm:$0xff] }
 0x446   :  { %v1700_v1 = vmax.f32 %v1686_v40, %v1687_v21  ;;  %v1663_v6 = vadd.f32 %v1609_v13, %v1373_v11  ;;  %2991 = vmatprep.subr.mxu1 %v2674_v27  ;;  %2979 = vmatmul.mubr.f32.gmra.mxu1 %v4442_v48  ;;  %v2699_v40 = vld [vmem:[%s4975_s3 + $0x230] sm:$0xff]  ;;  %v2426_v11 = vld [vmem:[%s4976_s4 + $0x58] sm:$0xff] }
 0x447   :  { %2992 = vmatpush3.msra.mxu1 %v2674_v27  ;;  %3072 = vmatprep.mubr.f32.mxu0 %v4573_v58  ;;  %v1613_v3 = vpop.f32.mrf.mxu0  ;;  %v2428_v27 = vld [vmem:[%s4976_s4 + $0x68] sm:$0xff]  ;;  %v2441_v21 = vld [vmem:[%s4976_s4 + $0xd0] sm:$0xff] }
 0x448   :  { %v1716_v32 = vadd.f32 %v4385_v25, %v1700_v1  ;;  %v1688_v28 = vmax.f32 %v1662_v17, %v1663_v6  ;;  %2981 = vmatprep.mubr.f32.mxu1 %v4471_v33  ;;  %2993 = vmatprep.subr.mxu1 %v2673_v16  ;;  %v1664_v4 = vadd.f32 %v1613_v3, %v1374_v42 }
 0x449   :  { %2994 = vmatpush3.msra.mxu1 %v2673_v16  ;;  %v1615_v14 = vpop.f32.mrf.mxu0 }
 0x44a   :  { %v1728_v54 = vmul.f32 0.01, %v1716_v32  ;;  %v1665_v60 = vadd.f32 %v1615_v14, %v1375_v10  ;;  %2995 = vmatprep.subr.mxu1 %v2672_v62  ;;  %2982 = vmatmul.mubr.f32.gmra.mxu1 %v4497_v35 }
 0x44b   :  { %2996 = vmatpush3.msra.mxu1 %v2672_v62  ;;  %2984 = vmatprep.mubr.f32.mxu1 %v4524_v29 }
 0x44c   :  { %v1689_v8 = vmax.f32 %v1664_v4, %v1665_v60  ;;  %2997 = vmatprep.subr.mxu1 %v2671_v49  ;;  %v4595_v22 = vmax.f32 %v1716_v32, %v1728_v54 }
 0x44d   :  { %2998 = vmatpush3.msra.mxu1 %v2671_v49 }
 0x44e   :  { %v4600_v45 = vmax.f32 %v1688_v28, %v1689_v8  ;;  %2999 = vmatprep.subr.mxu1 %v2670_v44  ;;  %2985 = vmatmul.mubr.f32.gmra.mxu1 %v4543_v2 }
 0x44f   :  { %3000 = vmatpush3.msra.mxu1 %v2670_v44  ;;  %3073 = vmatmul.mubr.f32.gmra.mxu0 %v4595_v22 }
 0x450   :  { %3001 = vmatprep.subr.mxu1 %v2669_v38  ;;  %3019 = vmatprep.mubr.f32.mxu1 %v4416_v30  ;;  %v2664_v30 = vld [vmem:[%s4975_s3 + $0x118] sm:$0xff]  ;;  %v1717_v41 = vadd.f32 %v4385_v25, %v4600_v45  ;;  %v2445_v25 = vld [vmem:[%s4976_s4 + $0xf0] sm:$0xff]  ;;  %v2424_v45 = vld [vmem:[%s4976_s4 + $0x48] sm:$0xff] }
 0x451   :  { %3002 = vmatpush3.msra.mxu1 %v2669_v38  ;;  %v2440_v38 = vld [vmem:[%s4976_s4 + $0xc8] sm:$0xff] }
 0x452   :  { %3003 = vmatprep.subr.mxu1 %v2668_v12  ;;  %v1729_v50 = vmul.f32 0.01, %v1717_v41 }
 0x453   :  { %3004 = vmatpush3.msra.mxu1 %v2668_v12  ;;  %v2439_v12 = vld [vmem:[%s4976_s4 + $0xc0] sm:$0xff] }
 0x454   :  { %3005 = vmatprep.subr.mxu1 %v2667_v9  ;;  %v1741_v46 = vmax.f32 %v1717_v41, %v1729_v50  ;;  %v2476_v50 = vld [vmem:[%s4976_s4 + $0x1e8] sm:$0xff] }
 0x455   :  { %3006 = vmatpush3.msra.mxu1 %v2667_v9 }
 0x456   :  { %3007 = vmatprep.subr.mxu1 %v2666_v56 }
 0x457   :  { %3008 = vmatpush3.msra.mxu1 %v2666_v56 }
 0x458   :  { %3009 = vmatprep.subr.mxu1 %v2665_v47 }
 0x459   :  { %3010 = vmatpush3.msra.mxu1 %v2665_v47 }
 0x45a   :  { %3011 = vmatprep.subr.mxu1 %v2664_v30 }
 0x45b   :  { %3012 = vmatpush3.msra.mxu1 %v2664_v30 }
 0x45c   :  { %3013 = vmatprep.subr.mxu1 %v2663_v59 }
 0x45d   :  { %3014 = vmatpush3.msra.mxu1 %v2663_v59 }
 0x45e   :  { %3015 = vmatprep.subr.mxu1 %v2662_v36 }
 0x45f   :  { %3016 = vmatpush3.msra.mxu1 %v2662_v36 }
 0x460   :  { %3017 = vmatprep.subr.mxu1 %v2661_v39 }
 0x461   :  { %3018 = vmatpush3.msra.mxu1 %v2661_v39 }
 0x462   :  { %3020 = vmatmul.mubr.f32.vlgmr.msra.gmra.mxu1 %v4442_v48  ;;  %3075 = vmatprep.subr.mxu1 %v2708_v19  ;;  %v2704_v48 = vld [vmem:[%s4975_s3 + $0x258] sm:$0xff] }
 0x463   :  { %3022 = vmatprep.mubr.f32.mxu1 %v4471_v33  ;;  %3076 = vmatpush3.msra.mxu1 %v2708_v19 }
 0x464   :  { %3077 = vmatprep.subr.mxu1 %v2707_v15 }
 0x465   :  { %3078 = vmatpush3.msra.mxu1 %v2707_v15 }
 0x466   :  { %3023 = vmatmul.mubr.f32.gmra.mxu1 %v4497_v35  ;;  %3079 = vmatprep.subr.mxu1 %v2706_v43 }
 0x467   :  { %3025 = vmatprep.mubr.f32.mxu1 %v4524_v29  ;;  %3080 = vmatpush3.msra.mxu1 %v2706_v43  ;;  %v2423_v43 = vld [vmem:[%s4976_s4 + $0x40] sm:$0xff] }
 0x468   :  { %3081 = vmatprep.subr.mxu1 %v2705_v37 }
 0x469   :  { %3082 = vmatpush3.msra.mxu1 %v2705_v37  ;;  %v2478_v37 = vld [vmem:[%s4976_s4 + $0x1f8] sm:$0xff] }
 0x46a   :  { %3026 = vmatmul.mubr.f32.gmra.mxu1 %v4543_v2  ;;  %3083 = vmatprep.subr.mxu1 %v2704_v48 }
 0x46b   :  { %3028 = vmatprep.mubr.f32.mxu1 %v4556_v24  ;;  %3084 = vmatpush3.msra.mxu1 %v2704_v48  ;;  %v2438_v48 = vld [vmem:[%s4976_s4 + $0xb8] sm:$0xff] }
 0x46c   :  { %3085 = vmatprep.subr.mxu1 %v2703_v31 }
 0x46d   :  { %3086 = vmatpush3.msra.mxu1 %v2703_v31 }
 0x46e   :  { %3029 = vmatmul.mubr.f32.gmra.mxu1 %v4573_v58  ;;  %3087 = vmatprep.subr.mxu1 %v2702_v26 }
 0x46f   :  { %3088 = vmatpush3.msra.mxu1 %v2702_v26  ;;  %3107 = vmatprep.mubr.f32.mxu1 %v4471_v33  ;;  %v2697_v33 = vld [vmem:[%s4975_s3 + $0x220] sm:$0xff] }
 0x470   :  { %3089 = vmatprep.subr.mxu1 %v2701_v61 }
 0x471   :  { %3090 = vmatpush3.msra.mxu1 %v2701_v61  ;;  %v2462_v61 = vld [vmem:[%s4976_s4 + $0x178] sm:$0xff] }
 0x472   :  { %3091 = vmatprep.subr.mxu1 %v2700_v34 }
 0x473   :  { %3092 = vmatpush3.msra.mxu1 %v2700_v34  ;;  %v2422_v34 = vld [vmem:[%s4976_s4 + $0x38] sm:$0xff] }
 0x474   :  { %3093 = vmatprep.subr.mxu1 %v2699_v40 }
 0x475   :  { %3094 = vmatpush3.msra.mxu1 %v2699_v40  ;;  %v2477_v40 = vld [vmem:[%s4976_s4 + $0x1f0] sm:$0xff] }
 0x476   :  { %3095 = vmatprep.subr.mxu1 %v2698_v52 }
 0x477   :  { %3096 = vmatpush3.msra.mxu1 %v2698_v52 }
 0x478   :  { %3097 = vmatprep.subr.mxu1 %v2697_v33 }
 0x479   :  { %3098 = vmatpush3.msra.mxu1 %v2697_v33 }
 0x47a   :  { %3099 = vmatprep.subr.mxu1 %v2696_v5 }
 0x47b   :  { %3100 = vmatpush3.msra.mxu1 %v2696_v5  ;;  %v2437_v5 = vld [vmem:[%s4976_s4 + $0xb0] sm:$0xff] }
 0x47c   :  { %3101 = vmatprep.subr.mxu1 %v2695_v53 }
 0x47d   :  { %3102 = vmatpush3.msra.mxu1 %v2695_v53  ;;  %v2461_v53 = vld [vmem:[%s4976_s4 + $0x170] sm:$0xff] }
 0x47e   :  { %3103 = vmatprep.subr.mxu1 %v2694_v55 }
 0x47f   :  { %3104 = vmatpush3.msra.mxu1 %v2694_v55  ;;  %v2421_v55 = vld [vmem:[%s4976_s4 + $0x30] sm:$0xff] }
 0x480   :  { %3105 = vmatprep.subr.mxu1 %v2693_v0 }
 0x481   :  { %3106 = vmatpush3.msra.mxu1 %v2693_v0 }
 0x482   :  { %3108 = vmatmul.mubr.f32.vlgmr.msra.gmra.mxu1 %v4497_v35  ;;  %v2446_v35 = vld [vmem:[%s4976_s4 + $0xf8] sm:$0xff]  ;;  %2864 = vmatprep.subr.mxu1 %v2478_v37  ;;  %v2455_v37 = vld [vmem:[%s4976_s4 + $0x140] sm:$0xff] }
 0x483   :  { %3110 = vmatprep.mubr.f32.mxu1 %v4524_v29  ;;  %v2430_v29 = vld [vmem:[%s4976_s4 + $0x78] sm:$0xff]  ;;  %2829 = vmatprep.subr.mxu0 %v2446_v35 }
 0x484   :  { %2830 = vmatpush3.msra.mxu0 %v2430_v29  ;;  %2865 = vmatpush3.msra.mxu1 %v2462_v61  ;;  %v2470_v61 = vld [vmem:[%s4976_s4 + $0x1b8] sm:$0xff] }
 0x485   :  { %2831 = vmatprep.subr.mxu0 %v2445_v25  ;;  %2866 = vmatprep.subr.mxu1 %v2477_v40  ;;  %v2460_v25 = vld [vmem:[%s4976_s4 + $0x168] sm:$0xff] }
 0x486   :  { %3111 = vmatmul.mubr.f32.gmra.mxu1 %v4543_v2  ;;  %v2429_v2 = vld [vmem:[%s4976_s4 + $0x70] sm:$0xff] }
 0x487   :  { %3113 = vmatprep.mubr.f32.mxu1 %v4556_v24  ;;  %v2444_v24 = vld [vmem:[%s4976_s4 + $0xe8] sm:$0xff]  ;;  %2832 = vmatpush3.msra.mxu0 %v2429_v2 }
 0x488   :  { %2833 = vmatprep.subr.mxu0 %v2444_v24  ;;  %2867 = vmatpush3.msra.mxu1 %v2461_v53 }
 0x489   :  { %2834 = vmatpush3.msra.mxu0 %v2428_v27  ;;  %v2420_v27 = vld [vmem:[%s4976_s4 + $0x28] sm:$0xff]  ;;  %2868 = vmatprep.subr.mxu1 %v2476_v50 }
 0x48a   :  { %3114 = vmatmul.mubr.f32.gmra.mxu1 %v4573_v58  ;;  %2835 = vmatprep.subr.mxu0 %v2443_v63  ;;  %v2475_v63 = vld [vmem:[%s4976_s4 + $0x1e0] sm:$0xff]  ;;  %v2452_v50 = vld [vmem:[%s4976_s4 + $0x128] sm:$0xff] }
 0x48b   :  { %3116 = vmatprep.mubr.f32.mxu1 %v4595_v22  ;;  %2836 = vmatpush3.msra.mxu0 %v2427_v57  ;;  %v2425_v22 = vld [vmem:[%s4976_s4 + $0x50] sm:$0xff] }
 0x48c   :  { %2837 = vmatprep.subr.mxu0 %v2442_v7  ;;  %v2435_v7 = vld [vmem:[%s4976_s4 + $0xa0] sm:$0xff]  ;;  %2869 = vmatpush3.msra.mxu1 %v2460_v25  ;;  %v2450_v25 = vld [vmem:[%s4976_s4 + $0x118] sm:$0xff] }
 0x48d   :  { %2838 = vmatpush3.msra.mxu0 %v2426_v11  ;;  %v2459_v11 = vld [vmem:[%s4976_s4 + $0x160] sm:$0xff]  ;;  %2870 = vmatprep.subr.mxu1 %v2475_v63  ;;  %v2449_v63 = vld [vmem:[%s4976_s4 + $0x110] sm:$0xff] }
 0x48e   :  { %3117 = vmatmul.mubr.f32.gmra.mxu1 %v1741_v46  ;;  %2839 = vmatprep.subr.mxu0 %v2441_v21  ;;  %v2436_v46 = vld [vmem:[%s4976_s4 + $0xa8] sm:$0xff] }
 0x48f   :  { %2840 = vmatpush3.msra.mxu0 %v2425_v22  ;;  %2871 = vmatpush3.msra.mxu1 %v2459_v11  ;;  %v2448_v11 = vld [vmem:[%s4976_s4 + $0x108] sm:$0xff] }
 0x490   :  { %2841 = vmatprep.subr.mxu0 %v2440_v38  ;;  %v2457_v38 = vld [vmem:[%s4976_s4 + $0x150] sm:$0xff] }
 0x491   :  { %2842 = vmatpush3.msra.mxu0 %v2424_v45  ;;  %v2417_v45 = vld [vmem:[%s4976_s4 + $0x10] sm:$0xff] }
 0x492   :  { %2843 = vmatprep.subr.mxu0 %v2439_v12  ;;  %v2472_v12 = vld [vmem:[%s4976_s4 + $0x1c8] sm:$0xff] }
 0x493   :  { %2844 = vmatpush3.msra.mxu0 %v2423_v43  ;;  %v2431_v43 = vld [vmem:[%s4976_s4 + $0x80] sm:$0xff] }
 0x494   :  { %2845 = vmatprep.subr.mxu0 %v2438_v48  ;;  %v2415_v48 = vld [vmem:[%s4976_s4] sm:$0xff] }
 0x495   :  { %2846 = vmatpush3.msra.mxu0 %v2422_v34 }
 0x496   :  { %2847 = vmatprep.subr.mxu0 %v2437_v5 }
 0x497   :  { %2848 = vmatpush3.msra.mxu0 %v2421_v55 }
 0x498   :  { %2849 = vmatprep.subr.mxu0 %v2436_v46 }
 0x499   :  { %2850 = vmatpush3.msra.mxu0 %v2420_v27  ;;  %v2465_v27 = vld [vmem:[%s4976_s4 + $0x190] sm:$0xff] }
 0x49a   :  { %2851 = vmatprep.subr.mxu0 %v2435_v7  ;;  %v2464_v7 = vld [vmem:[%s4976_s4 + $0x188] sm:$0xff] }
 0x4ce   :  { %v2933_v58 = vpop.f32.mrf.mxu1 }
 0x4d0   :  { %v1841_v13 = vpop.f32.mrf.mxu1 }
 0x4de   :  { %v2936_v16 = vpop.f32.mrf.mxu1  ;;  %v3065_v59 = vpop.f32.mrf.mxu0 }
 0x4e0   :  { %v4726_v1 = vpop.f32.mrf.mxu1  ;;  %v2198_v52 = vpop.f32.mrf.mxu0 }
 0x4ee   :  { %v4728_v17 = vpop.f32.mrf.mxu1  ;;  %v3068_v35 = vpop.f32.mrf.mxu0 }
 0x4f0   :  { %v4730_v6 = vpop.f32.mrf.mxu1 }
 0x4fe   :  { %v4732_v23 = vpop.f32.mrf.mxu1 }
 0x500   :  { %v4734_v42 = vpop.f32.mrf.mxu1 }
 0x502   :  { %v2977_v18 = vpop.f32.mrf.mxu1 }
 0x503   :  { %v1952_v9 = vadd.f32 %v2977_v18, %v2933_v58  ;;  %v2434_v18 = vld [vmem:[%s4976_s4 + $0x98] sm:$0xff] }
 0x504   :  { %v1946_v3 = vpop.f32.mrf.mxu1 }
 0x505   :  { %v1947_v30 = vadd.f32 %v1946_v3, %v1841_v13  ;;  %v2419_v13 = vld [vmem:[%s4976_s4 + $0x20] sm:$0xff] }
 0x506   :  { %v2980_v62 = vpop.f32.mrf.mxu1  ;;  %2852 = vmatpush3.msra.mxu0 %v2419_v13 }
 0x507   :  { %v1962_v31 = vadd.f32 %v2980_v62, %v2936_v16  ;;  %v2474_v16 = vld [vmem:[%s4976_s4 + $0x1d8] sm:$0xff]  ;;  %2853 = vmatprep.subr.mxu0 %v2434_v18 }
 0x508   :  { %v1956_v20 = vpop.f32.mrf.mxu1  ;;  %2872 = vmatprep.subr.mxu1 %v2474_v16 }
 0x509   :  { %v1957_v2 = vadd.f32 %v1956_v20, %v4726_v1  ;;  %v2208_v1 = vpop.f32.mrf.mxu0  ;;  %v2458_v20 = vld [vmem:[%s4976_s4 + $0x158] sm:$0xff] }
 0x50a   :  { %v4736_v10 = vpop.f32.mrf.mxu1  ;;  %2873 = vmatpush3.msra.mxu1 %v2458_v20 }
 0x50b   :  { %v1972_v53 = vadd.f32 %v4736_v10, %v4728_v17  ;;  %v2467_v17 = vld [vmem:[%s4976_s4 + $0x1a0] sm:$0xff] }
 0x50c   :  { %v4738_v32 = vpop.f32.mrf.mxu1  ;;  %v2451_v10 = vld [vmem:[%s4976_s4 + $0x120] sm:$0xff] }
 0x50d   :  { %v1967_v3 = vadd.f32 %v4738_v32, %v4730_v6  ;;  %v2473_v6 = vld [vmem:[%s4976_s4 + $0x1d0] sm:$0xff] }
 0x50e   :  { %v4740_v28 = vpop.f32.mrf.mxu1  ;;  %v2433_v32 = vld [vmem:[%s4976_s4 + $0x90] sm:$0xff]  ;;  %2874 = vmatprep.subr.mxu1 %v2473_v6 }
 0x50f   :  { %2875 = vmatpush3.msra.mxu1 %v2457_v38 }
 0x510   :  { %v4742_v14 = vpop.f32.mrf.mxu1  ;;  %2876 = vmatprep.subr.mxu1 %v2472_v12 }
 0x522   :  { %v3021_v49 = vpop.f32.mrf.mxu1 }
 0x523   :  { %v2108_v47 = vadd.f32 %v3021_v49, %v1952_v9  ;;  %v2418_v49 = vld [vmem:[%s4976_s4 + $0x18] sm:$0xff] }
 0x524   :  { %v2068_v54 = vpop.f32.mrf.mxu1  ;;  %2854 = vmatpush3.msra.mxu0 %v2418_v49  ;;  %v3130_v49 = vld [vmem:[%s4973_s1 + $0x8] sm:$0xff] }
 0x525   :  { %v2107_v39 = vadd.f32 %v2068_v54, %v1947_v30  ;;  %v2238_v19 = vadd.f32 %v3065_v59, %v2108_v47  ;;  %v4840_v54 = vpop.f32.mrf.mxu0  ;;  %2855 = vmatprep.subr.mxu0 %v2433_v32  ;;  %v2432_v47 = vld [vmem:[%s4976_s4 + $0x88] sm:$0xff] }
 0x526   :  { %v3024_v4 = vpop.f32.mrf.mxu1  ;;  %v2456_v30 = vld [vmem:[%s4976_s4 + $0x148] sm:$0xff]  ;;  %2856 = vmatpush3.msra.mxu0 %v2417_v45 }
 0x527   :  { %v2110_v0 = vadd.f32 %v3024_v4, %v1962_v31  ;;  %v2237_v41 = vadd.f32 %v2198_v52, %v2107_v39  ;;  %v2218_v59 = vpop.f32.mrf.mxu0  ;;  %2857 = vmatprep.subr.mxu0 %v2432_v47  ;;  %2877 = vmatpush3.msra.mxu1 %v2456_v30  ;;  %v2454_v52 = vld [vmem:[%s4976_s4 + $0x138] sm:$0xff] }
 0x528   :  { %v2078_v60 = vpop.f32.mrf.mxu1 }
 0x529   :  { %v2109_v21 = vadd.f32 %v2078_v60, %v1957_v2  ;;  %v2240_v58 = vadd.f32 %v3068_v35, %v2110_v0  ;;  %v3074_v34 = vpop.f32.mrf.mxu0 }
 0x52a   :  { %v4744_v44 = vpop.f32.mrf.mxu1 }
 0x52b   :  { %v2239_v22 = vadd.f32 %v2208_v1, %v2109_v21  ;;  %v2228_v0 = vpop.f32.mrf.mxu0  ;;  %v2112_v46 = vadd.f32 %v4744_v44, %v1972_v53  ;;  %v2466_v44 = vld [vmem:[%s4976_s4 + $0x198] sm:$0xff]  ;;  %v2463_v21 = vld [vmem:[%s4976_s4 + $0x180] sm:$0xff]  ;;  %v2405_v1 = vsub.s32 2, %v4365_v51 }
 0x52c   :  { %v4746_v8 = vpop.f32.mrf.mxu1 }
 0x52d   :  { %v2111_v60 = vadd.f32 %v4746_v8, %v1967_v3  ;;  %v1982_v8 = vadd.f32 %v4740_v28, %v4732_v23  ;;  %v2416_v23 = vld [vmem:[%s4976_s4 + $0x8] sm:$0xff]  ;;  %v2471_v28 = vld [vmem:[%s4976_s4 + $0x1c0] sm:$0xff]  ;;  %v2242_v2 = vadd.f32 %v4840_v54, %v2112_v46  ;;  %v2406_v54 = vrot.slane %v3130_v49, %v2405_v1 }
 0x52e   :  { %v4760_v56 = vpop.f32.mrf.mxu1  ;;  %2858 = vmatpush3.msra.mxu0 %v2416_v23  ;;  %2878 = vmatprep.subr.mxu1 %v2471_v28 }
 0x52f   :  { %2859 = vmatprep.subr.mxu0 %v2431_v43  ;;  %2879 = vmatpush3.msra.mxu1 %v2455_v37 }
 0x530   :  { %v4762_v36 = vpop.f32.mrf.mxu1  ;;  %2860 = vmatpush3.msra.mxu0 %v2415_v48  ;;  %2880 = vmatprep.subr.mxu1 %v2470_v61 }
 0x531   :  { %2881 = vmatpush3.msra.mxu1 %v2454_v52 }
 0x542   :  { %v3109_v15 = vpop.f32.mrf.mxu1 }
 0x543   :  { %v4773_v26 = vadd.f32 %v3109_v15, %v2238_v19  ;;  %v2114_v19 = vadd.f32 %v4760_v56, %v1982_v8  ;;  %v2241_v15 = vadd.f32 %v2218_v59, %v2111_v60  ;;  %v1977_v56 = vadd.f32 %v4742_v14, %v4734_v42  ;;  %v2469_v42 = vld [vmem:[%s4976_s4 + $0x1b0] sm:$0xff] }
 0x544   :  { %v2328_v33 = vpop.f32.mrf.mxu1  ;;  %v2453_v14 = vld [vmem:[%s4976_s4 + $0x130] sm:$0xff]  ;;  %2882 = vmatprep.subr.mxu1 %v2469_v42 }
 0x545   :  { %2377 = vrot.lane.b32.xlu1 %v4773_v26, %s3158_s25  ;;  %v4805_v24 = vadd.f32 %v2328_v33, %v2237_v41  ;;  %v2113_v33 = vadd.f32 %v4762_v36, %v1977_v56  ;;  %v2244_v5 = vadd.f32 %v3074_v34, %v2114_v19  ;;  %v2468_v36 = vld [vmem:[%s4976_s4 + $0x1a8] sm:$0xff]  ;;  %2883 = vmatpush3.msra.mxu1 %v2453_v14  ;;  %v2481_v56 = vsub.s32 3, %v4365_v51 }
 0x546   :  { %v3112_v29 = vpop.f32.mrf.mxu1  ;;  %2884 = vmatprep.subr.mxu1 %v2468_v36 }
 0x547   :  { %v4832_v62 = vadd.f32 %v3112_v29, %v2240_v58  ;;  %v2243_v35 = vadd.f32 %v2228_v0, %v2113_v33  ;;  %2885 = vmatpush3.msra.mxu1 %v2452_v50  ;;  %v2447_v58 = vld [vmem:[%s4976_s4 + $0x100] sm:$0xff]  ;;  %v2482_v34 = vrot.slane %v3130_v49, %v2481_v56  ;;  %v2626_v33 = vsub.s32 4, %v4365_v51 }
 0x548   :  { %v2338_v57 = vpop.f32.mrf.mxu1  ;;  %2886 = vmatprep.subr.mxu1 %v2467_v17 }
 0x549   :  { %2375 = vrot.lane.b32.xlu1 %v4805_v24, %s3158_s25  ;;  %v4864_v9 = vadd.f32 %v2338_v57, %v2239_v22  ;;  %2887 = vmatpush3.msra.mxu1 %v2451_v10  ;;  %v2627_v53 = vrot.slane %v3130_v49, %v2626_v33 }
 0x54a   :  { %v4842_v4 = vpop.f32.mrf.mxu1  ;;  %2888 = vmatprep.subr.mxu1 %v2466_v44 }
 0x54b   :  { %v2372_v57 = vadd.f32 %v4842_v4, %v2242_v2  ;;  %2889 = vmatpush3.msra.mxu1 %v2450_v25 }
 0x54c   :  { %v2348_v39 = vpop.f32.mrf.mxu1  ;;  %2890 = vmatprep.subr.mxu1 %v2465_v27 }
 0x54d   :  { %2381 = vrot.lane.b32.xlu1 %v4832_v62, %s3158_s25  ;;  %v4892_v31 = vadd.f32 %v2348_v39, %v2241_v15  ;;  %2891 = vmatpush3.msra.mxu1 %v2449_v63 }
 0x54e   :  { %v3118_v40 = vpop.f32.mrf.mxu1  ;;  %2892 = vmatprep.subr.mxu1 %v2464_v7 }
 0x54f   :  { %v4911_v55 = vadd.f32 %v3118_v40, %v2244_v5  ;;  %2893 = vmatpush3.msra.mxu1 %v2448_v11 }
 0x550   :  { %v2358_v41 = vpop.f32.mrf.mxu1  ;;  %2894 = vmatprep.subr.mxu1 %v2463_v21 }
 0x551   :  { %2379 = vrot.lane.b32.xlu1 %v4864_v9, %s3158_s25  ;;  %v2373_v29 = vadd.f32 %v2358_v41, %v2243_v35  ;;  %2895 = vmatpush3.msra.mxu1 %v2447_v58  ;;  %v2635_v41 = vsub.s32 5, %v4365_v51 }
 0x553   :  { %v2636_v50 = vrot.slane %v3130_v49, %v2635_v41 }
 0x555   :  { %2383 = vrot.lane.b32.xlu1 %v4892_v31, %s3158_s25 }
 0x559   :  { %2389 = vrot.lane.b32.xlu1 %v4911_v55, %s3158_s25 }
 0x55d   :  { %2387 = vrot.lane.b32.xlu1 %v2373_v29, %s3158_s25 }
 0x561   :  { %2385 = vrot.lane.b32.xlu1 %v2372_v57, %s3158_s25 }
 0x5b7   :  { %v2378_v13 = vpop.permute.xlu1 %2377 }
 0x5b8   :  { %v2392_v20 = vmax.f32 %v4773_v26, %v2378_v13 }
 0x5bb   :  { %v2376_v16 = vpop.permute.xlu1 %2375 }
 0x5bc   :  { %v2391_v18 = vmax.f32 %v4805_v24, %v2376_v16 }
 0x5be   :  { %v2399_v4 = vmax.f32 %v2391_v18, %v2392_v20 }
 0x5bf   :  { %v2382_v3 = vpop.permute.xlu1 %2381 }
 0x5c0   :  { %v2394_v32 = vmax.f32 %v4832_v62, %v2382_v3  ;;  %v2407_v38 = vadd.f32 %v2406_v54, %v2399_v4 }
 0x5c2   :  { %v2411_v24 = vmax.f32 %v2407_v38, 0.0 }
 0x5c3   :  { %v2380_v6 = vpop.permute.xlu1 %2379 }
 0x5c4   :  { %v2393_v60 = vmax.f32 %v4864_v9, %v2380_v6 }
 0x5c6   :  { %v2400_v22 = vmax.f32 %v2393_v60, %v2394_v32 }
 0x5c7   :  { %v2384_v45 = vpop.permute.xlu1 %2383 }
 0x5c8   :  { %v2408_v12 = vadd.f32 %v2406_v54, %v2400_v22  ;;  %v2395_v28 = vmax.f32 %v4892_v31, %v2384_v45 }
 0x5ca   :  { %v2412_v8 = vmax.f32 %v2408_v12, 0.0 }
 0x5cb   :  { %v2390_v47 = vpop.permute.xlu1 %2389 }
 0x5cc   :  { %2547 = vmatprep.mubr.f32.mxu0 %v2412_v8  ;;  %v2398_v30 = vmax.f32 %v4911_v55, %v2390_v47 }
 0x5cd   :  { %2548 = vmatmul.mubr.f32.vlgmr.msra.gmra.mxu0 %v2411_v24 }
 0x5cf   :  { %v2388_v26 = vpop.permute.xlu1 %2387 }
 0x5d0   :  { %v2397_v59 = vmax.f32 %v2373_v29, %v2388_v26 }
 0x5d2   :  { %v2402_v39 = vmax.f32 %v2397_v59, %v2398_v30 }
 0x5d3   :  { %v2386_v23 = vpop.permute.xlu1 %2385 }
 0x5d4   :  { %v2396_v62 = vmax.f32 %v2372_v57, %v2386_v23  ;;  %v2410_v19 = vadd.f32 %v2406_v54, %v2402_v39 }
 0x5d6   :  { %v2401_v9 = vmax.f32 %v2395_v28, %v2396_v62  ;;  %v2414_v15 = vmax.f32 %v2410_v19, 0.0 }
 0x5d8   :  { %v2409_v43 = vadd.f32 %v2406_v54, %v2401_v9  ;;  %2617 = vmatprep.mubr.f32.mxu1 %v2414_v15 }
 0x5da   :  { %v2413_v37 = vmax.f32 %v2409_v43, 0.0 }
 0x5dc   :  { %2618 = vmatmul.mubr.f32.vlgmr.msra.gmra.mxu1 %v2413_v37 }
 0x68d   :  { %v2861_v48 = vpop.f32.mrf.mxu0 }
 0x68f   :  { %v2862_v61 = vpop.f32.mrf.mxu0 }
 0x690   :  { %v2863_v40 = vadd.f32 %v2862_v61, %v2861_v48 }
 0x692   :  { %v2550_v42 = vadd.f32 %v2863_v40, %v2482_v34 }
 0x69c   :  { %v2896_v52 = vpop.f32.mrf.mxu1 }
 0x69e   :  { %v2897_v5 = vpop.f32.mrf.mxu1 }
 0x69f   :  { %v2898_v31 = vadd.f32 %v2897_v5, %v2896_v52 }
 0x6a1   :  { %v2620_v14 = vadd.f32 %v2898_v31, %v2550_v42 }
 0x6a3   :  { %v2623_v55 = vmax.f32 %v2620_v14, 0.0 }
 0x6a5   :  { %v2628_v36 = vmul.f32 %v2627_v53, %v2623_v55 }
 0x6a7   :  { %v2630_v0 = vsel %vm2629_vm2, %v2628_v36, 0.0 }
 0x6a8   :  { %2631 = vadd.xlane.f32.xlu1 %v2630_v0 }
 0x731   :  { %v2632_v46 = vpop.xlane.xlu1 %2631 }
 0x732   :  { %v2637_v35 = vadd.f32 %v2636_v50, %v2632_v46 }
 0x734   :  { %2639 = vst.msk [vmem:[%s4977_s5] sm:$0xff] %vm2638_vm3, %v2637_v35 }
 0x735   :  { %2644 = vsyncpa [#allocation3], 1 }

</bundles_post_ra>
